<compile_context>
chip_gen: v7x
topology: tpu7x:2x2x1
jax: 0.10.0
libtpu: 0.0.40
codegen_flags: <defaults>
</compile_context>

<pallas_src>
import jax
import jax.numpy as jnp
import numpy as np
from jax.experimental import pallas as pl
from jax.experimental.pallas import tpu as pltpu

# ---------------------------------------------------------------------------
# Synthetic config (stands in for cfg.* in the PyTorch module)
# ---------------------------------------------------------------------------
DIM_IN = 16            # FPN channels fed to the head (module requires == CONV_HEAD_DIM)
CONV_HEAD_DIM = 16     # cfg.FAST_RCNN.CONV_HEAD_DIM
MLP_HEAD_DIM = 32      # cfg.FAST_RCNN.MLP_HEAD_DIM
NUM_STACKED_CONVS = 3  # cfg.FAST_RCNN.NUM_STACKED_CONVS -> 2 convs in `self.convs`
ROI_RES = 8            # cfg.FAST_RCNN.ROI_XFORM_RESOLUTION
NUM_LEVELS = 2         # cfg.FPN.ROI_MAX_LEVEL - cfg.FPN.ROI_MIN_LEVEL + 1
NUM_GROUPS = 4         # net_utils.get_group_gn(hidden_dim)
GN_EPS = 1e-5          # cfg.GROUP_NORM.EPSILON
NUM_ROIS = 16
BLOCK_ROIS = 8         # grid = NUM_ROIS / BLOCK_ROIS = 2 (>=2 and even for v7x)


# ---------------------------------------------------------------------------
# Fused head kernel
# ---------------------------------------------------------------------------
def head_kernel(x_ref, w1_ref, g1_ref, b1_ref, ws_ref, gs_ref, bs_ref,
                gm_ref, gmt_ref, wfc_ref, bfc_ref, out_ref, pad_ref):
    L = x_ref.shape[0]
    S = ws_ref.shape[0]
    nb = x_ref.shape[1]
    r = pad_ref.shape[1] - 2
    cin = pad_ref.shape[2] // (r + 2)
    hc = gm_ref.shape[0] // r
    G = gm_ref.shape[1]

    # Zero the padded scratch every grid step (the border must be zero; doing it
    # unconditionally stays correct when the parallel grid axis is split across
    # TensorCores). Only the interior is rewritten per conv below.
    pad_ref[...] = jnp.zeros_like(pad_ref)

    gmat = gm_ref[...]        # [r*hc, G]  lane -> group indicator
    gmat_t = gmt_ref[...]     # [G, r*hc]
    cnt = float(r * r * (hc // G))

    def conv_gn_relu(x3, w_ref, widx, gamma_t, beta_t):
        # x3: [nb, r, r*cin] f32 activation in lane-dense (row, col*chan) layout.
        # w_ref[widx]: [3, (r+2)*cin, r*hc] Toeplitz-packed 3x3 conv weight
        # (zero padding and the kw window are baked into the weight matrix).
        pad_ref[:, 1:1 + r, cin:cin + r * cin] = x3
        acc = None
        for kh in range(3):
            rows = pad_ref[:, kh:kh + r, :].reshape(nb * r, (r + 2) * cin)
            wk = w_ref[widx, kh]                                  # [(r+2)*cin, r*hc]
            part = jnp.dot(rows.astype(wk.dtype), wk,
                           preferred_element_type=jnp.float32)
            acc = part if acc is None else acc + part
        y = acc.reshape(nb, r, r * hc)                            # f32

        # GroupNorm statistics (f32): sublane reduce over rows, then one fused
        # lane->group matmul for [sum; sum_sq].
        s1 = jnp.sum(y, axis=1)                                   # [nb, r*hc]
        s2 = jnp.sum(y * y, axis=1)
        st = jnp.concatenate([s1, s2], axis=0)                    # [2*nb, r*hc]
        gsum = jnp.dot(st, gmat, preferred_element_type=jnp.float32)  # [2*nb, G]
        mean_g = gsum[:nb] / cnt
        var_g = jnp.maximum(gsum[nb:] / cnt - mean_g * mean_g, 0.0)   # clamp >= 0
        inv_g = jax.lax.rsqrt(var_g + GN_EPS)
        mb = jnp.concatenate([mean_g, inv_g], axis=0)             # [2*nb, G]
        bc = jnp.dot(mb, gmat_t, preferred_element_type=jnp.float32)  # [2*nb, r*hc]
        mean_c, inv_c = bc[:nb], bc[nb:]
        scale = inv_c * gamma_t[None, :]
        shift = beta_t[None, :] - mean_c * scale
        return jnp.maximum(y * scale[:, None, :] + shift[:, None, :], 0.0)

    # Per-level adp conv head, then element-wise max across levels.
    res = conv_gn_relu(x_ref[0], w1_ref, 0, g1_ref[0], b1_ref[0])
    for l in range(1, L):
        yl = conv_gn_relu(x_ref[l], w1_ref, l, g1_ref[l], b1_ref[l])
        res = jnp.maximum(res, yl)

    # Stacked convs.
    for s in range(S):
        res = conv_gn_relu(res, ws_ref, s, gs_ref[s], bs_ref[s])

    # Flatten + single FC matmul (K = r*r*hc) + bias + ReLU; lane-dense store.
    flat = res.reshape(nb, r * r * hc)                            # (row, col, chan) order
    y = jnp.dot(flat.astype(wfc_ref.dtype), wfc_ref[...],
                preferred_element_type=jnp.float32) + bfc_ref[...]
    out_ref[...] = jnp.maximum(y, 0.0)


# ---------------------------------------------------------------------------
# Host-side parameter packing
# ---------------------------------------------------------------------------
def _toeplitz_pack(w, r):
    """[B, O, I, 3, 3] OIHW conv weights -> [B, 3, (r+2)*I, r*O] row-Toeplitz.

    out[b, kh, iw*I + ci, ow*O + co] = w[b, co, ci, kh, iw-ow] if 0 <= iw-ow < 3 else 0.
    Zero padding (pad=1) is implicit in the Toeplitz structure.
    """
    B, O, I = w.shape[0], w.shape[1], w.shape[2]
    iw = jnp.arange(r + 2)[:, None, None]
    ow = jnp.arange(r)[None, :, None]
    kw = jnp.arange(3)[None, None, :]
    T = (iw - ow == kw).astype(jnp.float32)                       # [r+2, r, 3]
    wt = jnp.einsum('pqk,boihk->bhpiqo', T, w.astype(jnp.float32))
    return wt.reshape(B, 3, (r + 2) * I, r * O)


def roi_head_forward(x_levels_nchw, params, *, block_n=BLOCK_ROIS, use_bf16=False):
    L, N, C, R, _ = x_levels_nchw.shape
    H = params["w1"].shape[1]
    F = params["wfc"].shape[0]
    G = NUM_GROUPS
    S = params["ws"].shape[0]
    assert C == H, "module requires roi_xform channels == CONV_HEAD_DIM"
    assert N % block_n == 0
    # NOTE: for realistic ROI counts use block_n in 64..256 and keep the grid
    # length even so both v7x TensorCores are busy.

    wdtype = jnp.bfloat16 if use_bf16 else jnp.float32

    # ROI features: NCHW -> lane-dense [L, N, R, R*C] (last dim = R*C lanes).
    x_k = jnp.transpose(x_levels_nchw, (0, 1, 3, 4, 2)).astype(jnp.float32)
    x_k = x_k.reshape(L, N, R, R * C)

    # Conv weights (MXU operands only get the optional bf16 cast).
    w1_k = _toeplitz_pack(params["w1"], R).astype(wdtype)         # [L, 3, (R+2)*C, R*H]
    ws_k = _toeplitz_pack(params["ws"], R).astype(wdtype)         # [S, 3, (R+2)*H, R*H]

    # GN affine params tiled to the (col, chan) lane layout: [*, R*H].
    g1_t = jnp.tile(params["g1"].astype(jnp.float32), (1, R))
    b1_t = jnp.tile(params["b1"].astype(jnp.float32), (1, R))
    gs_t = jnp.tile(params["gs"].astype(jnp.float32), (1, R))
    bs_t = jnp.tile(params["bs"].astype(jnp.float32), (1, R))

    # Lane -> group indicator in the tiled layout and its transpose.
    cpg = H // G
    gmat_h = (jnp.arange(H)[:, None] // cpg == jnp.arange(G)[None, :]).astype(jnp.float32)
    gmat = jnp.tile(gmat_h, (R, 1))                               # [R*H, G]
    gmat_t = gmat.T                                               # [G, R*H]

    # FC weight: PyTorch NCHW-flatten [F, H*R*R] -> kernel (row, col, chan)
    # flatten order [R*R*H, F], zero-padded on F to a multiple of 128 lanes.
    F_pad = ((F + 127) // 128) * 128
    wfc_k = jnp.transpose(params["wfc"].reshape(F, H, R, R), (2, 3, 1, 0)).reshape(R * R * H, F)
    wfc_k = jnp.pad(wfc_k, ((0, 0), (0, F_pad - F))).astype(wdtype)
    bfc_k = jnp.pad(params["bfc"].astype(jnp.float32), (0, F_pad - F)).reshape(1, F_pad)

    out = pl.pallas_call(
        head_kernel,
        out_shape=jax.ShapeDtypeStruct((N, F_pad), jnp.float32),
        grid=(N // block_n,),
        in_specs=[
            pl.BlockSpec((L, block_n, R, R * C), lambda n: (0, n, 0, 0)),
            pl.BlockSpec((L, 3, (R + 2) * C, R * H), lambda n: (0, 0, 0, 0)),
            pl.BlockSpec((L, R * H), lambda n: (0, 0)),
            pl.BlockSpec((L, R * H), lambda n: (0, 0)),
            pl.BlockSpec((S, 3, (R + 2) * H, R * H), lambda n: (0, 0, 0, 0)),
            pl.BlockSpec((S, R * H), lambda n: (0, 0)),
            pl.BlockSpec((S, R * H), lambda n: (0, 0)),
            pl.BlockSpec((R * H, G), lambda n: (0, 0)),
            pl.BlockSpec((G, R * H), lambda n: (0, 0)),
            pl.BlockSpec((R * R * H, F_pad), lambda n: (0, 0)),
            pl.BlockSpec((1, F_pad), lambda n: (0, 0)),
        ],
        out_specs=pl.BlockSpec((block_n, F_pad), lambda n: (n, 0)),
        scratch_shapes=[pltpu.VMEM((block_n, R + 2, (R + 2) * C), jnp.float32)],
        compiler_params=pltpu.CompilerParams(dimension_semantics=("parallel",)),
    )(x_k, w1_k, g1_t, b1_t, ws_k, gs_t, bs_t, gmat, gmat_t, wfc_k, bfc_k)
    return out[:, :F]


# ---------------------------------------------------------------------------
# Pure-JAX reference (NCHW, identical to the PyTorch forward)
# ---------------------------------------------------------------------------
def ref_forward(x_levels, params, groups=NUM_GROUPS, eps=GN_EPS):
    def cgr(x, w, gamma, beta):
        y = jax.lax.conv_general_dilated(
            x, w, window_strides=(1, 1), padding=((1, 1), (1, 1)),
            dimension_numbers=("NCHW", "OIHW", "NCHW"))
        n, c, hh, ww = y.shape
        yg = y.reshape(n, groups, c // groups, hh, ww)
        mean = yg.mean(axis=(2, 3, 4), keepdims=True)
        var = jnp.mean((yg - mean) ** 2, axis=(2, 3, 4), keepdims=True)
        yn = ((yg - mean) / jnp.sqrt(var + eps)).reshape(n, c, hh, ww)
        yn = yn * gamma[None, :, None, None] + beta[None, :, None, None]
        return jnp.maximum(yn, 0.0)

    L = x_levels.shape[0]
    outs = [cgr(x_levels[l], params["w1"][l], params["g1"][l], params["b1"][l])
            for l in range(L)]
    r = outs[0]
    for l in range(1, L):
        r = jnp.maximum(r, outs[l])
    for s in range(params["ws"].shape[0]):
        r = cgr(r, params["ws"][s], params["gs"][s], params["bs"][s])
    flat = r.reshape(r.shape[0], -1)
    y = flat @ params["wfc"].T + params["bfc"][None, :]
    return jnp.maximum(y, 0.0)


# ---------------------------------------------------------------------------
if __name__ == "__main__":
    key = jax.random.PRNGKey(0)
    ks = jax.random.split(key, 8)
    L, N, C, H, R, F = NUM_LEVELS, NUM_ROIS, DIM_IN, CONV_HEAD_DIM, ROI_RES, MLP_HEAD_DIM
    S = NUM_STACKED_CONVS - 1

    msra = (2.0 / (9.0 * H)) ** 0.5
    params = {
        "w1": jax.random.normal(ks[0], (L, H, C, 3, 3), jnp.float32) * msra,   # adp conv weights
        "g1": 1.0 + 0.1 * jax.random.normal(ks[1], (L, H), jnp.float32),       # GN gamma
        "b1": 0.1 * jax.random.normal(ks[2], (L, H), jnp.float32),             # GN beta
        "ws": jax.random.normal(ks[3], (S, H, H, 3, 3), jnp.float32) * msra,   # stacked conv weights
        "gs": 1.0 + 0.1 * jax.random.normal(ks[4], (S, H), jnp.float32),
        "bs": 0.1 * jax.random.normal(ks[5], (S, H), jnp.float32),
        "wfc": jax.random.normal(ks[6], (F, H * R * R), jnp.float32)
               * (2.0 / (H * R * R + F)) ** 0.5,                               # XavierFill
        "bfc": jnp.zeros((F,), jnp.float32),                                   # constant 0
    }

    # Per-level pooled ROI features (output of roi_xform, NCHW per level).
    x_levels = jax.random.normal(ks[7], (L, N, C, R, R), jnp.float32)

    ref = ref_forward(x_levels, params)

    # f32 matmul path (v5e default; also the reference-accuracy path).
    out = roi_head_forward(x_levels, params, use_bf16=False)
    out = jax.block_until_ready(out)
    np.testing.assert_allclose(np.asarray(out), np.asarray(ref), rtol=5e-3, atol=5e-3)
    assert out.shape == (N, F)

    # bf16 MXU-operand path (v6e / v7x); elementwise + GN stats stay f32.
    out_bf16 = roi_head_forward(x_levels, params, use_bf16=True)
    out_bf16 = jax.block_until_ready(out_bf16)
    np.testing.assert_allclose(np.asarray(out_bf16), np.asarray(ref), rtol=5e-2, atol=5e-2)

    print("KERNEL_OK")
</pallas_src>

<mosaic_0001>
module attributes {stable_mosaic.version = 11 : i64} {
  func.func @head_kernel(%arg0: i32, %arg1: memref<2x8x8x128xf32, #tpu.memory_space<vmem>>, %arg2: memref<2x3x160x128xf32, #tpu.memory_space<vmem>>, %arg3: memref<2x128xf32, #tpu.memory_space<vmem>>, %arg4: memref<2x128xf32, #tpu.memory_space<vmem>>, %arg5: memref<2x3x160x128xf32, #tpu.memory_space<vmem>>, %arg6: memref<2x128xf32, #tpu.memory_space<vmem>>, %arg7: memref<2x128xf32, #tpu.memory_space<vmem>>, %arg8: memref<128x4xf32, #tpu.memory_space<vmem>>, %arg9: memref<4x128xf32, #tpu.memory_space<vmem>>, %arg10: memref<1024x128xf32, #tpu.memory_space<vmem>>, %arg11: memref<1x128xf32, #tpu.memory_space<vmem>>, %arg12: memref<8x128xf32, #tpu.memory_space<vmem>>, %arg13: memref<8x10x160xf32, #tpu.memory_space<vmem>>) attributes {dimension_semantics = [#tpu.dimension_semantics<parallel>], iteration_bounds = array<i64: 2>, scalar_prefetch = 0 : i64, scratch_operands = 1 : i64, tpu.core_type = #tpu.core_type<tc>, window_params = [{transform_indices = @transform_0, window_bounds = array<i64: 2, 8, 8, 128>}, {pipeline_mode = #tpu.pipeline_mode<synchronous>, transform_indices = @transform_1, window_bounds = array<i64: 2, 3, 160, 128>}, {pipeline_mode = #tpu.pipeline_mode<synchronous>, transform_indices = @transform_2, window_bounds = array<i64: 2, 128>}, {pipeline_mode = #tpu.pipeline_mode<synchronous>, transform_indices = @transform_3, window_bounds = array<i64: 2, 128>}, {pipeline_mode = #tpu.pipeline_mode<synchronous>, transform_indices = @transform_4, window_bounds = array<i64: 2, 3, 160, 128>}, {pipeline_mode = #tpu.pipeline_mode<synchronous>, transform_indices = @transform_5, window_bounds = array<i64: 2, 128>}, {pipeline_mode = #tpu.pipeline_mode<synchronous>, transform_indices = @transform_6, window_bounds = array<i64: 2, 128>}, {pipeline_mode = #tpu.pipeline_mode<synchronous>, transform_indices = @transform_7, window_bounds = array<i64: 128, 4>}, {pipeline_mode = #tpu.pipeline_mode<synchronous>, transform_indices = @transform_8, window_bounds = array<i64: 4, 128>}, {pipeline_mode = #tpu.pipeline_mode<synchronous>, transform_indices = @transform_9, window_bounds = array<i64: 1024, 128>}, {pipeline_mode = #tpu.pipeline_mode<synchronous>, transform_indices = @transform_10, window_bounds = array<i64: 1, 128>}, {transform_indices = @transform_11, window_bounds = array<i64: 8, 128>}]} {
    %cst = arith.constant 0.000000e+00 : f32
    %0 = vector.broadcast %cst : f32 to vector<8x10x160xf32>
    %c0 = arith.constant 0 : index
    %c0_0 = arith.constant 0 : index
    %c0_1 = arith.constant 0 : index
    %1 = vector.load %arg13[%c0, %c0_0, %c0_1] : memref<8x10x160xf32, #tpu.memory_space<vmem>>, vector<8x10x160xf32>
    tpu.vector_store %arg13[%c0, %c0_0, %c0_1], %0 {strides = array<i32>} : memref<8x10x160xf32, #tpu.memory_space<vmem>>, vector<8x10x160xf32>,
    %c0_2 = arith.constant 0 : index
    %c0_3 = arith.constant 0 : index
    %2 = vector.load %arg8[%c0_2, %c0_3] : memref<128x4xf32, #tpu.memory_space<vmem>>, vector<128x4xf32>
    %c0_4 = arith.constant 0 : index
    %c0_5 = arith.constant 0 : index
    %3 = vector.load %arg9[%c0_4, %c0_5] : memref<4x128xf32, #tpu.memory_space<vmem>>, vector<4x128xf32>
    %c0_6 = arith.constant 0 : index
    %c0_7 = arith.constant 0 : index
    %c0_8 = arith.constant 0 : index
    %c0_9 = arith.constant 0 : index
    %4 = vector.load %arg1[%c0_6, %c0_7, %c0_8, %c0_9] : memref<2x8x8x128xf32, #tpu.memory_space<vmem>>, vector<1x8x8x128xf32>
    %5 = vector.shape_cast %4 : vector<1x8x8x128xf32> to vector<8x8x128xf32>
    %c0_10 = arith.constant 0 : index
    %c0_11 = arith.constant 0 : index
    %6 = vector.load %arg3[%c0_10, %c0_11] : memref<2x128xf32, #tpu.memory_space<vmem>>, vector<1x128xf32>
    %7 = vector.shape_cast %6 : vector<1x128xf32> to vector<128xf32>
    %c0_12 = arith.constant 0 : index
    %c0_13 = arith.constant 0 : index
    %8 = vector.load %arg4[%c0_12, %c0_13] : memref<2x128xf32, #tpu.memory_space<vmem>>, vector<1x128xf32>
    %9 = vector.shape_cast %8 : vector<1x128xf32> to vector<128xf32>
    %c0_14 = arith.constant 0 : index
    %c1 = arith.constant 1 : index
    %c16 = arith.constant 16 : index
    %10 = vector.load %arg13[%c0_14, %c1, %c16] : memref<8x10x160xf32, #tpu.memory_space<vmem>>, vector<8x8x128xf32>
    tpu.vector_store %arg13[%c0_14, %c1, %c16], %5 {strides = array<i32>} : memref<8x10x160xf32, #tpu.memory_space<vmem>>, vector<8x8x128xf32>,
    %c0_15 = arith.constant 0 : index
    %c0_16 = arith.constant 0 : index
    %c0_17 = arith.constant 0 : index
    %11 = vector.load %arg13[%c0_15, %c0_16, %c0_17] : memref<8x10x160xf32, #tpu.memory_space<vmem>>, vector<8x8x160xf32>
    %12 = vector.shape_cast %11 : vector<8x8x160xf32> to vector<64x160xf32>
    %c0_18 = arith.constant 0 : index
    %c0_19 = arith.constant 0 : index
    %c0_20 = arith.constant 0 : index
    %c0_21 = arith.constant 0 : index
    %13 = vector.load %arg2[%c0_18, %c0_19, %c0_20, %c0_21] : memref<2x3x160x128xf32, #tpu.memory_space<vmem>>, vector<1x1x160x128xf32>
    %14 = vector.shape_cast %13 : vector<1x1x160x128xf32> to vector<160x128xf32>
    %cst_22 = arith.constant dense<0.000000e+00> : vector<64x128xf32>
    %15 = tpu.matmul %12, %14, %cst_22 {dimension_numbers = #tpu.dot_dimension_numbers<[1], [0], [0], [1], [0, 0, 1, 1], [], []>} : vector<64x160xf32>, vector<160x128xf32>, vector<64x128xf32> -> vector<64x128xf32>
    %c0_23 = arith.constant 0 : index
    %c1_24 = arith.constant 1 : index
    %c0_25 = arith.constant 0 : index
    %16 = vector.load %arg13[%c0_23, %c1_24, %c0_25] : memref<8x10x160xf32, #tpu.memory_space<vmem>>, vector<8x8x160xf32>
    %17 = vector.shape_cast %16 : vector<8x8x160xf32> to vector<64x160xf32>
    %c0_26 = arith.constant 0 : index
    %c1_27 = arith.constant 1 : index
    %c0_28 = arith.constant 0 : index
    %c0_29 = arith.constant 0 : index
    %18 = vector.load %arg2[%c0_26, %c1_27, %c0_28, %c0_29] : memref<2x3x160x128xf32, #tpu.memory_space<vmem>>, vector<1x1x160x128xf32>
    %19 = vector.shape_cast %18 : vector<1x1x160x128xf32> to vector<160x128xf32>
    %cst_30 = arith.constant dense<0.000000e+00> : vector<64x128xf32>
    %20 = tpu.matmul %17, %19, %cst_30 {dimension_numbers = #tpu.dot_dimension_numbers<[1], [0], [0], [1], [0, 0, 1, 1], [], []>} : vector<64x160xf32>, vector<160x128xf32>, vector<64x128xf32> -> vector<64x128xf32>
    %21 = arith.addf %15, %20 : vector<64x128xf32>
    %c0_31 = arith.constant 0 : index
    %c2 = arith.constant 2 : index
    %c0_32 = arith.constant 0 : index
    %22 = vector.load %arg13[%c0_31, %c2, %c0_32] : memref<8x10x160xf32, #tpu.memory_space<vmem>>, vector<8x8x160xf32>
    %23 = vector.shape_cast %22 : vector<8x8x160xf32> to vector<64x160xf32>
    %c0_33 = arith.constant 0 : index
    %c2_34 = arith.constant 2 : index
    %c0_35 = arith.constant 0 : index
    %c0_36 = arith.constant 0 : index
    %24 = vector.load %arg2[%c0_33, %c2_34, %c0_35, %c0_36] : memref<2x3x160x128xf32, #tpu.memory_space<vmem>>, vector<1x1x160x128xf32>
    %25 = vector.shape_cast %24 : vector<1x1x160x128xf32> to vector<160x128xf32>
    %cst_37 = arith.constant dense<0.000000e+00> : vector<64x128xf32>
    %26 = tpu.matmul %23, %25, %cst_37 {dimension_numbers = #tpu.dot_dimension_numbers<[1], [0], [0], [1], [0, 0, 1, 1], [], []>} : vector<64x160xf32>, vector<160x128xf32>, vector<64x128xf32> -> vector<64x128xf32>
    %27 = arith.addf %21, %26 : vector<64x128xf32>
    %28 = vector.shape_cast %27 : vector<64x128xf32> to vector<8x8x128xf32>
    %cst_38 = arith.constant dense<0.000000e+00> : vector<8x128xf32>
    %29 = vector.multi_reduction <add>, %28, %cst_38 [1] : vector<8x8x128xf32> to vector<8x128xf32>
    %30 = arith.mulf %28, %28 : vector<8x8x128xf32>
    %cst_39 = arith.constant dense<0.000000e+00> : vector<8x128xf32>
    %31 = vector.multi_reduction <add>, %30, %cst_39 [1] : vector<8x8x128xf32> to vector<8x128xf32>
    %32 = tpu.concatenate %29, %31 in 0 : vector<8x128xf32>, vector<8x128xf32> -> vector<16x128xf32>
    %cst_40 = arith.constant dense<0.000000e+00> : vector<16x4xf32>
    %33 = tpu.matmul %32, %2, %cst_40 {dimension_numbers = #tpu.dot_dimension_numbers<[1], [0], [0], [1], [0, 0, 1, 1], [], []>} : vector<16x128xf32>, vector<128x4xf32>, vector<16x4xf32> -> vector<16x4xf32>
    %34 = vector.extract_strided_slice %33 {offsets = [0, 0], sizes = [8, 4], strides = [1, 1]} : vector<16x4xf32> to vector<8x4xf32>
    %cst_41 = arith.constant 2.560000e+02 : f32
    %35 = vector.broadcast %cst_41 : f32 to vector<8x4xf32>
    %36 = arith.divf %34, %35 : vector<8x4xf32>
    %37 = vector.extract_strided_slice %33 {offsets = [8, 0], sizes = [8, 4], strides = [1, 1]} : vector<16x4xf32> to vector<8x4xf32>
    %cst_42 = arith.constant 2.560000e+02 : f32
    %38 = vector.broadcast %cst_42 : f32 to vector<8x4xf32>
    %39 = arith.divf %37, %38 : vector<8x4xf32>
    %40 = arith.mulf %36, %36 : vector<8x4xf32>
    %41 = arith.subf %39, %40 : vector<8x4xf32>
    %cst_43 = arith.constant 0.000000e+00 : f32
    %42 = vector.broadcast %cst_43 : f32 to vector<8x4xf32>
    %43 = arith.maximumf %41, %42 : vector<8x4xf32>
    %cst_44 = arith.constant 9.99999974E-6 : f32
    %44 = vector.broadcast %cst_44 : f32 to vector<8x4xf32>
    %45 = arith.addf %43, %44 : vector<8x4xf32>
    %46 = math.rsqrt %45 : vector<8x4xf32>
    %47 = tpu.concatenate %36, %46 in 0 : vector<8x4xf32>, vector<8x4xf32> -> vector<16x4xf32>
    %cst_45 = arith.constant dense<0.000000e+00> : vector<16x128xf32>
    %48 = tpu.matmul %47, %3, %cst_45 {dimension_numbers = #tpu.dot_dimension_numbers<[1], [0], [0], [1], [0, 0, 1, 1], [], []>} : vector<16x4xf32>, vector<4x128xf32>, vector<16x128xf32> -> vector<16x128xf32>
    %49 = vector.extract_strided_slice %48 {offsets = [0, 0], sizes = [8, 128], strides = [1, 1]} : vector<16x128xf32> to vector<8x128xf32>
    %50 = vector.extract_strided_slice %48 {offsets = [8, 0], sizes = [8, 128], strides = [1, 1]} : vector<16x128xf32> to vector<8x128xf32>
    %51 = vector.shape_cast %7 : vector<128xf32> to vector<1x128xf32>
    %52 = vector.broadcast %51 : vector<1x128xf32> to vector<8x128xf32>
    %53 = arith.mulf %50, %52 : vector<8x128xf32>
    %54 = vector.shape_cast %9 : vector<128xf32> to vector<1x128xf32>
    %55 = arith.mulf %49, %53 : vector<8x128xf32>
    %56 = vector.broadcast %54 : vector<1x128xf32> to vector<8x128xf32>
    %57 = arith.subf %56, %55 : vector<8x128xf32>
    %58 = vector.shape_cast %53 : vector<8x128xf32> to vector<8x1x128xf32>
    %59 = vector.broadcast %58 : vector<8x1x128xf32> to vector<8x8x128xf32>
    %60 = arith.mulf %28, %59 : vector<8x8x128xf32>
    %61 = vector.shape_cast %57 : vector<8x128xf32> to vector<8x1x128xf32>
    %62 = vector.broadcast %61 : vector<8x1x128xf32> to vector<8x8x128xf32>
    %63 = arith.addf %60, %62 : vector<8x8x128xf32>
    %cst_46 = arith.constant 0.000000e+00 : f32
    %64 = vector.broadcast %cst_46 : f32 to vector<8x8x128xf32>
    %65 = arith.maximumf %63, %64 : vector<8x8x128xf32>
    %c1_47 = arith.constant 1 : index
    %c0_48 = arith.constant 0 : index
    %c0_49 = arith.constant 0 : index
    %c0_50 = arith.constant 0 : index
    %66 = vector.load %arg1[%c1_47, %c0_48, %c0_49, %c0_50] : memref<2x8x8x128xf32, #tpu.memory_space<vmem>>, vector<1x8x8x128xf32>
    %67 = vector.shape_cast %66 : vector<1x8x8x128xf32> to vector<8x8x128xf32>
    %c1_51 = arith.constant 1 : index
    %c0_52 = arith.constant 0 : index
    %68 = vector.load %arg3[%c1_51, %c0_52] : memref<2x128xf32, #tpu.memory_space<vmem>>, vector<1x128xf32>
    %69 = vector.shape_cast %68 : vector<1x128xf32> to vector<128xf32>
    %c1_53 = arith.constant 1 : index
    %c0_54 = arith.constant 0 : index
    %70 = vector.load %arg4[%c1_53, %c0_54] : memref<2x128xf32, #tpu.memory_space<vmem>>, vector<1x128xf32>
    %71 = vector.shape_cast %70 : vector<1x128xf32> to vector<128xf32>
    %c0_55 = arith.constant 0 : index
    %c1_56 = arith.constant 1 : index
    %c16_57 = arith.constant 16 : index
    %72 = vector.load %arg13[%c0_55, %c1_56, %c16_57] : memref<8x10x160xf32, #tpu.memory_space<vmem>>, vector<8x8x128xf32>
    tpu.vector_store %arg13[%c0_55, %c1_56, %c16_57], %67 {strides = array<i32>} : memref<8x10x160xf32, #tpu.memory_space<vmem>>, vector<8x8x128xf32>,
    %c0_58 = arith.constant 0 : index
    %c0_59 = arith.constant 0 : index
    %c0_60 = arith.constant 0 : index
    %73 = vector.load %arg13[%c0_58, %c0_59, %c0_60] : memref<8x10x160xf32, #tpu.memory_space<vmem>>, vector<8x8x160xf32>
    %74 = vector.shape_cast %73 : vector<8x8x160xf32> to vector<64x160xf32>
    %c1_61 = arith.constant 1 : index
    %c0_62 = arith.constant 0 : index
    %c0_63 = arith.constant 0 : index
    %c0_64 = arith.constant 0 : index
    %75 = vector.load %arg2[%c1_61, %c0_62, %c0_63, %c0_64] : memref<2x3x160x128xf32, #tpu.memory_space<vmem>>, vector<1x1x160x128xf32>
    %76 = vector.shape_cast %75 : vector<1x1x160x128xf32> to vector<160x128xf32>
    %cst_65 = arith.constant dense<0.000000e+00> : vector<64x128xf32>
    %77 = tpu.matmul %74, %76, %cst_65 {dimension_numbers = #tpu.dot_dimension_numbers<[1], [0], [0], [1], [0, 0, 1, 1], [], []>} : vector<64x160xf32>, vector<160x128xf32>, vector<64x128xf32> -> vector<64x128xf32>
    %c0_66 = arith.constant 0 : index
    %c1_67 = arith.constant 1 : index
    %c0_68 = arith.constant 0 : index
    %78 = vector.load %arg13[%c0_66, %c1_67, %c0_68] : memref<8x10x160xf32, #tpu.memory_space<vmem>>, vector<8x8x160xf32>
    %79 = vector.shape_cast %78 : vector<8x8x160xf32> to vector<64x160xf32>
    %c1_69 = arith.constant 1 : index
    %c1_70 = arith.constant 1 : index
    %c0_71 = arith.constant 0 : index
    %c0_72 = arith.constant 0 : index
    %80 = vector.load %arg2[%c1_69, %c1_70, %c0_71, %c0_72] : memref<2x3x160x128xf32, #tpu.memory_space<vmem>>, vector<1x1x160x128xf32>
    %81 = vector.shape_cast %80 : vector<1x1x160x128xf32> to vector<160x128xf32>
    %cst_73 = arith.constant dense<0.000000e+00> : vector<64x128xf32>
    %82 = tpu.matmul %79, %81, %cst_73 {dimension_numbers = #tpu.dot_dimension_numbers<[1], [0], [0], [1], [0, 0, 1, 1], [], []>} : vector<64x160xf32>, vector<160x128xf32>, vector<64x128xf32> -> vector<64x128xf32>
    %83 = arith.addf %77, %82 : vector<64x128xf32>
    %c0_74 = arith.constant 0 : index
    %c2_75 = arith.constant 2 : index
    %c0_76 = arith.constant 0 : index
    %84 = vector.load %arg13[%c0_74, %c2_75, %c0_76] : memref<8x10x160xf32, #tpu.memory_space<vmem>>, vector<8x8x160xf32>
    %85 = vector.shape_cast %84 : vector<8x8x160xf32> to vector<64x160xf32>
    %c1_77 = arith.constant 1 : index
    %c2_78 = arith.constant 2 : index
    %c0_79 = arith.constant 0 : index
    %c0_80 = arith.constant 0 : index
    %86 = vector.load %arg2[%c1_77, %c2_78, %c0_79, %c0_80] : memref<2x3x160x128xf32, #tpu.memory_space<vmem>>, vector<1x1x160x128xf32>
    %87 = vector.shape_cast %86 : vector<1x1x160x128xf32> to vector<160x128xf32>
    %cst_81 = arith.constant dense<0.000000e+00> : vector<64x128xf32>
    %88 = tpu.matmul %85, %87, %cst_81 {dimension_numbers = #tpu.dot_dimension_numbers<[1], [0], [0], [1], [0, 0, 1, 1], [], []>} : vector<64x160xf32>, vector<160x128xf32>, vector<64x128xf32> -> vector<64x128xf32>
    %89 = arith.addf %83, %88 : vector<64x128xf32>
    %90 = vector.shape_cast %89 : vector<64x128xf32> to vector<8x8x128xf32>
    %cst_82 = arith.constant dense<0.000000e+00> : vector<8x128xf32>
    %91 = vector.multi_reduction <add>, %90, %cst_82 [1] : vector<8x8x128xf32> to vector<8x128xf32>
    %92 = arith.mulf %90, %90 : vector<8x8x128xf32>
    %cst_83 = arith.constant dense<0.000000e+00> : vector<8x128xf32>
    %93 = vector.multi_reduction <add>, %92, %cst_83 [1] : vector<8x8x128xf32> to vector<8x128xf32>
    %94 = tpu.concatenate %91, %93 in 0 : vector<8x128xf32>, vector<8x128xf32> -> vector<16x128xf32>
    %cst_84 = arith.constant dense<0.000000e+00> : vector<16x4xf32>
    %95 = tpu.matmul %94, %2, %cst_84 {dimension_numbers = #tpu.dot_dimension_numbers<[1], [0], [0], [1], [0, 0, 1, 1], [], []>} : vector<16x128xf32>, vector<128x4xf32>, vector<16x4xf32> -> vector<16x4xf32>
    %96 = vector.extract_strided_slice %95 {offsets = [0, 0], sizes = [8, 4], strides = [1, 1]} : vector<16x4xf32> to vector<8x4xf32>
    %cst_85 = arith.constant 2.560000e+02 : f32
    %97 = vector.broadcast %cst_85 : f32 to vector<8x4xf32>
    %98 = arith.divf %96, %97 : vector<8x4xf32>
    %99 = vector.extract_strided_slice %95 {offsets = [8, 0], sizes = [8, 4], strides = [1, 1]} : vector<16x4xf32> to vector<8x4xf32>
    %cst_86 = arith.constant 2.560000e+02 : f32
    %100 = vector.broadcast %cst_86 : f32 to vector<8x4xf32>
    %101 = arith.divf %99, %100 : vector<8x4xf32>
    %102 = arith.mulf %98, %98 : vector<8x4xf32>
    %103 = arith.subf %101, %102 : vector<8x4xf32>
    %cst_87 = arith.constant 0.000000e+00 : f32
    %104 = vector.broadcast %cst_87 : f32 to vector<8x4xf32>
    %105 = arith.maximumf %103, %104 : vector<8x4xf32>
    %cst_88 = arith.constant 9.99999974E-6 : f32
    %106 = vector.broadcast %cst_88 : f32 to vector<8x4xf32>
    %107 = arith.addf %105, %106 : vector<8x4xf32>
    %108 = math.rsqrt %107 : vector<8x4xf32>
    %109 = tpu.concatenate %98, %108 in 0 : vector<8x4xf32>, vector<8x4xf32> -> vector<16x4xf32>
    %cst_89 = arith.constant dense<0.000000e+00> : vector<16x128xf32>
    %110 = tpu.matmul %109, %3, %cst_89 {dimension_numbers = #tpu.dot_dimension_numbers<[1], [0], [0], [1], [0, 0, 1, 1], [], []>} : vector<16x4xf32>, vector<4x128xf32>, vector<16x128xf32> -> vector<16x128xf32>
    %111 = vector.extract_strided_slice %110 {offsets = [0, 0], sizes = [8, 128], strides = [1, 1]} : vector<16x128xf32> to vector<8x128xf32>
    %112 = vector.extract_strided_slice %110 {offsets = [8, 0], sizes = [8, 128], strides = [1, 1]} : vector<16x128xf32> to vector<8x128xf32>
    %113 = vector.shape_cast %69 : vector<128xf32> to vector<1x128xf32>
    %114 = vector.broadcast %113 : vector<1x128xf32> to vector<8x128xf32>
    %115 = arith.mulf %112, %114 : vector<8x128xf32>
    %116 = vector.shape_cast %71 : vector<128xf32> to vector<1x128xf32>
    %117 = arith.mulf %111, %115 : vector<8x128xf32>
    %118 = vector.broadcast %116 : vector<1x128xf32> to vector<8x128xf32>
    %119 = arith.subf %118, %117 : vector<8x128xf32>
    %120 = vector.shape_cast %115 : vector<8x128xf32> to vector<8x1x128xf32>
    %121 = vector.broadcast %120 : vector<8x1x128xf32> to vector<8x8x128xf32>
    %122 = arith.mulf %90, %121 : vector<8x8x128xf32>
    %123 = vector.shape_cast %119 : vector<8x128xf32> to vector<8x1x128xf32>
    %124 = vector.broadcast %123 : vector<8x1x128xf32> to vector<8x8x128xf32>
    %125 = arith.addf %122, %124 : vector<8x8x128xf32>
    %cst_90 = arith.constant 0.000000e+00 : f32
    %126 = vector.broadcast %cst_90 : f32 to vector<8x8x128xf32>
    %127 = arith.maximumf %125, %126 : vector<8x8x128xf32>
    %128 = arith.maximumf %65, %127 : vector<8x8x128xf32>
    %c0_91 = arith.constant 0 : index
    %c0_92 = arith.constant 0 : index
    %129 = vector.load %arg6[%c0_91, %c0_92] : memref<2x128xf32, #tpu.memory_space<vmem>>, vector<1x128xf32>
    %130 = vector.shape_cast %129 : vector<1x128xf32> to vector<128xf32>
    %c0_93 = arith.constant 0 : index
    %c0_94 = arith.constant 0 : index
    %131 = vector.load %arg7[%c0_93, %c0_94] : memref<2x128xf32, #tpu.memory_space<vmem>>, vector<1x128xf32>
    %132 = vector.shape_cast %131 : vector<1x128xf32> to vector<128xf32>
    %c0_95 = arith.constant 0 : index
    %c1_96 = arith.constant 1 : index
    %c16_97 = arith.constant 16 : index
    %133 = vector.load %arg13[%c0_95, %c1_96, %c16_97] : memref<8x10x160xf32, #tpu.memory_space<vmem>>, vector<8x8x128xf32>
    tpu.vector_store %arg13[%c0_95, %c1_96, %c16_97], %128 {strides = array<i32>} : memref<8x10x160xf32, #tpu.memory_space<vmem>>, vector<8x8x128xf32>,
    %c0_98 = arith.constant 0 : index
    %c0_99 = arith.constant 0 : index
    %c0_100 = arith.constant 0 : index
    %134 = vector.load %arg13[%c0_98, %c0_99, %c0_100] : memref<8x10x160xf32, #tpu.memory_space<vmem>>, vector<8x8x160xf32>
    %135 = vector.shape_cast %134 : vector<8x8x160xf32> to vector<64x160xf32>
    %c0_101 = arith.constant 0 : index
    %c0_102 = arith.constant 0 : index
    %c0_103 = arith.constant 0 : index
    %c0_104 = arith.constant 0 : index
    %136 = vector.load %arg5[%c0_101, %c0_102, %c0_103, %c0_104] : memref<2x3x160x128xf32, #tpu.memory_space<vmem>>, vector<1x1x160x128xf32>
    %137 = vector.shape_cast %136 : vector<1x1x160x128xf32> to vector<160x128xf32>
    %cst_105 = arith.constant dense<0.000000e+00> : vector<64x128xf32>
    %138 = tpu.matmul %135, %137, %cst_105 {dimension_numbers = #tpu.dot_dimension_numbers<[1], [0], [0], [1], [0, 0, 1, 1], [], []>} : vector<64x160xf32>, vector<160x128xf32>, vector<64x128xf32> -> vector<64x128xf32>
    %c0_106 = arith.constant 0 : index
    %c1_107 = arith.constant 1 : index
    %c0_108 = arith.constant 0 : index
    %139 = vector.load %arg13[%c0_106, %c1_107, %c0_108] : memref<8x10x160xf32, #tpu.memory_space<vmem>>, vector<8x8x160xf32>
    %140 = vector.shape_cast %139 : vector<8x8x160xf32> to vector<64x160xf32>
    %c0_109 = arith.constant 0 : index
    %c1_110 = arith.constant 1 : index
    %c0_111 = arith.constant 0 : index
    %c0_112 = arith.constant 0 : index
    %141 = vector.load %arg5[%c0_109, %c1_110, %c0_111, %c0_112] : memref<2x3x160x128xf32, #tpu.memory_space<vmem>>, vector<1x1x160x128xf32>
    %142 = vector.shape_cast %141 : vector<1x1x160x128xf32> to vector<160x128xf32>
    %cst_113 = arith.constant dense<0.000000e+00> : vector<64x128xf32>
    %143 = tpu.matmul %140, %142, %cst_113 {dimension_numbers = #tpu.dot_dimension_numbers<[1], [0], [0], [1], [0, 0, 1, 1], [], []>} : vector<64x160xf32>, vector<160x128xf32>, vector<64x128xf32> -> vector<64x128xf32>
    %144 = arith.addf %138, %143 : vector<64x128xf32>
    %c0_114 = arith.constant 0 : index
    %c2_115 = arith.constant 2 : index
    %c0_116 = arith.constant 0 : index
    %145 = vector.load %arg13[%c0_114, %c2_115, %c0_116] : memref<8x10x160xf32, #tpu.memory_space<vmem>>, vector<8x8x160xf32>
    %146 = vector.shape_cast %145 : vector<8x8x160xf32> to vector<64x160xf32>
    %c0_117 = arith.constant 0 : index
    %c2_118 = arith.constant 2 : index
    %c0_119 = arith.constant 0 : index
    %c0_120 = arith.constant 0 : index
    %147 = vector.load %arg5[%c0_117, %c2_118, %c0_119, %c0_120] : memref<2x3x160x128xf32, #tpu.memory_space<vmem>>, vector<1x1x160x128xf32>
    %148 = vector.shape_cast %147 : vector<1x1x160x128xf32> to vector<160x128xf32>
    %cst_121 = arith.constant dense<0.000000e+00> : vector<64x128xf32>
    %149 = tpu.matmul %146, %148, %cst_121 {dimension_numbers = #tpu.dot_dimension_numbers<[1], [0], [0], [1], [0, 0, 1, 1], [], []>} : vector<64x160xf32>, vector<160x128xf32>, vector<64x128xf32> -> vector<64x128xf32>
    %150 = arith.addf %144, %149 : vector<64x128xf32>
    %151 = vector.shape_cast %150 : vector<64x128xf32> to vector<8x8x128xf32>
    %cst_122 = arith.constant dense<0.000000e+00> : vector<8x128xf32>
    %152 = vector.multi_reduction <add>, %151, %cst_122 [1] : vector<8x8x128xf32> to vector<8x128xf32>
    %153 = arith.mulf %151, %151 : vector<8x8x128xf32>
    %cst_123 = arith.constant dense<0.000000e+00> : vector<8x128xf32>
    %154 = vector.multi_reduction <add>, %153, %cst_123 [1] : vector<8x8x128xf32> to vector<8x128xf32>
    %155 = tpu.concatenate %152, %154 in 0 : vector<8x128xf32>, vector<8x128xf32> -> vector<16x128xf32>
    %cst_124 = arith.constant dense<0.000000e+00> : vector<16x4xf32>
    %156 = tpu.matmul %155, %2, %cst_124 {dimension_numbers = #tpu.dot_dimension_numbers<[1], [0], [0], [1], [0, 0, 1, 1], [], []>} : vector<16x128xf32>, vector<128x4xf32>, vector<16x4xf32> -> vector<16x4xf32>
    %157 = vector.extract_strided_slice %156 {offsets = [0, 0], sizes = [8, 4], strides = [1, 1]} : vector<16x4xf32> to vector<8x4xf32>
    %cst_125 = arith.constant 2.560000e+02 : f32
    %158 = vector.broadcast %cst_125 : f32 to vector<8x4xf32>
    %159 = arith.divf %157, %158 : vector<8x4xf32>
    %160 = vector.extract_strided_slice %156 {offsets = [8, 0], sizes = [8, 4], strides = [1, 1]} : vector<16x4xf32> to vector<8x4xf32>
    %cst_126 = arith.constant 2.560000e+02 : f32
    %161 = vector.broadcast %cst_126 : f32 to vector<8x4xf32>
    %162 = arith.divf %160, %161 : vector<8x4xf32>
    %163 = arith.mulf %159, %159 : vector<8x4xf32>
    %164 = arith.subf %162, %163 : vector<8x4xf32>
    %cst_127 = arith.constant 0.000000e+00 : f32
    %165 = vector.broadcast %cst_127 : f32 to vector<8x4xf32>
    %166 = arith.maximumf %164, %165 : vector<8x4xf32>
    %cst_128 = arith.constant 9.99999974E-6 : f32
    %167 = vector.broadcast %cst_128 : f32 to vector<8x4xf32>
    %168 = arith.addf %166, %167 : vector<8x4xf32>
    %169 = math.rsqrt %168 : vector<8x4xf32>
    %170 = tpu.concatenate %159, %169 in 0 : vector<8x4xf32>, vector<8x4xf32> -> vector<16x4xf32>
    %cst_129 = arith.constant dense<0.000000e+00> : vector<16x128xf32>
    %171 = tpu.matmul %170, %3, %cst_129 {dimension_numbers = #tpu.dot_dimension_numbers<[1], [0], [0], [1], [0, 0, 1, 1], [], []>} : vector<16x4xf32>, vector<4x128xf32>, vector<16x128xf32> -> vector<16x128xf32>
    %172 = vector.extract_strided_slice %171 {offsets = [0, 0], sizes = [8, 128], strides = [1, 1]} : vector<16x128xf32> to vector<8x128xf32>
    %173 = vector.extract_strided_slice %171 {offsets = [8, 0], sizes = [8, 128], strides = [1, 1]} : vector<16x128xf32> to vector<8x128xf32>
    %174 = vector.shape_cast %130 : vector<128xf32> to vector<1x128xf32>
    %175 = vector.broadcast %174 : vector<1x128xf32> to vector<8x128xf32>
    %176 = arith.mulf %173, %175 : vector<8x128xf32>
    %177 = vector.shape_cast %132 : vector<128xf32> to vector<1x128xf32>
    %178 = arith.mulf %172, %176 : vector<8x128xf32>
    %179 = vector.broadcast %177 : vector<1x128xf32> to vector<8x128xf32>
    %180 = arith.subf %179, %178 : vector<8x128xf32>
    %181 = vector.shape_cast %176 : vector<8x128xf32> to vector<8x1x128xf32>
    %182 = vector.broadcast %181 : vector<8x1x128xf32> to vector<8x8x128xf32>
    %183 = arith.mulf %151, %182 : vector<8x8x128xf32>
    %184 = vector.shape_cast %180 : vector<8x128xf32> to vector<8x1x128xf32>
    %185 = vector.broadcast %184 : vector<8x1x128xf32> to vector<8x8x128xf32>
    %186 = arith.addf %183, %185 : vector<8x8x128xf32>
    %cst_130 = arith.constant 0.000000e+00 : f32
    %187 = vector.broadcast %cst_130 : f32 to vector<8x8x128xf32>
    %188 = arith.maximumf %186, %187 : vector<8x8x128xf32>
    %c1_131 = arith.constant 1 : index
    %c0_132 = arith.constant 0 : index
    %189 = vector.load %arg6[%c1_131, %c0_132] : memref<2x128xf32, #tpu.memory_space<vmem>>, vector<1x128xf32>
    %190 = vector.shape_cast %189 : vector<1x128xf32> to vector<128xf32>
    %c1_133 = arith.constant 1 : index
    %c0_134 = arith.constant 0 : index
    %191 = vector.load %arg7[%c1_133, %c0_134] : memref<2x128xf32, #tpu.memory_space<vmem>>, vector<1x128xf32>
    %192 = vector.shape_cast %191 : vector<1x128xf32> to vector<128xf32>
    %c0_135 = arith.constant 0 : index
    %c1_136 = arith.constant 1 : index
    %c16_137 = arith.constant 16 : index
    %193 = vector.load %arg13[%c0_135, %c1_136, %c16_137] : memref<8x10x160xf32, #tpu.memory_space<vmem>>, vector<8x8x128xf32>
    tpu.vector_store %arg13[%c0_135, %c1_136, %c16_137], %188 {strides = array<i32>} : memref<8x10x160xf32, #tpu.memory_space<vmem>>, vector<8x8x128xf32>,
    %c0_138 = arith.constant 0 : index
    %c0_139 = arith.constant 0 : index
    %c0_140 = arith.constant 0 : index
    %194 = vector.load %arg13[%c0_138, %c0_139, %c0_140] : memref<8x10x160xf32, #tpu.memory_space<vmem>>, vector<8x8x160xf32>
    %195 = vector.shape_cast %194 : vector<8x8x160xf32> to vector<64x160xf32>
    %c1_141 = arith.constant 1 : index
    %c0_142 = arith.constant 0 : index
    %c0_143 = arith.constant 0 : index
    %c0_144 = arith.constant 0 : index
    %196 = vector.load %arg5[%c1_141, %c0_142, %c0_143, %c0_144] : memref<2x3x160x128xf32, #tpu.memory_space<vmem>>, vector<1x1x160x128xf32>
    %197 = vector.shape_cast %196 : vector<1x1x160x128xf32> to vector<160x128xf32>
    %cst_145 = arith.constant dense<0.000000e+00> : vector<64x128xf32>
    %198 = tpu.matmul %195, %197, %cst_145 {dimension_numbers = #tpu.dot_dimension_numbers<[1], [0], [0], [1], [0, 0, 1, 1], [], []>} : vector<64x160xf32>, vector<160x128xf32>, vector<64x128xf32> -> vector<64x128xf32>
    %c0_146 = arith.constant 0 : index
    %c1_147 = arith.constant 1 : index
    %c0_148 = arith.constant 0 : index
    %199 = vector.load %arg13[%c0_146, %c1_147, %c0_148] : memref<8x10x160xf32, #tpu.memory_space<vmem>>, vector<8x8x160xf32>
    %200 = vector.shape_cast %199 : vector<8x8x160xf32> to vector<64x160xf32>
    %c1_149 = arith.constant 1 : index
    %c1_150 = arith.constant 1 : index
    %c0_151 = arith.constant 0 : index
    %c0_152 = arith.constant 0 : index
    %201 = vector.load %arg5[%c1_149, %c1_150, %c0_151, %c0_152] : memref<2x3x160x128xf32, #tpu.memory_space<vmem>>, vector<1x1x160x128xf32>
    %202 = vector.shape_cast %201 : vector<1x1x160x128xf32> to vector<160x128xf32>
    %cst_153 = arith.constant dense<0.000000e+00> : vector<64x128xf32>
    %203 = tpu.matmul %200, %202, %cst_153 {dimension_numbers = #tpu.dot_dimension_numbers<[1], [0], [0], [1], [0, 0, 1, 1], [], []>} : vector<64x160xf32>, vector<160x128xf32>, vector<64x128xf32> -> vector<64x128xf32>
    %204 = arith.addf %198, %203 : vector<64x128xf32>
    %c0_154 = arith.constant 0 : index
    %c2_155 = arith.constant 2 : index
    %c0_156 = arith.constant 0 : index
    %205 = vector.load %arg13[%c0_154, %c2_155, %c0_156] : memref<8x10x160xf32, #tpu.memory_space<vmem>>, vector<8x8x160xf32>
    %206 = vector.shape_cast %205 : vector<8x8x160xf32> to vector<64x160xf32>
    %c1_157 = arith.constant 1 : index
    %c2_158 = arith.constant 2 : index
    %c0_159 = arith.constant 0 : index
    %c0_160 = arith.constant 0 : index
    %207 = vector.load %arg5[%c1_157, %c2_158, %c0_159, %c0_160] : memref<2x3x160x128xf32, #tpu.memory_space<vmem>>, vector<1x1x160x128xf32>
    %208 = vector.shape_cast %207 : vector<1x1x160x128xf32> to vector<160x128xf32>
    %cst_161 = arith.constant dense<0.000000e+00> : vector<64x128xf32>
    %209 = tpu.matmul %206, %208, %cst_161 {dimension_numbers = #tpu.dot_dimension_numbers<[1], [0], [0], [1], [0, 0, 1, 1], [], []>} : vector<64x160xf32>, vector<160x128xf32>, vector<64x128xf32> -> vector<64x128xf32>
    %210 = arith.addf %204, %209 : vector<64x128xf32>
    %211 = vector.shape_cast %210 : vector<64x128xf32> to vector<8x8x128xf32>
    %cst_162 = arith.constant dense<0.000000e+00> : vector<8x128xf32>
    %212 = vector.multi_reduction <add>, %211, %cst_162 [1] : vector<8x8x128xf32> to vector<8x128xf32>
    %213 = arith.mulf %211, %211 : vector<8x8x128xf32>
    %cst_163 = arith.constant dense<0.000000e+00> : vector<8x128xf32>
    %214 = vector.multi_reduction <add>, %213, %cst_163 [1] : vector<8x8x128xf32> to vector<8x128xf32>
    %215 = tpu.concatenate %212, %214 in 0 : vector<8x128xf32>, vector<8x128xf32> -> vector<16x128xf32>
    %cst_164 = arith.constant dense<0.000000e+00> : vector<16x4xf32>
    %216 = tpu.matmul %215, %2, %cst_164 {dimension_numbers = #tpu.dot_dimension_numbers<[1], [0], [0], [1], [0, 0, 1, 1], [], []>} : vector<16x128xf32>, vector<128x4xf32>, vector<16x4xf32> -> vector<16x4xf32>
    %217 = vector.extract_strided_slice %216 {offsets = [0, 0], sizes = [8, 4], strides = [1, 1]} : vector<16x4xf32> to vector<8x4xf32>
    %cst_165 = arith.constant 2.560000e+02 : f32
    %218 = vector.broadcast %cst_165 : f32 to vector<8x4xf32>
    %219 = arith.divf %217, %218 : vector<8x4xf32>
    %220 = vector.extract_strided_slice %216 {offsets = [8, 0], sizes = [8, 4], strides = [1, 1]} : vector<16x4xf32> to vector<8x4xf32>
    %cst_166 = arith.constant 2.560000e+02 : f32
    %221 = vector.broadcast %cst_166 : f32 to vector<8x4xf32>
    %222 = arith.divf %220, %221 : vector<8x4xf32>
    %223 = arith.mulf %219, %219 : vector<8x4xf32>
    %224 = arith.subf %222, %223 : vector<8x4xf32>
    %cst_167 = arith.constant 0.000000e+00 : f32
    %225 = vector.broadcast %cst_167 : f32 to vector<8x4xf32>
    %226 = arith.maximumf %224, %225 : vector<8x4xf32>
    %cst_168 = arith.constant 9.99999974E-6 : f32
    %227 = vector.broadcast %cst_168 : f32 to vector<8x4xf32>
    %228 = arith.addf %226, %227 : vector<8x4xf32>
    %229 = math.rsqrt %228 : vector<8x4xf32>
    %230 = tpu.concatenate %219, %229 in 0 : vector<8x4xf32>, vector<8x4xf32> -> vector<16x4xf32>
    %cst_169 = arith.constant dense<0.000000e+00> : vector<16x128xf32>
    %231 = tpu.matmul %230, %3, %cst_169 {dimension_numbers = #tpu.dot_dimension_numbers<[1], [0], [0], [1], [0, 0, 1, 1], [], []>} : vector<16x4xf32>, vector<4x128xf32>, vector<16x128xf32> -> vector<16x128xf32>
    %232 = vector.extract_strided_slice %231 {offsets = [0, 0], sizes = [8, 128], strides = [1, 1]} : vector<16x128xf32> to vector<8x128xf32>
    %233 = vector.extract_strided_slice %231 {offsets = [8, 0], sizes = [8, 128], strides = [1, 1]} : vector<16x128xf32> to vector<8x128xf32>
    %234 = vector.shape_cast %190 : vector<128xf32> to vector<1x128xf32>
    %235 = vector.broadcast %234 : vector<1x128xf32> to vector<8x128xf32>
    %236 = arith.mulf %233, %235 : vector<8x128xf32>
    %237 = vector.shape_cast %192 : vector<128xf32> to vector<1x128xf32>
    %238 = arith.mulf %232, %236 : vector<8x128xf32>
    %239 = vector.broadcast %237 : vector<1x128xf32> to vector<8x128xf32>
    %240 = arith.subf %239, %238 : vector<8x128xf32>
    %241 = vector.shape_cast %236 : vector<8x128xf32> to vector<8x1x128xf32>
    %242 = vector.broadcast %241 : vector<8x1x128xf32> to vector<8x8x128xf32>
    %243 = arith.mulf %211, %242 : vector<8x8x128xf32>
    %244 = vector.shape_cast %240 : vector<8x128xf32> to vector<8x1x128xf32>
    %245 = vector.broadcast %244 : vector<8x1x128xf32> to vector<8x8x128xf32>
    %246 = arith.addf %243, %245 : vector<8x8x128xf32>
    %cst_170 = arith.constant 0.000000e+00 : f32
    %247 = vector.broadcast %cst_170 : f32 to vector<8x8x128xf32>
    %248 = arith.maximumf %246, %247 : vector<8x8x128xf32>
    %249 = vector.shape_cast %248 : vector<8x8x128xf32> to vector<8x1024xf32>
    %c0_171 = arith.constant 0 : index
    %c0_172 = arith.constant 0 : index
    %250 = vector.load %arg10[%c0_171, %c0_172] : memref<1024x128xf32, #tpu.memory_space<vmem>>, vector<1024x128xf32>
    %cst_173 = arith.constant dense<0.000000e+00> : vector<8x128xf32>
    %251 = tpu.matmul %249, %250, %cst_173 {dimension_numbers = #tpu.dot_dimension_numbers<[1], [0], [0], [1], [0, 0, 1, 1], [], []>} : vector<8x1024xf32>, vector<1024x128xf32>, vector<8x128xf32> -> vector<8x128xf32>
    %c0_174 = arith.constant 0 : index
    %c0_175 = arith.constant 0 : index
    %252 = vector.load %arg11[%c0_174, %c0_175] : memref<1x128xf32, #tpu.memory_space<vmem>>, vector<1x128xf32>
    %253 = vector.broadcast %252 : vector<1x128xf32> to vector<8x128xf32>
    %254 = arith.addf %251, %253 : vector<8x128xf32>
    %cst_176 = arith.constant 0.000000e+00 : f32
    %255 = vector.broadcast %cst_176 : f32 to vector<8x128xf32>
    %256 = arith.maximumf %254, %255 : vector<8x128xf32>
    %c0_177 = arith.constant 0 : index
    %c0_178 = arith.constant 0 : index
    %257 = vector.load %arg12[%c0_177, %c0_178] : memref<8x128xf32, #tpu.memory_space<vmem>>, vector<8x128xf32>
    tpu.vector_store %arg12[%c0_177, %c0_178], %256 {strides = array<i32>} : memref<8x128xf32, #tpu.memory_space<vmem>>, vector<8x128xf32>,
    return
  }
  func.func @transform_0(%arg0: i32) -> (i32, i32, i32, i32) {
    %c0_i32 = arith.constant 0 : i32
    %c0_i32_0 = arith.constant 0 : i32
    %c0_i32_1 = arith.constant 0 : i32
    %c0_i32_2 = arith.constant 0 : i32
    return %c0_i32, %arg0, %c0_i32_0, %c0_i32_1 : i32, i32, i32, i32
  }
  func.func @transform_1(%arg0: i32) -> (i32, i32, i32, i32) {
    %c0_i32 = arith.constant 0 : i32
    %c0_i32_0 = arith.constant 0 : i32
    %c0_i32_1 = arith.constant 0 : i32
    %c0_i32_2 = arith.constant 0 : i32
    %c0_i32_3 = arith.constant 0 : i32
    return %c0_i32, %c0_i32_0, %c0_i32_1, %c0_i32_2 : i32, i32, i32, i32
  }
  func.func @transform_2(%arg0: i32) -> (i32, i32) {
    %c0_i32 = arith.constant 0 : i32
    %c0_i32_0 = arith.constant 0 : i32
    %c0_i32_1 = arith.constant 0 : i32
    return %c0_i32, %c0_i32_0 : i32, i32
  }
  func.func @transform_3(%arg0: i32) -> (i32, i32) {
    %c0_i32 = arith.constant 0 : i32
    %c0_i32_0 = arith.constant 0 : i32
    %c0_i32_1 = arith.constant 0 : i32
    return %c0_i32, %c0_i32_0 : i32, i32
  }
  func.func @transform_4(%arg0: i32) -> (i32, i32, i32, i32) {
    %c0_i32 = arith.constant 0 : i32
    %c0_i32_0 = arith.constant 0 : i32
    %c0_i32_1 = arith.constant 0 : i32
    %c0_i32_2 = arith.constant 0 : i32
    %c0_i32_3 = arith.constant 0 : i32
    return %c0_i32, %c0_i32_0, %c0_i32_1, %c0_i32_2 : i32, i32, i32, i32
  }
  func.func @transform_5(%arg0: i32) -> (i32, i32) {
    %c0_i32 = arith.constant 0 : i32
    %c0_i32_0 = arith.constant 0 : i32
    %c0_i32_1 = arith.constant 0 : i32
    return %c0_i32, %c0_i32_0 : i32, i32
  }
  func.func @transform_6(%arg0: i32) -> (i32, i32) {
    %c0_i32 = arith.constant 0 : i32
    %c0_i32_0 = arith.constant 0 : i32
    %c0_i32_1 = arith.constant 0 : i32
    return %c0_i32, %c0_i32_0 : i32, i32
  }
  func.func @transform_7(%arg0: i32) -> (i32, i32) {
    %c0_i32 = arith.constant 0 : i32
    %c0_i32_0 = arith.constant 0 : i32
    %c0_i32_1 = arith.constant 0 : i32
    return %c0_i32, %c0_i32_0 : i32, i32
  }
  func.func @transform_8(%arg0: i32) -> (i32, i32) {
    %c0_i32 = arith.constant 0 : i32
    %c0_i32_0 = arith.constant 0 : i32
    %c0_i32_1 = arith.constant 0 : i32
    return %c0_i32, %c0_i32_0 : i32, i32
  }
  func.func @transform_9(%arg0: i32) -> (i32, i32) {
    %c0_i32 = arith.constant 0 : i32
    %c0_i32_0 = arith.constant 0 : i32
    %c0_i32_1 = arith.constant 0 : i32
    return %c0_i32, %c0_i32_0 : i32, i32
  }
  func.func @transform_10(%arg0: i32) -> (i32, i32) {
    %c0_i32 = arith.constant 0 : i32
    %c0_i32_0 = arith.constant 0 : i32
    %c0_i32_1 = arith.constant 0 : i32
    return %c0_i32, %c0_i32_0 : i32, i32
  }
  func.func @transform_11(%arg0: i32) -> (i32, i32) {
    %c0_i32 = arith.constant 0 : i32
    %c0_i32_0 = arith.constant 0 : i32
    return %arg0, %c0_i32 : i32, i32
  }
}

</mosaic_0001>

<bundles_post_ra>
// kernel: tpu_custom_call.1
= control target key start
LH: loop header
LB: loop body
LE: loop exit
PB: predicated region body
PF: predicated region fallthrough
CT: control target
= control target key end

     0   :  { %s9418_s0 = inlined_call_operand.hbm [shape: f32[2,16,8,128], index: 0, kind: input, shape index: {}]   ;;  %s9419_s1 = inlined_call_operand.hbm [shape: f32[2,3,160,128], index: 1, kind: input, shape index: {}]   ;;  %s9420_s2 = inlined_call_operand.vmem [shape: f32[2,128], index: 2, kind: input, shape index: {}]   ;;  %s9421_s3 = inlined_call_operand.vmem [shape: f32[2,128], index: 3, kind: input, shape index: {}]   ;;  %s9422_s4 = inlined_call_operand.hbm [shape: f32[2,3,160,128], index: 4, kind: input, shape index: {}]   ;;  %s9423_s5 = inlined_call_operand.vmem [shape: f32[2,128], index: 5, kind: input, shape index: {}]   ;;  %s9424_s6 = inlined_call_operand.vmem [shape: f32[2,128], index: 6, kind: input, shape index: {}]   ;;  %s9425_s7 = inlined_call_operand.vmem [shape: f32[128,4], index: 7, kind: input, shape index: {}]   ;;  %s9426_s8 = inlined_call_operand.vmem [shape: f32[4,128], index: 8, kind: input, shape index: {}]   ;;  %s9427_s9 = inlined_call_operand.hbm [shape: f32[1024,128], index: 9, kind: input, shape index: {}]   ;;  %s9428_s10 = inlined_call_operand.vmem [shape: f32[1,128], index: 10, kind: input, shape index: {}]   ;;  %s9429_s11 = inlined_call_operand.hbm [shape: f32[16,128], index: 11, kind: output, shape index: {}]  }
   0x1   :  { %9443 = sst [smem:[#allocation24_spill]] %s9419_s1 }
   0x2   :  { %9444 = sst [smem:[#allocation25_spill]] %s9424_s6 }
   0x3   :  { %9445 = sst [smem:[#allocation26_spill]] %s9428_s10 }
   0x4   :  { %9446 = sst [smem:[#allocation27_spill]] %s9429_s11 }
   0x5   :  { %16 = vsyncpa [#allocation4], 0 }
   0x6   :  { %18 = vsyncpa [#allocation4 + $0x1], 0 }
   0x7   :  { %19 = vsyncpa [#allocation7], 0 }
   0x8   :  { %20 = vsyncpa [#allocation10], 0 }
   0x9   :  { %21 = vsyncpa [#allocation5], 0 }
   0xa   :  { %23 = vsyncpa [#allocation5 + $0x1], 0  ;;  %s7993_s17 = smov 0   ;;  %s7995_s18 = smov 0  }
   0xb   :  { %s7997_s19 = smov 0   ;;  %s7999_s20 = smov 0  }
   0xc LB: > { %9447 = sst [smem:[#allocation19_spill]] %s7902_s17  ;;  %s8014_s21 = sadd.s32 4294967295, %s7914_s20   ;;  %s7914_s20 = sphi %s7999_s20, %s9475_s20   ;;  %s7910_s19 = sphi %s7997_s19, %s9479_s19   ;;  %s7906_s18 = sphi %s7995_s18, %s9478_s18   ;;  %s7902_s17 = sphi %s7993_s17, %s9477_s17  }
   0xd   : > { %s6378_s22 = sadd.s32 4294967294, %s7914_s20   ;;  %s8018_s23 = sadd.s32 1, %s7914_s20  }
   0xe   : > { %9448 = sst [smem:[#allocation20_spill]] %s8018_s23  ;;  %s36_s24 = sadd.s32 1, %s7910_s19 }
   0xf   : > { %s33_s25 = ssub.s32 %s7914_s20, %s8018_s23  ;;  %p43_p0 = scmp.ne.s32.totalorder %s7910_s19, %s7906_s18 }
  0x10   : > { %p34_p1 = scmp.eq.s32.totalorder %s33_s25, 0  ;;  %p44_p2 = scmp.eq.s32.totalorder %s7914_s20, 0 }
  0x11   : > { %p49_p3 = scmp.ne.s32.totalorder %s7906_s18, %s7902_s17  ;;  %p9434_p4 = scmp.eq.s32.totalorder %s8014_s21, 0 }
  0x12   : > { %s8030_s26 = scalar_select %p34_p1, %s7910_s19, %s36_s24  }
  0x13   : > { %p8032_p5 = por %p44_p2, %p43_p0  ;;  %p8038_p6 = por %p9434_p4, %p49_p3 }
  0x14   : > { %9449 = sst [smem:[#allocation21_spill]] %s8030_s26  ;;  %p283_p7 = scmp.eq.s32.totalorder %s8014_s21, 1 }
  0x15   : > { %s9450_s27 = scalar_select %p8032_p5, 1, 0 }
  0x16   : > { %s9451_s28 = scalar_select %p8038_p6, 1, 0 }
  0x17   : > { %p289_p8 = scmp.eq.s32.totalorder %s6378_s22, 1  ;;  %p6379_p9 = scmp.ge.s32.totalorder %s7914_s20, 1 }
  0x18   : > { %p296_p10 = scmp.lt.s32.totalorder %s7914_s20, 3  ;;  %p8045_p11 = por %p283_p7, %p43_p0 }
  0x19   : > { %p8049_p12 = por %p289_p8, %p49_p3  ;;  %s7916_s13 = smov [#allocation6]  }
  0x1a   : > { %s9452_s29 = scalar_select %p8045_p11, 1, 0 }
  0x1b   : > { %s9454_s30 = scalar_select %p8049_p12, 1, 0 }
  0x1c   : > { %9453 = sst [smem:[#allocation22_spill]] %s9452_s29  ;;  %p8053_p13 = pnand %p6379_p9, %p296_p10 }
  0x1d   : > { %9455 = sst [smem:[#allocation23_spill]] %s9454_s30  ;;  %s308_s14 = sshll.u32 %s7916_s13, 4  ;;  %s309_s14 = int_to_ptr.vmem [resolvable:$true] %s308_s14 }
  0x1e   : > { %s9456_s12 = scalar_select %p8053_p13, 1, 0 }
  0x1f   : > { %p7676_p1 = pneg %p8053_p13  ;;  %s7917_s16 = smov [#allocation8]  }
  0x20   : > { %s327_s22 = sshll.u32 %s7917_s16, 4  ;;  %s9458_s1 = sld [smem:[#allocation24_spill]]  ;;  %s8065_s22 = int_to_ptr.vmem [resolvable:$true] %s327_s22 }
  0x21   : > { %p8061_p2 = pnand %p7676_p1, %p9434_p4 }
  0x23   : > { %p8075_p3 = pneg %p8061_p2 }
  0x26   : > { %s7756_s26 = scalar_lea.hbm %s9458_s1, 15360 }
  0x27   : > { %p7757_p0 = scmp.ne.s32.totalorder %s9458_s1, %s7756_s26  ;;  %p7763_p9 = scmp.lt.u32.totalorder %s7756_s26, %s9458_s1 }
  0x29   : > { %p7759_p7 = pnand %p8075_p3, %p7757_p0 }
  0x2b   : > { %p7760_p8 = pneg %p7759_p7 }
  0x2d   : > { %p7765_p10 = pnand %p7763_p9, %p7760_p8 }
  0x2f   : > { %7768 = shalt.err (!%p7765_p10)
}
  0x30   : > { %s7769_s24 = scalar_lea.vmem %s309_s14, 15360  ;;  %p7777_p11 = scmp.lt.s32.totalorder %s309_s14, %s309_s14 }
  0x31   : > { %p7770_p1 = scmp.ne.s32.totalorder %s309_s14, %s7769_s24  ;;  %p7778_p6 = scmp.lt.s32.totalorder %s7769_s24, %s7769_s24 }
  0x33   : > { %p7772_p4 = pnand %p7770_p1, %p8075_p3  ;;  %p7779_p13 = por %p7778_p6, %p7777_p11 }
  0x35   : > { %p7773_p12 = pneg %p7772_p4 }
  0x37   : > { %p7780_p5 = pnand %p7779_p13, %p7773_p12 }
  0x39   : > { %7783 = shalt.err (!%p7780_p5)
}
  0x3a   : > { %s7918_s23 = smov 128   ;;  %s7919_s30 = smov 8  }
  0x3b   : > { %7679 = dma.hbm_to_vmem [thread:$0]  (!%p8061_p2), %s9458_s1, 15360, %s309_s14, [#allocation7], %s7918_s23, %s7918_s23, %s7919_s30  }
  0x3c   : > { %s7784_s11 = scalar_lea.hbm %s9422_s4, 15360 }
  0x3d   : > { %p7785_p4 = scmp.ne.s32.totalorder %s9422_s4, %s7784_s11  ;;  %p7791_p11 = scmp.lt.u32.totalorder %s7784_s11, %s9422_s4 }
  0x3f   : > { %p7787_p5 = pnand %p7785_p4, %p8075_p3 }
  0x41   : > { %p7788_p6 = pneg %p7787_p5 }
  0x43   : > { %p7793_p12 = pnand %p7791_p11, %p7788_p6 }
  0x45   : > { %7796 = shalt.err (!%p7793_p12)
}
  0x46   : > { %s7797_s14 = scalar_lea.vmem %s8065_s22, 15360  ;;  %p7805_p8 = scmp.lt.s32.totalorder %s8065_s22, %s8065_s22 }
  0x47   : > { %p7798_p13 = scmp.ne.s32.totalorder %s8065_s22, %s7797_s14  ;;  %p7806_p9 = scmp.lt.s32.totalorder %s7797_s14, %s7797_s14 }
  0x49   : > { %p7800_p0 = pnand %p7798_p13, %p8075_p3  ;;  %p7807_p10 = por %p7806_p9, %p7805_p8 }
  0x4b   : > { %p7801_p7 = pneg %p7800_p0 }
  0x4d   : > { %p7808_p1 = pnand %p7807_p10, %p7801_p7 }
  0x4f   : > { %7811 = shalt.err (!%p7808_p1)
}
  0x50   : > { %7682 = dma.hbm_to_vmem [thread:$0]  (!%p8061_p2), %s9422_s4, 15360, %s8065_s22, [#allocation7], %s7918_s23, %s7918_s23, %s7919_s30  }
  0x51   : > { %s7920_s11 = smov [#allocation9]   ;;  %s7812_s25 = scalar_lea.hbm %s9427_s9, 16384 }
  0x52   : > { %s352_s29 = sshll.u32 %s7920_s11, 4  ;;  %p7813_p4 = scmp.ne.s32.totalorder %s9427_s9, %s7812_s25  ;;  %s353_s29 = int_to_ptr.vmem [resolvable:$true] %s352_s29 }
  0x53   : > { %p7819_p11 = scmp.lt.u32.totalorder %s7812_s25, %s9427_s9 }
  0x54   : > { %p7815_p5 = pnand %p7813_p4, %p8075_p3 }
  0x56   : > { %p7816_p6 = pneg %p7815_p5 }
  0x58   : > { %p7821_p12 = pnand %p7819_p11, %p7816_p6 }
  0x5a   : > { %7824 = shalt.err (!%p7821_p12)
}
  0x5b   : > { %s7825_s22 = scalar_lea.vmem %s353_s29, 16384  ;;  %p7833_p8 = scmp.lt.s32.totalorder %s353_s29, %s353_s29 }
  0x5c   : > { %p7826_p13 = scmp.ne.s32.totalorder %s353_s29, %s7825_s22  ;;  %p7834_p9 = scmp.lt.s32.totalorder %s7825_s22, %s7825_s22 }
  0x5e   : > { %p7828_p0 = pnand %p7826_p13, %p8075_p3  ;;  %p7835_p10 = por %p7834_p9, %p7833_p8 }
  0x60   : > { %p7829_p7 = pneg %p7828_p0 }
  0x62   : > { %p7836_p1 = pnand %p7835_p10, %p7829_p7 }
  0x64   : > { %7839 = shalt.err (!%p7836_p1)
}
  0x65   : > { %7685 = dma.hbm_to_vmem [thread:$0]  (!%p8061_p2), %s9427_s9, 16384, %s353_s29, [#allocation10], %s7918_s23, %s7918_s23, %s7919_s30  }
  0x66   : > { %p6383_p4 = scmp.ge.s32.totalorder %s7914_s20, 2 }
  0x68   : > { %365 = sbr.rel (%p6383_p4) target bundleno = 125 (0x7d), region = 56 }
  0x6f   : > { %s369_s13 = sand.u32 1, %s7910_s19   ;;  %s6524_s10 = sshll.u32 %s7914_s20, 10 }
  0x70   : > { %s6384_s15 = sshll.u32 %s369_s13, 7  ;;  %p9460_p3 = scmp.ne.s32.totalorder %s9450_s27, 0 }
  0x71   : > { %s379_s30 = scalar_lea.hbm %s9418_s0, %s6524_s10  ;;  %s373_s26 = scalar_lea.vmem [#allocation3], %s6384_s15 }
  0x72   : > { %s7659_s11 = scalar_select %p9460_p3, [#allocation0], [#allocation14] }
  0x73   : > { %s392_s25 = sshll.u32 %s373_s26, 4  ;;  %s7921_s16 = smov 2048   ;;  %s393_s25 = int_to_ptr.vmem [resolvable:$true] %s392_s25 }
  0x74   : > { %s384_s29 = sld [smem:[%s7659_s11]]   ;;  %s7922_s24 = smov 1024  }
  0x75   : > { %7660 = sst [smem:[#allocation13]] (%p9460_p3), %s7921_s16  ;;  %s7923_s14 = smov 8  }
  0x76   : > { %7661 = sst [smem:[#allocation13 + $0x1]] (%p9460_p3), %s7922_s24  ;;  %s7924_s22 = smov 128  }
  0x77   : > { %7662 = sst [smem:[#allocation13 + $0x2]] (%p9460_p3), %s7923_s14  ;;  %s370_s15 = scalar_lea.sflag [#allocation4], %s369_s13 }
  0x78   : > { %7663 = sst [smem:[#allocation13 + $0x3]] (%p9460_p3), %s7924_s22  ;;  %s7925_s10 = smov [#allocation12]  }
  0x79   : > { %7664 = sst [smem:[#allocation13 + $0x4]] (%p9460_p3), %s7924_s22 }
  0x7a   : > { %s6387_s1 = sshll.u32 %s384_s29, 26  ;;  %7665 = sst [smem:[#allocation13 + $0x5]] (%p9460_p3), %s7923_s14 }
  0x7b   : > { %s6388_s6 = sadd.s32 134217728, %s6387_s1 }
  0x7c   : > { %7666 = dma.general (%p9460_p3), %s379_s30, 2048, %s393_s25, %s370_s15, %s7925_s10, [#allocation13], %s6388_s6, 0  }
  0x7d PF: > { %p9461_p2 = scmp.ne.s32.totalorder %s9456_s12, 0 }
  0x7e   : > { %s8168_s11 = sand.u32 (!%p9461_p2), 1, %s7906_s18   ;;  %p9462_p5 = scmp.ne.s32.totalorder (!%p9461_p2), %s9451_s28, 0 }
  0x7f   : > { %417 = sbr.rel (%p9461_p2) target bundleno = 3836 (0xefc), region = 64  ;;  %s6390_s17 = sshll.u32 (!%p9461_p2), %s8168_s11, 7 }
  0x80   : > { %s420_s23 = scalar_lea.sflag (!%p9461_p2), [#allocation4], %s8168_s11  ;;  %s8172_s29 = scalar_lea.vmem (!%p9461_p2), [#allocation3], %s6390_s17 }
  0x86   : > { %7885 = dma.done.wait (%p9462_p5), %s420_s23, 2048  }
  0x87   : > { %7887 = vsyncadd (%p9462_p5), %s420_s23, 4294965248  ;;  %p9463_p6 = scmp.eq.s32.totalorder %s8014_s21, 0 }
  0x89   : > { %7889 = dma.done.wait (%p9463_p6), [#allocation7], 30720   ;;  %p9464_p11 = pmov %p9463_p6 }
  0x8a   : > { %p9465_p12 = pmov %p9463_p6 }
  0x8b   : > { %7891 = vsyncadd (%p9464_p11), [#allocation7], 4294936576 }
  0x8c   : > { %7893 = dma.done.wait (%p9465_p12), [#allocation10], 16384   ;;  %p9466_p13 = pmov %p9463_p6 }
  0x8d   : > { %vm476_vm0 = vcmask 261120   ;;  %v7926_v0 = vmov 0.0|0.0   ;;  %vm479_vm1 = vcmask 254976   ;;  %v7927_v1 = vmov 0.0   ;;  %v526_v2 = vld [vmem:[%s8172_s29] sm:$0xff]  ;;  %v527_v3 = vld [vmem:[%s8172_s29 + $0x8] sm:$0xff] }
  0x8e   : > { %7895 = vsyncadd (%p9466_p13), [#allocation10], 4294950912  ;;  %6909 = vmatprep.subr.bf16.mxu0 %v7926_v0  ;;  %475 = vst [vmem:[#allocation2] sm:$0xff] %v7927_v1  ;;  %v528_v4 = vld [vmem:[%s8172_s29 + $0x10] sm:$0xff]  ;;  %v544_v5 = vrot.slane %v526_v2, 7  ;;  %v529_v7 = vld [vmem:[%s8172_s29 + $0x18] sm:$0xff] }
  0x8f   : > { %477 = vst.msk [vmem:[#allocation2 + $0x8] sm:$0xff] %vm476_vm0, %v7927_v1  ;;  %478 = vst [vmem:[#allocation2 + $0x10] sm:$0x3] %v7927_v1  ;;  %v546_v6 = vrot.slane %v528_v4, 7  ;;  %v770_v8 = vld [vmem:[#allocation6 + $0xa0] sm:$0xff]  ;;  %s7928_s27 = smov 16  }
  0x90   : > { %481 = vst [vmem:[#allocation2 + $0x20] sm:$0xff] %v7927_v1  ;;  %482 = vst.msk [vmem:[#allocation2 + $0x28] sm:$0xff] %vm476_vm0, %v7927_v1  ;;  %552 = vrot.lane.b32.xlu0 %v544_v5, %s7928_s27  ;;  %v545_v9 = vrot.slane %v527_v3, 7  ;;  %v547_v10 = vrot.slane %v529_v7, 7  ;;  %v771_v11 = vld [vmem:[#allocation6 + $0xa8] sm:$0xff]  ;;  %v772_v12 = vld [vmem:[#allocation6 + $0xb0] sm:$0xff] }
  0x91   : > { %483 = vst [vmem:[#allocation2 + $0x30] sm:$0x3] %v7927_v1  ;;  %485 = vst [vmem:[#allocation2 + $0x40] sm:$0xff] %v7927_v1  ;;  %556 = vrot.lane.b32.xlu1 %v546_v6, %s7928_s27  ;;  %v773_v13 = vld [vmem:[#allocation6 + $0xb8] sm:$0xff]  ;;  %v530_v14 = vld [vmem:[%s8172_s29 + $0x20] sm:$0xff]  ;;  %v6910_v16 = vpack.c.bf16 %v771_v11, %v770_v8  ;;  %vm576_vm2 = vcmask 1047681  }
  0x92   : > { %486 = vst.msk [vmem:[#allocation2 + $0x48] sm:$0xff] %vm476_vm0, %v7927_v1  ;;  %487 = vst [vmem:[#allocation2 + $0x50] sm:$0x3] %v7927_v1  ;;  %v531_v15 = vld [vmem:[%s8172_s29 + $0x28] sm:$0xff]  ;;  %v6913_v17 = vpack.c.bf16 %v773_v13, %v772_v12  ;;  %v548_v18 = vrot.slane %v530_v14, 7  ;;  %v774_v20 = vld [vmem:[#allocation6 + $0xc0] sm:$0xff] }
  0x93   : > { %489 = vst [vmem:[#allocation2 + $0x60] sm:$0xff] %v7927_v1  ;;  %490 = vst.msk [vmem:[#allocation2 + $0x68] sm:$0xff] %vm476_vm0, %v7927_v1  ;;  %6911 = vmatpush1.bf16.msra.mxu0 %v6910_v16  ;;  %v549_v19 = vrot.slane %v531_v15, 7  ;;  %v775_v21 = vld [vmem:[#allocation6 + $0xc8] sm:$0xff]  ;;  %v532_v22 = vld [vmem:[%s8172_s29 + $0x30] sm:$0xff]  ;;  %vm578_vm3 = vcmask 130049  }
  0x94   : > { %491 = vst [vmem:[#allocation2 + $0x70] sm:$0x3] %v7927_v1  ;;  %493 = vst [vmem:[#allocation2 + $0x80] sm:$0xff] %v7927_v1  ;;  %554 = vrot.lane.b32.xlu0 %v545_v9, %s7928_s27  ;;  %v533_v23 = vld [vmem:[%s8172_s29 + $0x38] sm:$0xff]  ;;  %6912 = vmatprep.subr.bf16.mxu0 %v7926_v0  ;;  %v6916_v24 = vpack.c.bf16 %v775_v21, %v774_v20  ;;  %v550_v25 = vrot.slane %v532_v22, 7  ;;  %v776_v27 = vld [vmem:[#allocation6 + $0xd0] sm:$0xff] }
  0x95   : > { %494 = vst.msk [vmem:[#allocation2 + $0x88] sm:$0xff] %vm476_vm0, %v7927_v1  ;;  %495 = vst [vmem:[#allocation2 + $0x90] sm:$0x3] %v7927_v1  ;;  %558 = vrot.lane.b32.xlu1 %v547_v10, %s7928_s27  ;;  %v551_v26 = vrot.slane %v533_v23, 7  ;;  %v777_v28 = vld [vmem:[#allocation6 + $0xd8] sm:$0xff]  ;;  %v778_v30 = vld [vmem:[#allocation6 + $0xe0] sm:$0xff] }
  0x96   : > { %497 = vst [vmem:[#allocation2 + $0xa0] sm:$0xff] %v7927_v1  ;;  %498 = vst.msk [vmem:[#allocation2 + $0xa8] sm:$0xff] %vm476_vm0, %v7927_v1  ;;  %v6919_v29 = vpack.c.bf16 %v777_v28, %v776_v27  ;;  %v779_v31 = vld [vmem:[#allocation6 + $0xe8] sm:$0xff]  ;;  %v780_v33 = vld [vmem:[#allocation6 + $0xf0] sm:$0xff]  ;;  %vm580_vm4 = vcmask 1040512   ;;  %vm582_vm5 = vcmask 122880  }
  0x97   : > { %499 = vst [vmem:[#allocation2 + $0xb0] sm:$0x3] %v7927_v1  ;;  %501 = vst [vmem:[#allocation2 + $0xc0] sm:$0xff] %v7927_v1  ;;  %6914 = vmatpush1.bf16.msra.mxu0 %v6913_v17  ;;  %v6922_v32 = vpack.c.bf16 %v779_v31, %v778_v30  ;;  %v781_v34 = vld [vmem:[#allocation6 + $0xf8] sm:$0xff]  ;;  %v782_v36 = vld [vmem:[#allocation6 + $0x100] sm:$0xff]  ;;  %vm712_vm6 = vcmask 1046528  }
  0x98   : > { %502 = vst.msk [vmem:[#allocation2 + $0xc8] sm:$0xff] %vm476_vm0, %v7927_v1  ;;  %503 = vst [vmem:[#allocation2 + $0xd0] sm:$0x3] %v7927_v1  ;;  %560 = vrot.lane.b32.xlu0 %v548_v18, %s7928_s27  ;;  %6915 = vmatprep.subr.bf16.mxu0 %v7926_v0  ;;  %v6925_v35 = vpack.c.bf16 %v781_v34, %v780_v33  ;;  %v783_v37 = vld [vmem:[#allocation6 + $0x108] sm:$0xff]  ;;  %v784_v39 = vld [vmem:[#allocation6 + $0x110] sm:$0xff]  ;;  %vm1104_vm7 = vcmask 1045504  }
  0x99   : > { %505 = vst [vmem:[#allocation2 + $0xe0] sm:$0xff] %v7927_v1  ;;  %506 = vst.msk [vmem:[#allocation2 + $0xe8] sm:$0xff] %vm476_vm0, %v7927_v1  ;;  %562 = vrot.lane.b32.xlu1 %v549_v19, %s7928_s27  ;;  %v6928_v38 = vpack.c.bf16 %v783_v37, %v782_v36  ;;  %v785_v40 = vld [vmem:[#allocation6 + $0x118] sm:$0xff]  ;;  %v786_v42 = vld [vmem:[#allocation6 + $0x120] sm:$0xff]  ;;  %vm1423_vm8 = vcmask 1041409   ;;  %vm1425_vm9 = vcmask 1042434  }
  0x9a   : > { %507 = vst [vmem:[#allocation2 + $0xf0] sm:$0x3] %v7927_v1  ;;  %480 = vst.msk [vmem:[#allocation2 + $0x18] sm:$0x3] %vm479_vm1, %v7927_v1  ;;  %v6931_v41 = vpack.c.bf16 %v785_v40, %v784_v39  ;;  %v787_v43 = vld [vmem:[#allocation6 + $0x128] sm:$0xff]  ;;  %v788_v45 = vld [vmem:[#allocation6 + $0x130] sm:$0xff] }
  0x9b   : > { %484 = vst.msk [vmem:[#allocation2 + $0x38] sm:$0x3] %vm479_vm1, %v7927_v1  ;;  %488 = vst.msk [vmem:[#allocation2 + $0x58] sm:$0x3] %vm479_vm1, %v7927_v1  ;;  %6917 = vmatpush1.bf16.msra.mxu0 %v6916_v24  ;;  %v6934_v44 = vpack.c.bf16 %v787_v43, %v786_v42  ;;  %v789_v46 = vld [vmem:[#allocation6 + $0x138] sm:$0xff]  ;;  %v628_v52 = vld [vmem:[#allocation6] sm:$0xff] }
  0x9c   : > { %492 = vst.msk [vmem:[#allocation2 + $0x78] sm:$0x3] %vm479_vm1, %v7927_v1  ;;  %496 = vst.msk [vmem:[#allocation2 + $0x98] sm:$0x3] %vm479_vm1, %v7927_v1  ;;  %564 = vrot.lane.b32.xlu0 %v550_v25, %s7928_s27  ;;  %6918 = vmatprep.subr.bf16.mxu0 %v7926_v0  ;;  %v6937_v47 = vpack.c.bf16 %v789_v46, %v788_v45  ;;  %v629_v53 = vld [vmem:[#allocation6 + $0x8] sm:$0xff]  ;;  %v630_v63 = vld [vmem:[#allocation6 + $0x10] sm:$0xff] }
  0x9d   : > { %500 = vst.msk [vmem:[#allocation2 + $0xb8] sm:$0x3] %vm479_vm1, %v7927_v1  ;;  %504 = vst.msk [vmem:[#allocation2 + $0xd8] sm:$0x3] %vm479_vm1, %v7927_v1  ;;  %566 = vrot.lane.b32.xlu1 %v551_v26, %s7928_s27  ;;  %v6940_v2 = vpack.c.bf16 %v629_v53, %v628_v52  ;;  %v631_v3 = vld [vmem:[#allocation6 + $0x18] sm:$0xff]  ;;  %v632_v25 = vld [vmem:[#allocation6 + $0x20] sm:$0xff] }
  0x9e   : > { %508 = vst.msk [vmem:[#allocation2 + $0xf8] sm:$0x3] %vm479_vm1, %v7927_v1  ;;  %v6943_v22 = vpack.c.bf16 %v631_v3, %v630_v63  ;;  %v634_v42 = vld [vmem:[#allocation6 + $0x30] sm:$0xff]  ;;  %v635_v43 = vld [vmem:[#allocation6 + $0x38] sm:$0xff]  ;;  %vm1427_vm10 = vcmask 1043459   ;;  %vm1429_vm11 = vcmask 1044484  }
  0x9f   : > { %6920 = vmatpush1.bf16.msra.mxu0 %v6919_v29  ;;  %v633_v29 = vld [vmem:[#allocation6 + $0x28] sm:$0xff]  ;;  %v6949_v52 = vpack.c.bf16 %v635_v43, %v634_v42  ;;  %vm1431_vm12 = vcmask 1045509   ;;  %vm1433_vm13 = vcmask 1046534   ;;  %vm1435_vm14 = vcmask 1047559   ;;  %s9467_s28 = sld [smem:[#allocation25_spill]]  ;;  %s9468_s14 = sld [smem:[#allocation26_spill]] }
  0xa0   : > { %6921 = vmatprep.subr.bf16.mxu0 %v7926_v0  ;;  %v6946_v39 = vpack.c.bf16 %v633_v29, %v632_v25  ;;  %v1163_v42 = vld [vmem:[#allocation6 + $0x148] sm:$0xff]  ;;  %vm1544_vm15 = vcmask 1043456   ;;  %vm1537_vm1 = vcmask 31744   ;;  %s6394_s22 = sshll.u32 %s8168_s11, 3  ;;  %s9469_s1 = sld [smem:[#allocation22_spill]] }
  0xa1   : > { %s6521_s6 = sshll.u32 %s8014_s21, 7  ;;  %s473_s15 = scalar_lea.vmem [#allocation11], %s6394_s22 }
  0xa2   : > { %s6279_s10 = sshll.u32 %s473_s15, 4  ;;  %s6266_s12 = scalar_lea.sflag [#allocation5], %s8168_s11  ;;  %s9376_s10 = int_to_ptr.vmem [resolvable:$true] %s6279_s10 }
  0xa3   : > { %6923 = vmatpush1.bf16.msra.mxu0 %v6922_v32  ;;  %s7840_s13 = scalar_lea.vmem %s9376_s10, 128  ;;  %s7932_s21 = smov [#allocation11]  }
  0xa4   : > { %6924 = vmatprep.subr.bf16.mxu0 %v7926_v0  ;;  %p7841_p0 = scmp.ne.s32.totalorder %s9376_s10, %s7840_s13  ;;  %s7844_s30 = sshll.u32 %s7932_s21, 4  ;;  %s7845_s30 = int_to_ptr.vmem [resolvable:$false] %s7844_s30 }
  0xa5   : > { %s7846_s26 = scalar_lea.vmem %s7845_s30, 256  ;;  %p7847_p10 = scmp.lt.s32.totalorder %s9376_s10, %s7845_s30 }
  0xa6   : > { %p9471_p7 = scmp.ne.s32.totalorder %s9469_s1, 0  ;;  %p7848_p1 = scmp.lt.s32.totalorder %s7846_s26, %s7840_s13 }
  0xa7   : > { %6926 = vmatpush1.bf16.msra.mxu0 %v6925_v35 }
  0xa8   : > { %6927 = vmatprep.subr.bf16.mxu0 %v7926_v0  ;;  %p7842_p8 = pnand %p7841_p0, %p9471_p7  ;;  %p7849_p3 = por %p7848_p1, %p7847_p10 }
  0xaa   : > { %p7843_p9 = pneg %p7842_p8 }
  0xab   : > { %6929 = vmatpush1.bf16.msra.mxu0 %v6928_v38 }
  0xac   : > { %6930 = vmatprep.subr.bf16.mxu0 %v7926_v0  ;;  %p7850_p2 = pnand %p7849_p3, %p7843_p9 }
  0xaf   : > { %6932 = vmatpush1.bf16.msra.mxu0 %v6931_v41 }
  0xb0   : > { %6933 = vmatprep.subr.bf16.mxu0 %v7926_v0 }
  0xb3   : > { %6935 = vmatpush1.bf16.msra.mxu0 %v6934_v44 }
  0xb4   : > { %6936 = vmatprep.subr.bf16.mxu0 %v7926_v0 }
  0xb7   : > { %6938 = vmatpush1.bf16.msra.mxu0 %v6937_v47 }
  0xb8   : > { %6939 = vmatprep.subr.bf16.mxu0 %v7926_v0 }
 0x102   : > { %v553_v48 = vpop.permute.xlu0 %552 }
 0x103   : > { %v557_v49 = vpop.permute.xlu1 %556  ;;  %577 = vst.msk [vmem:[#allocation2] sm:$0xfe] %vm576_vm2, %v553_v48 }
 0x104   : > { %579 = vst.msk [vmem:[#allocation2 + $0x8] sm:$0xfe] %vm578_vm3, %v553_v48  ;;  %589 = vst.msk [vmem:[#allocation2 + $0x48] sm:$0xfe] %vm578_vm3, %v557_v49 }
 0x105   : > { %581 = vst.msk [vmem:[#allocation2 + $0x10] sm:$0x1] %vm580_vm4, %v553_v48  ;;  %590 = vst.msk [vmem:[#allocation2 + $0x50] sm:$0x1] %vm580_vm4, %v557_v49 }
 0x106   : > { %583 = vst.msk [vmem:[#allocation2 + $0x18] sm:$0x1] %vm582_vm5, %v553_v48  ;;  %591 = vst.msk [vmem:[#allocation2 + $0x58] sm:$0x1] %vm582_vm5, %v557_v49  ;;  %v555_v50 = vpop.permute.xlu0 %554 }
 0x107   : > { %588 = vst.msk [vmem:[#allocation2 + $0x40] sm:$0xfe] %vm576_vm2, %v557_v49  ;;  %v559_v51 = vpop.permute.xlu1 %558  ;;  %584 = vst.msk [vmem:[#allocation2 + $0x20] sm:$0xfe] %vm576_vm2, %v555_v50 }
 0x108   : > { %585 = vst.msk [vmem:[#allocation2 + $0x28] sm:$0xfe] %vm578_vm3, %v555_v50  ;;  %593 = vst.msk [vmem:[#allocation2 + $0x68] sm:$0xfe] %vm578_vm3, %v559_v51 }
 0x109   : > { %586 = vst.msk [vmem:[#allocation2 + $0x30] sm:$0x1] %vm580_vm4, %v555_v50  ;;  %594 = vst.msk [vmem:[#allocation2 + $0x70] sm:$0x1] %vm580_vm4, %v559_v51 }
 0x10a   : > { %587 = vst.msk [vmem:[#allocation2 + $0x38] sm:$0x1] %vm582_vm5, %v555_v50  ;;  %595 = vst.msk [vmem:[#allocation2 + $0x78] sm:$0x1] %vm582_vm5, %v559_v51  ;;  %v648_v56 = vld [vmem:[#allocation2] sm:$0xfe]  ;;  %v561_v57 = vpop.permute.xlu0 %560 }
 0x10b   : > { %592 = vst.msk [vmem:[#allocation2 + $0x60] sm:$0xfe] %vm576_vm2, %v559_v51  ;;  %v649_v54 = vld [vmem:[#allocation2 + $0x8] sm:$0xfe]  ;;  %v563_v58 = vpop.permute.xlu1 %562  ;;  %v713_v62 = vrot.slane %v648_v56, 1 }
 0x10c   : > { %v716_v59 = vrot.slane %v649_v54, 1  ;;  %v650_v61 = vld [vmem:[#allocation2 + $0x10] sm:$0x1]  ;;  %596 = vst.msk [vmem:[#allocation2 + $0x80] sm:$0xfe] %vm576_vm2, %v561_v57  ;;  %v637_v56 = vld [vmem:[#allocation6 + $0x48] sm:$0xff] }
 0x10d   : > { %v651_v55 = vld [vmem:[#allocation2 + $0x18] sm:$0x1]  ;;  %597 = vst.msk [vmem:[#allocation2 + $0x88] sm:$0xfe] %vm578_vm3, %v561_v57  ;;  %601 = vst.msk [vmem:[#allocation2 + $0xa8] sm:$0xfe] %vm578_vm3, %v563_v58 }
 0x10e   : > { %v717_v60 = vrot.slane %v651_v55, 1  ;;  %598 = vst.msk [vmem:[#allocation2 + $0x90] sm:$0x1] %vm580_vm4, %v561_v57  ;;  %602 = vst.msk [vmem:[#allocation2 + $0xb0] sm:$0x1] %vm580_vm4, %v563_v58  ;;  %v714_v1 = vrot.slane %v650_v61, 1  ;;  %v565_v15 = vpop.permute.xlu0 %564 }
 0x10f   : > { %599 = vst.msk [vmem:[#allocation2 + $0x98] sm:$0x1] %vm582_vm5, %v561_v57  ;;  %603 = vst.msk [vmem:[#allocation2 + $0xb8] sm:$0x1] %vm582_vm5, %v563_v58  ;;  %v657_v4 = vld [vmem:[#allocation2 + $0x48] sm:$0xfe]  ;;  %v567_v16 = vpop.permute.xlu1 %566 }
 0x110   : > { %600 = vst.msk [vmem:[#allocation2 + $0xa0] sm:$0xfe] %vm576_vm2, %v563_v58  ;;  %v659_v5 = vld [vmem:[#allocation2 + $0x58] sm:$0x1]  ;;  %v718_v6 = vsel %vm712_vm6, %v716_v59, %v717_v60  ;;  %v728_v7 = vrot.slane %v657_v4, 1  ;;  %v715_v11 = vsel %vm712_vm6, %v713_v62, %v714_v1  ;;  %v636_v55 = vld [vmem:[#allocation6 + $0x40] sm:$0xff] }
 0x111   : > { %v729_v8 = vrot.slane %v659_v5, 1  ;;  %v656_v9 = vld [vmem:[#allocation2 + $0x40] sm:$0xfe]  ;;  %v658_v10 = vld [vmem:[#allocation2 + $0x50] sm:$0x1]  ;;  %6395 = vmatprep.mubr.msk.f32.mxu0 %vm476_vm0, %v718_v6  ;;  %v639_v6 = vld [vmem:[#allocation6 + $0x58] sm:$0xff] }
 0x112   : > { %v653_v12 = vld [vmem:[#allocation2 + $0x28] sm:$0xfe]  ;;  %v655_v13 = vld [vmem:[#allocation2 + $0x38] sm:$0x1]  ;;  %v652_v14 = vld [vmem:[#allocation2 + $0x20] sm:$0xfe]  ;;  %871 = vmatmul.mubr.f32.vlgmr.msra.gmra.mrb[0].mxu0 %v715_v11 }
 0x113   : > { %v722_v17 = vrot.slane %v653_v12, 1  ;;  %v723_v18 = vrot.slane %v655_v13, 1  ;;  %v654_v19 = vld [vmem:[#allocation2 + $0x30] sm:$0x1]  ;;  %v719_v20 = vrot.slane %v652_v14, 1  ;;  %6941 = vmatpush1.bf16.msra.mxu0 %v6940_v2  ;;  %v725_v23 = vrot.slane %v656_v9, 1 }
 0x114   : > { %604 = vst.msk [vmem:[#allocation2 + $0xc0] sm:$0xfe] %vm576_vm2, %v565_v15  ;;  %608 = vst.msk [vmem:[#allocation2 + $0xe0] sm:$0xfe] %vm576_vm2, %v567_v16  ;;  %v720_v21 = vrot.slane %v654_v19, 1  ;;  %v726_v24 = vrot.slane %v658_v10, 1  ;;  %6942 = vmatprep.subr.bf16.mxu0 %v7926_v0  ;;  %v730_v28 = vsel %vm712_vm6, %v728_v7, %v729_v8  ;;  %v6952_v2 = vpack.c.bf16 %v637_v56, %v636_v55 }
 0x115   : > { %605 = vst.msk [vmem:[#allocation2 + $0xc8] sm:$0xfe] %vm578_vm3, %v565_v15  ;;  %609 = vst.msk [vmem:[#allocation2 + $0xe8] sm:$0xfe] %vm578_vm3, %v567_v16  ;;  %v661_v26 = vld [vmem:[#allocation2 + $0x68] sm:$0xfe]  ;;  %v724_v27 = vsel %vm712_vm6, %v722_v17, %v723_v18 }
 0x116   : > { %606 = vst.msk [vmem:[#allocation2 + $0xd0] sm:$0x1] %vm580_vm4, %v565_v15  ;;  %610 = vst.msk [vmem:[#allocation2 + $0xf0] sm:$0x1] %vm580_vm4, %v567_v16  ;;  %v663_v30 = vld [vmem:[#allocation2 + $0x78] sm:$0x1]  ;;  %6396 = vmatprep.mubr.msk.f32.mxu0 %vm476_vm0, %v724_v27  ;;  %v721_v33 = vsel %vm712_vm6, %v719_v20, %v720_v21  ;;  %v727_v38 = vsel %vm712_vm6, %v725_v23, %v726_v24 }
 0x117   : > { %607 = vst.msk [vmem:[#allocation2 + $0xd8] sm:$0x1] %vm582_vm5, %v565_v15  ;;  %611 = vst.msk [vmem:[#allocation2 + $0xf8] sm:$0x1] %vm582_vm5, %v567_v16  ;;  %v734_v31 = vrot.slane %v661_v26, 1  ;;  %v735_v34 = vrot.slane %v663_v30, 1  ;;  %876 = vmatmul.mubr.f32.gmra.mrb[2].mxu0 %v721_v33 }
 0x118   : > { %v660_v32 = vld [vmem:[#allocation2 + $0x60] sm:$0xfe]  ;;  %v662_v35 = vld [vmem:[#allocation2 + $0x70] sm:$0x1]  ;;  %v665_v36 = vld [vmem:[#allocation2 + $0x88] sm:$0xfe]  ;;  %6944 = vmatpush1.bf16.msra.mxu0 %v6943_v22  ;;  %6397 = vmatprep.mubr.msk.f32.mxu0 %vm476_vm0, %v730_v28 }
 0x119   : > { %v667_v37 = vld [vmem:[#allocation2 + $0x98] sm:$0x1]  ;;  %v731_v40 = vrot.slane %v660_v32, 1  ;;  %v732_v41 = vrot.slane %v662_v35, 1  ;;  %6945 = vmatprep.subr.bf16.mxu0 %v7926_v0  ;;  %v736_v44 = vsel %vm712_vm6, %v734_v31, %v735_v34  ;;  %v740_v45 = vrot.slane %v665_v36, 1  ;;  %v638_v5 = vld [vmem:[#allocation6 + $0x50] sm:$0xff] }
 0x11a   : > { %v741_v46 = vrot.slane %v667_v37, 1  ;;  %v664_v47 = vld [vmem:[#allocation2 + $0x80] sm:$0xfe]  ;;  %v666_v48 = vld [vmem:[#allocation2 + $0x90] sm:$0x1]  ;;  %v6955_v15 = vpack.c.bf16 %v639_v6, %v638_v5  ;;  %v641_v19 = vld [vmem:[#allocation6 + $0x68] sm:$0xff] }
 0x11b   : > { %v669_v49 = vld [vmem:[#allocation2 + $0xa8] sm:$0xfe]  ;;  %v671_v50 = vld [vmem:[#allocation2 + $0xb8] sm:$0x1]  ;;  %881 = vmatmul.mubr.f32.gmra.mrb[4].mxu0 %v727_v38  ;;  %v733_v51 = vsel %vm712_vm6, %v731_v40, %v732_v41  ;;  %v737_v53 = vrot.slane %v664_v47, 1  ;;  %v738_v54 = vrot.slane %v666_v48, 1 }
 0x11c   : > { %6947 = vmatpush1.bf16.msra.mxu0 %v6946_v39  ;;  %6398 = vmatprep.mubr.msk.f32.mxu0 %vm476_vm0, %v736_v44  ;;  %v742_v57 = vsel %vm712_vm6, %v740_v45, %v741_v46  ;;  %v746_v58 = vrot.slane %v669_v49, 1  ;;  %v747_v59 = vrot.slane %v671_v50, 1  ;;  %v668_v60 = vld [vmem:[#allocation2 + $0xa0] sm:$0xfe]  ;;  %v670_v61 = vld [vmem:[#allocation2 + $0xb0] sm:$0x1] }
 0x11d   : > { %6948 = vmatprep.subr.bf16.mxu0 %v7926_v0  ;;  %v673_v62 = vld [vmem:[#allocation2 + $0xc8] sm:$0xfe]  ;;  %v739_v1 = vsel %vm712_vm6, %v737_v53, %v738_v54  ;;  %v743_v3 = vrot.slane %v668_v60, 1  ;;  %v744_v4 = vrot.slane %v670_v61, 1  ;;  %v672_v10 = vld [vmem:[#allocation2 + $0xc0] sm:$0xfe] }
 0x11e   : > { %v675_v63 = vld [vmem:[#allocation2 + $0xd8] sm:$0x1]  ;;  %v748_v7 = vsel %vm712_vm6, %v746_v58, %v747_v59  ;;  %v752_v8 = vrot.slane %v673_v62, 1  ;;  %v674_v11 = vld [vmem:[#allocation2 + $0xd0] sm:$0x1]  ;;  %v749_v16 = vrot.slane %v672_v10, 1 }
 0x11f   : > { %886 = vmatmul.mubr.f32.gmra.mrb[6].mxu0 %v733_v51  ;;  %v753_v9 = vrot.slane %v675_v63, 1  ;;  %v677_v12 = vld [vmem:[#allocation2 + $0xe8] sm:$0xfe]  ;;  %v679_v13 = vld [vmem:[#allocation2 + $0xf8] sm:$0x1]  ;;  %v745_v14 = vsel %vm712_vm6, %v743_v3, %v744_v4  ;;  %v750_v17 = vrot.slane %v674_v11, 1 }
 0x120   : > { %6950 = vmatpush1.bf16.msra.mxu0 %v6949_v52  ;;  %6399 = vmatprep.mubr.msk.f32.mxu0 %vm476_vm0, %v742_v57  ;;  %v640_v18 = vld [vmem:[#allocation6 + $0x60] sm:$0xff]  ;;  %v758_v21 = vrot.slane %v677_v12, 1  ;;  %v759_v22 = vrot.slane %v679_v13, 1  ;;  %v678_v24 = vld [vmem:[#allocation2 + $0xf0] sm:$0x1]  ;;  %v643_v31 = vld [vmem:[#allocation6 + $0x78] sm:$0xff] }
 0x121   : > { %6951 = vmatprep.subr.bf16.mxu0 %v7926_v0  ;;  %v754_v20 = vsel %vm712_vm6, %v752_v8, %v753_v9  ;;  %v676_v23 = vld [vmem:[#allocation2 + $0xe0] sm:$0xfe]  ;;  %v751_v25 = vsel %vm712_vm6, %v749_v16, %v750_v17  ;;  %v6958_v26 = vpack.c.bf16 %v641_v19, %v640_v18  ;;  %v756_v28 = vrot.slane %v678_v24, 1  ;;  %v642_v30 = vld [vmem:[#allocation6 + $0x70] sm:$0xff]  ;;  %v645_v35 = vld [vmem:[#allocation6 + $0x88] sm:$0xff] }
 0x122   : > { %v755_v27 = vrot.slane %v676_v23, 1  ;;  %v760_v29 = vsel %vm712_vm6, %v758_v21, %v759_v22  ;;  %v6961_v33 = vpack.c.bf16 %v643_v31, %v642_v30  ;;  %v644_v34 = vld [vmem:[#allocation6 + $0x80] sm:$0xff]  ;;  %v613_v36 = vld [vmem:[#allocation2 + $0x8] sm:$0xff]  ;;  %v646_v38 = vld [vmem:[#allocation6 + $0x90] sm:$0xff] }
 0x123   : > { %891 = vmatmul.mubr.f32.gmra.mrb[8].mxu0 %v739_v1  ;;  %v6964_v37 = vpack.c.bf16 %v645_v35, %v644_v34  ;;  %v647_v39 = vld [vmem:[#allocation6 + $0x98] sm:$0xff]  ;;  %v1162_v41 = vld [vmem:[#allocation6 + $0x140] sm:$0xff]  ;;  %v1164_v44 = vld [vmem:[#allocation6 + $0x150] sm:$0xff] }
 0x124   : > { %6953 = vmatpush1.bf16.msra.mxu0 %v6952_v2  ;;  %6400 = vmatprep.mubr.msk.f32.mxu0 %vm476_vm0, %v748_v7  ;;  %v757_v32 = vsel %vm712_vm6, %v755_v27, %v756_v28  ;;  %v6967_v40 = vpack.c.bf16 %v647_v39, %v646_v38  ;;  %v6970_v43 = vpack.c.bf16 %v1163_v42, %v1162_v41  ;;  %v1165_v45 = vld [vmem:[#allocation6 + $0x158] sm:$0xff]  ;;  %v612_v46 = vld [vmem:[#allocation2] sm:$0xff]  ;;  %v615_v47 = vld [vmem:[#allocation2 + $0x28] sm:$0xff] }
 0x125   : > { %6954 = vmatprep.subr.bf16.mxu0 %v7926_v0  ;;  %v6973_v48 = vpack.c.bf16 %v1165_v45, %v1164_v44  ;;  %v1166_v49 = vld [vmem:[#allocation6 + $0x160] sm:$0xff]  ;;  %v1167_v50 = vld [vmem:[#allocation6 + $0x168] sm:$0xff]  ;;  %v1168_v54 = vld [vmem:[#allocation6 + $0x170] sm:$0xff] }
 0x126   : > { %v614_v51 = vld [vmem:[#allocation2 + $0x20] sm:$0xff]  ;;  %v617_v52 = vld [vmem:[#allocation2 + $0x48] sm:$0xff]  ;;  %v6976_v53 = vpack.c.bf16 %v1167_v50, %v1166_v49  ;;  %v1169_v55 = vld [vmem:[#allocation6 + $0x178] sm:$0xff] }
 0x127   : > { %896 = vmatmul.mubr.f32.gmra.mrb[10].mxu0 %v745_v14  ;;  %v616_v56 = vld [vmem:[#allocation2 + $0x40] sm:$0xff]  ;;  %v619_v57 = vld [vmem:[#allocation2 + $0x68] sm:$0xff]  ;;  %v6979_v58 = vpack.c.bf16 %v1169_v55, %v1168_v54  ;;  %v1172_v1 = vld [vmem:[#allocation6 + $0x190] sm:$0xff] }
 0x128   : > { %6956 = vmatpush1.bf16.msra.mxu0 %v6955_v15  ;;  %6401 = vmatprep.mubr.msk.f32.mxu0 %vm476_vm0, %v754_v20  ;;  %v1170_v59 = vld [vmem:[#allocation6 + $0x180] sm:$0xff]  ;;  %v1171_v60 = vld [vmem:[#allocation6 + $0x188] sm:$0xff]  ;;  %v1173_v2 = vld [vmem:[#allocation6 + $0x198] sm:$0xff] }
 0x129   : > { %6957 = vmatprep.subr.bf16.mxu0 %v7926_v0  ;;  %v618_v61 = vld [vmem:[#allocation2 + $0x60] sm:$0xff]  ;;  %v621_v62 = vld [vmem:[#allocation2 + $0x88] sm:$0xff]  ;;  %v6982_v63 = vpack.c.bf16 %v1171_v60, %v1170_v59  ;;  %v6985_v5 = vpack.c.bf16 %v1173_v2, %v1172_v1  ;;  %v1043_v12 = vld [vmem:[#allocation2 + $0x18] sm:$0x3] }
 0x12a   : > { %v620_v3 = vld [vmem:[#allocation2 + $0x80] sm:$0xff]  ;;  %v623_v4 = vld [vmem:[#allocation2 + $0xa8] sm:$0xff]  ;;  %v1176_v13 = vld [vmem:[#allocation6 + $0x1b0] sm:$0xff]  ;;  %v1109_v18 = vrot.slane %v1043_v12, 2 }
 0x12b   : > { %901 = vmatmul.mubr.f32.gmra.mrb[12].mxu0 %v751_v25  ;;  %v1174_v6 = vld [vmem:[#allocation6 + $0x1a0] sm:$0xff]  ;;  %v1175_v7 = vld [vmem:[#allocation6 + $0x1a8] sm:$0xff]  ;;  %v1177_v14 = vld [vmem:[#allocation6 + $0x1b8] sm:$0xff] }
 0x12c   : > { %6959 = vmatpush1.bf16.msra.mxu0 %v6958_v26  ;;  %6402 = vmatprep.mubr.msk.f32.mxu0 %vm476_vm0, %v760_v29  ;;  %v622_v8 = vld [vmem:[#allocation2 + $0xa0] sm:$0xff]  ;;  %v625_v9 = vld [vmem:[#allocation2 + $0xc8] sm:$0xff]  ;;  %v6988_v10 = vpack.c.bf16 %v1175_v7, %v1174_v6  ;;  %v6991_v19 = vpack.c.bf16 %v1177_v14, %v1176_v13  ;;  %v1180_v25 = vld [vmem:[#allocation6 + $0x1d0] sm:$0xff] }
 0x12d   : > { %6960 = vmatprep.subr.bf16.mxu0 %v7926_v0  ;;  %v1041_v11 = vld [vmem:[#allocation2 + $0x8] sm:$0xfc]  ;;  %v624_v15 = vld [vmem:[#allocation2 + $0xc0] sm:$0xff]  ;;  %v1181_v26 = vld [vmem:[#allocation6 + $0x1d8] sm:$0xff] }
 0x12e   : > { %v627_v16 = vld [vmem:[#allocation2 + $0xe8] sm:$0xff]  ;;  %v1108_v17 = vrot.slane %v1041_v11, 2  ;;  %v1178_v20 = vld [vmem:[#allocation6 + $0x1c0] sm:$0xff]  ;;  %v1042_v28 = vld [vmem:[#allocation2 + $0x10] sm:$0x3]  ;;  %v6997_v29 = vpack.c.bf16 %v1181_v26, %v1180_v25 }
 0x12f   : > { %906 = vmatmul.mubr.f32.gmra.mrb[14].mxu0 %v757_v32  ;;  %v1179_v21 = vld [vmem:[#allocation6 + $0x1c8] sm:$0xff]  ;;  %v626_v22 = vld [vmem:[#allocation2 + $0xe0] sm:$0xff]  ;;  %v1047_v31 = vld [vmem:[#allocation2 + $0x38] sm:$0x3] }
 0x130   : > { %6962 = vmatpush1.bf16.msra.mxu0 %v6961_v33  ;;  %6403 = vmatprep.mubr.msk.f32.mxu0 %vm476_vm0, %v613_v36  ;;  %v1110_v23 = vsel %vm1104_vm7, %v1108_v17, %v1109_v18  ;;  %v6994_v24 = vpack.c.bf16 %v1179_v21, %v1178_v20  ;;  %v1040_v27 = vld [vmem:[#allocation2] sm:$0xfc]  ;;  %v1045_v30 = vld [vmem:[#allocation2 + $0x28] sm:$0xfc]  ;;  %v1106_v33 = vrot.slane %v1042_v28, 2  ;;  %v1115_v35 = vrot.slane %v1047_v31, 2 }
 0x131   : > { %6963 = vmatprep.subr.bf16.mxu0 %v7926_v0  ;;  %v1105_v32 = vrot.slane %v1040_v27, 2  ;;  %v1114_v34 = vrot.slane %v1045_v30, 2  ;;  %v1044_v36 = vld [vmem:[#allocation2 + $0x20] sm:$0xfc]  ;;  %v1049_v38 = vld [vmem:[#allocation2 + $0x48] sm:$0xfc] }
 0x132   : > { %v1051_v39 = vld [vmem:[#allocation2 + $0x58] sm:$0x3]  ;;  %v1111_v41 = vrot.slane %v1044_v36, 2  ;;  %v1120_v44 = vrot.slane %v1049_v38, 2  ;;  %v1060_v13 = vld [vmem:[#allocation2 + $0xa0] sm:$0xfc] }
 0x133   : > { %v1121_v45 = vrot.slane %v1051_v39, 2  ;;  %v1055_v49 = vld [vmem:[#allocation2 + $0x78] sm:$0x3]  ;;  %v1062_v14 = vld [vmem:[#allocation2 + $0xb0] sm:$0x3]  ;;  %v1135_v18 = vrot.slane %v1060_v13, 2 }
 0x134   : > { %6965 = vmatpush1.bf16.msra.mxu0 %v6964_v37  ;;  %v1046_v37 = vld [vmem:[#allocation2 + $0x30] sm:$0x3]  ;;  %v1127_v55 = vrot.slane %v1055_v49, 2  ;;  %v1059_v59 = vld [vmem:[#allocation2 + $0x98] sm:$0x3] }
 0x135   : > { %6966 = vmatprep.subr.bf16.mxu0 %v7926_v0  ;;  %v1112_v42 = vrot.slane %v1046_v37, 2  ;;  %v1133_v2 = vrot.slane %v1059_v59, 2  ;;  %v1063_v6 = vld [vmem:[#allocation2 + $0xb8] sm:$0x3]  ;;  %v1069_v25 = vld [vmem:[#allocation2 + $0xe8] sm:$0xfc] }
 0x136   : > { %v1139_v12 = vrot.slane %v1063_v6, 2  ;;  %v1071_v26 = vld [vmem:[#allocation2 + $0xf8] sm:$0x3]  ;;  %v1150_v31 = vrot.slane %v1069_v25, 2  ;;  %v515_v49 = vld [vmem:[%s9425_s7 + $0x30] sm:$0xff]  ;;  %v522_v59 = vld [vmem:[%s9425_s7 + $0x68] sm:$0xff] }
 0x137   : > { %v1113_v50 = vsel %vm1104_vm7, %v1111_v41, %v1112_v42  ;;  %v510_v41 = vld [vmem:[%s9425_s7 + $0x8] sm:$0xff]  ;;  %v6430_v13 = vld [vmem:[%s8172_s29 + $0x70] sm:$0xff] }
 0x138   : > { %6968 = vmatpush1.bf16.msra.mxu0 %v6967_v40  ;;  %v1107_v40 = vsel %vm1104_vm7, %v1105_v32, %v1106_v33  ;;  %v1151_v32 = vrot.slane %v1071_v26, 2  ;;  %v1068_v33 = vld [vmem:[#allocation2 + $0xe0] sm:$0xfc] }
 0x139   : > { %6969 = vmatprep.subr.bf16.mxu0 %v7926_v0  ;;  %v1147_v36 = vrot.slane %v1068_v33, 2 }
 0x13a   : > { %v1152_v38 = vsel %vm1104_vm7, %v1150_v31, %v1151_v32 }
 0x13b   : > { %1000 = vmatmul.mubr.f32.vlgmr.msra.gmra.mrb[0].mxu0 %v612_v46  ;;  %v1048_v46 = vld [vmem:[#allocation2 + $0x40] sm:$0xfc] }
 0x13c   : > { %6404 = vmatprep.mubr.msk.f32.mxu0 %vm476_vm0, %v615_v47  ;;  %6971 = vmatpush1.bf16.msra.mxu0 %v6970_v43  ;;  %v1116_v43 = vsel %vm1104_vm7, %v1114_v34, %v1115_v35  ;;  %v1050_v47 = vld [vmem:[#allocation2 + $0x50] sm:$0x3] }
 0x13d   : > { %6972 = vmatprep.subr.bf16.mxu0 %v7926_v0  ;;  %v1070_v34 = vld [vmem:[#allocation2 + $0xf0] sm:$0x3] }
 0x13e   : > { %v1148_v37 = vrot.slane %v1070_v34, 2 }
 0x13f   : > { %1005 = vmatmul.mubr.f32.gmra.mrb[2].mxu0 %v614_v51  ;;  %v1117_v51 = vrot.slane %v1048_v46, 2  ;;  %v513_v46 = vld [vmem:[%s9425_s7 + $0x20] sm:$0xff] }
 0x140   : > { %6405 = vmatprep.mubr.msk.f32.mxu0 %vm476_vm0, %v617_v52  ;;  %6974 = vmatpush1.bf16.msra.mxu0 %v6973_v48  ;;  %v1053_v48 = vld [vmem:[#allocation2 + $0x68] sm:$0xfc]  ;;  %v1118_v52 = vrot.slane %v1050_v47, 2  ;;  %v1149_v39 = vsel %vm1104_vm7, %v1147_v36, %v1148_v37 }
 0x141   : > { %6975 = vmatprep.subr.bf16.mxu0 %v7926_v0  ;;  %v1126_v54 = vrot.slane %v1053_v48, 2  ;;  %v514_v47 = vld [vmem:[%s9425_s7 + $0x28] sm:$0xff] }
 0x142   : > { %v1119_v60 = vsel %vm1104_vm7, %v1117_v51, %v1118_v52  ;;  %v8364_v48 = vpack.c.bf16 %v514_v47, %v513_v46  ;;  %v517_v52 = vld [vmem:[%s9425_s7 + $0x40] sm:$0xff] }
 0x143   : > { %1010 = vmatmul.mubr.f32.gmra.mrb[4].mxu0 %v616_v56  ;;  %v1052_v56 = vld [vmem:[#allocation2 + $0x60] sm:$0xfc] }
 0x144   : > { %6406 = vmatprep.mubr.msk.f32.mxu0 %vm476_vm0, %v619_v57  ;;  %6977 = vmatpush1.bf16.msra.mxu0 %v6976_v53  ;;  %v1122_v53 = vsel %vm1104_vm7, %v1120_v44, %v1121_v45  ;;  %v1054_v57 = vld [vmem:[#allocation2 + $0x70] sm:$0x3]  ;;  %v512_v44 = vld [vmem:[%s9425_s7 + $0x18] sm:$0xff] }
 0x145   : > { %6978 = vmatprep.subr.bf16.mxu0 %v7926_v0 }
 0x147   : > { %1015 = vmatmul.mubr.f32.gmra.mrb[6].mxu0 %v618_v61  ;;  %v1123_v61 = vrot.slane %v1052_v56, 2  ;;  %v520_v56 = vld [vmem:[%s9425_s7 + $0x58] sm:$0xff] }
 0x148   : > { %6407 = vmatprep.mubr.msk.f32.mxu0 %vm476_vm0, %v621_v62  ;;  %6980 = vmatpush1.bf16.msra.mxu0 %v6979_v58  ;;  %v1057_v58 = vld [vmem:[#allocation2 + $0x88] sm:$0xfc]  ;;  %v1124_v62 = vrot.slane %v1054_v57, 2 }
 0x149   : > { %6981 = vmatprep.subr.bf16.mxu0 %v7926_v0  ;;  %v1132_v1 = vrot.slane %v1057_v58, 2  ;;  %v521_v58 = vld [vmem:[%s9425_s7 + $0x60] sm:$0xff] }
 0x14a   : > { %v1125_v7 = vsel %vm1104_vm7, %v1123_v61, %v1124_v62  ;;  %v6425_v61 = vld [vmem:[%s8172_s29 + $0x48] sm:$0xff]  ;;  %v6426_v62 = vld [vmem:[%s8172_s29 + $0x50] sm:$0xff] }
 0x14b   : > { %1020 = vmatmul.mubr.f32.gmra.mrb[8].mxu0 %v620_v3  ;;  %v1056_v3 = vld [vmem:[#allocation2 + $0x80] sm:$0xfc]  ;;  %v1859_v6 = vrot.slane %v6426_v62, 7 }
 0x14c   : > { %6408 = vmatprep.mubr.msk.f32.mxu0 %vm476_vm0, %v623_v4  ;;  %6983 = vmatpush1.bf16.msra.mxu0 %v6982_v63  ;;  %v1128_v63 = vsel %vm1104_vm7, %v1126_v54, %v1127_v55  ;;  %v1058_v4 = vld [vmem:[#allocation2 + $0x90] sm:$0x3] }
 0x14d   : > { %6984 = vmatprep.subr.bf16.mxu0 %v7926_v0  ;;  %v519_v55 = vld [vmem:[%s9425_s7 + $0x50] sm:$0xff] }
 0x14e   : > { %v8399_v57 = vpack.c.bf16 %v520_v56, %v519_v55 }
 0x14f   : > { %1025 = vmatmul.mubr.f32.gmra.mrb[10].mxu0 %v622_v8  ;;  %v1129_v8 = vrot.slane %v1056_v3, 2  ;;  %v8415_v3 = vpack.c.bf16 %v522_v59, %v521_v58 }
 0x150   : > { %6409 = vmatprep.mubr.msk.f32.mxu0 %vm476_vm0, %v625_v9  ;;  %6986 = vmatpush1.bf16.msra.mxu0 %v6985_v5  ;;  %v1061_v5 = vld [vmem:[#allocation2 + $0xa8] sm:$0xfc]  ;;  %v1130_v9 = vrot.slane %v1058_v4, 2  ;;  %v523_v4 = vld [vmem:[%s9425_s7 + $0x70] sm:$0xff] }
 0x151   : > { %6987 = vmatprep.subr.bf16.mxu0 %v7926_v0  ;;  %v1138_v11 = vrot.slane %v1061_v5, 2  ;;  %v524_v5 = vld [vmem:[%s9425_s7 + $0x78] sm:$0xff] }
 0x152   : > { %v1131_v17 = vsel %vm1104_vm7, %v1129_v8, %v1130_v9  ;;  %v6428_v8 = vld [vmem:[%s8172_s29 + $0x60] sm:$0xff]  ;;  %v6429_v9 = vld [vmem:[%s8172_s29 + $0x68] sm:$0xff] }
 0x153   : > { %1030 = vmatmul.mubr.f32.gmra.mrb[12].mxu0 %v624_v15  ;;  %v1065_v15 = vld [vmem:[#allocation2 + $0xc8] sm:$0xfc]  ;;  %v1140_v20 = vsel %vm1104_vm7, %v1138_v11, %v1139_v12  ;;  %v1861_v11 = vrot.slane %v6428_v8, 7  ;;  %v1862_v12 = vrot.slane %v6429_v9, 7 }
 0x154   : > { %6410 = vmatprep.mubr.msk.f32.mxu0 %vm476_vm0, %v627_v16  ;;  %6989 = vmatpush1.bf16.msra.mxu0 %v6988_v10  ;;  %v1134_v10 = vsel %vm1104_vm7, %v1132_v1, %v1133_v2  ;;  %v1067_v16 = vld [vmem:[#allocation2 + $0xd8] sm:$0x3]  ;;  %v1144_v21 = vrot.slane %v1065_v15, 2  ;;  %v1858_v1 = vrot.slane %v6425_v61, 7  ;;  %v1863_v15 = vrot.slane %v6430_v13, 7 }
 0x155   : > { %6990 = vmatprep.subr.bf16.mxu0 %v7926_v0  ;;  %v6427_v2 = vld [vmem:[%s8172_s29 + $0x58] sm:$0xff] }
 0x156   : > { %1867 = vrot.lane.b32.xlu1 %v1858_v1, %s7928_s27 }
 0x157   : > { %1035 = vmatmul.mubr.f32.gmra.mrb[14].mxu0 %v626_v22  ;;  %v1145_v22 = vrot.slane %v1067_v16, 2 }
 0x158   : > { %6992 = vmatpush1.bf16.msra.mxu0 %v6991_v19  ;;  %6411 = vmatprep.mubr.msk.f32.mxu0 %vm476_vm0, %v1110_v23  ;;  %v1136_v19 = vrot.slane %v1062_v14, 2  ;;  %v1064_v23 = vld [vmem:[#allocation2 + $0xc0] sm:$0xfc]  ;;  %v6431_v14 = vld [vmem:[%s8172_s29 + $0x78] sm:$0xff] }
 0x159   : > { %6993 = vmatprep.subr.bf16.mxu0 %v7926_v0  ;;  %v1141_v28 = vrot.slane %v1064_v23, 2  ;;  %v1146_v30 = vsel %vm1104_vm7, %v1144_v21, %v1145_v22  ;;  %v1864_v16 = vrot.slane %v6431_v14, 7 }
 0x15a   : > { %v1137_v27 = vsel %vm1104_vm7, %v1135_v18, %v1136_v19 }
 0x15c   : > { %6995 = vmatpush1.bf16.msra.mxu0 %v6994_v24  ;;  %v1066_v24 = vld [vmem:[#allocation2 + $0xd0] sm:$0x3] }
 0x15d   : > { %6996 = vmatprep.subr.bf16.mxu0 %v7926_v0 }
 0x160   : > { %6998 = vmatpush1.bf16.msra.mxu0 %v6997_v29  ;;  %v1142_v29 = vrot.slane %v1066_v24, 2 }
 0x162   : > { %v1143_v35 = vsel %vm1104_vm7, %v1141_v28, %v1142_v29 }
 0x163   : > { %1263 = vmatmul.mubr.f32.vlgmr.msra.gmra.mrb[0].mxu0 %v1107_v40  ;;  %v509_v40 = vld [vmem:[%s9425_s7] sm:$0xff] }
 0x164   : > { %6412 = vmatprep.mubr.msk.f32.mxu0 %vm476_vm0, %v1116_v43  ;;  %v8342_v42 = vpack.c.bf16 %v510_v41, %v509_v40  ;;  %v511_v43 = vld [vmem:[%s9425_s7 + $0x10] sm:$0xff] }
 0x165   : > { %v8353_v45 = vpack.c.bf16 %v512_v44, %v511_v43 }
 0x166   : > { %7000 = vmatprep.subr.bf16.mxu1 %v8342_v42  ;;  %7122 = vmatprep.subr.bf16.mxu0 %v8342_v42 }
 0x167   : > { %1268 = vmatmul.mubr.f32.gmra.mrb[2].mxu0 %v1113_v50  ;;  %7002 = vmatpush3.bf16.msra.mxu1 %v8342_v42  ;;  %v516_v50 = vld [vmem:[%s9425_s7 + $0x38] sm:$0xff] }
 0x168   : > { %6413 = vmatprep.mubr.msk.f32.mxu0 %vm476_vm0, %v1122_v53  ;;  %7124 = vmatpush3.bf16.msra.mxu0 %v8342_v42  ;;  %v8375_v51 = vpack.c.bf16 %v516_v50, %v515_v49  ;;  %v518_v53 = vld [vmem:[%s9425_s7 + $0x48] sm:$0xff] }
 0x169   : > { %7004 = vmatprep.subr.bf16.mxu1 %v8353_v45  ;;  %7126 = vmatprep.subr.bf16.mxu0 %v8353_v45  ;;  %v8387_v54 = vpack.c.bf16 %v518_v53, %v517_v52 }
 0x16b   : > { %1273 = vmatmul.mubr.f32.gmra.mrb[4].mxu0 %v1119_v60  ;;  %7006 = vmatpush3.bf16.msra.mxu1 %v8353_v45  ;;  %v6424_v60 = vld [vmem:[%s8172_s29 + $0x40] sm:$0xff]  ;;  %s9470_s29 = sld [smem:[#allocation27_spill]] }
 0x16c   : > { %6414 = vmatprep.mubr.msk.f32.mxu0 %vm476_vm0, %v1128_v63  ;;  %7128 = vmatpush3.bf16.msra.mxu0 %v8353_v45  ;;  %v1857_v63 = vrot.slane %v6424_v60, 7 }
 0x16d   : > { %7008 = vmatprep.subr.bf16.mxu1 %v8364_v48  ;;  %7130 = vmatprep.subr.bf16.mxu0 %v8364_v48 }
 0x16e   : > { %1865 = vrot.lane.b32.xlu0 %v1857_v63, %s7928_s27 }
 0x16f   : > { %1278 = vmatmul.mubr.f32.gmra.mrb[6].mxu0 %v1125_v7  ;;  %7010 = vmatpush3.bf16.msra.mxu1 %v8364_v48  ;;  %v1860_v7 = vrot.slane %v6427_v2, 7 }
 0x170   : > { %6415 = vmatprep.mubr.msk.f32.mxu0 %vm476_vm0, %v1134_v10  ;;  %7132 = vmatpush3.bf16.msra.mxu0 %v8364_v48  ;;  %v8431_v10 = vpack.c.bf16 %v524_v5, %v523_v4 }
 0x171   : > { %7012 = vmatprep.subr.bf16.mxu1 %v8375_v51  ;;  %7134 = vmatprep.subr.bf16.mxu0 %v8375_v51 }
 0x172   : > { %1869 = vrot.lane.b32.xlu0 %v1859_v6, %s7928_s27  ;;  %1871 = vrot.lane.b32.xlu1 %v1860_v7, %s7928_s27 }
 0x173   : > { %1283 = vmatmul.mubr.f32.gmra.mrb[8].mxu0 %v1131_v17  ;;  %7014 = vmatpush3.bf16.msra.mxu1 %v8375_v51 }
 0x174   : > { %6416 = vmatprep.mubr.msk.f32.mxu0 %vm476_vm0, %v1140_v20  ;;  %7136 = vmatpush3.bf16.msra.mxu0 %v8375_v51 }
 0x175   : > { %7016 = vmatprep.subr.bf16.mxu1 %v8387_v54  ;;  %7138 = vmatprep.subr.bf16.mxu0 %v8387_v54 }
 0x176   : > { %1873 = vrot.lane.b32.xlu0 %v1861_v11, %s7928_s27  ;;  %1875 = vrot.lane.b32.xlu1 %v1862_v12, %s7928_s27 }
 0x177   : > { %1288 = vmatmul.mubr.f32.gmra.mrb[10].mxu0 %v1137_v27  ;;  %7018 = vmatpush3.bf16.msra.mxu1 %v8387_v54 }
 0x178   : > { %6417 = vmatprep.mubr.msk.f32.mxu0 %vm476_vm0, %v1146_v30  ;;  %7140 = vmatpush3.bf16.msra.mxu0 %v8387_v54 }
 0x179   : > { %7020 = vmatprep.subr.bf16.mxu1 %v8399_v57  ;;  %7142 = vmatprep.subr.bf16.mxu0 %v8399_v57 }
 0x17a   : > { %1877 = vrot.lane.b32.xlu0 %v1863_v15, %s7928_s27  ;;  %1879 = vrot.lane.b32.xlu1 %v1864_v16, %s7928_s27 }
 0x17b   : > { %1293 = vmatmul.mubr.f32.gmra.mrb[12].mxu0 %v1143_v35  ;;  %7022 = vmatpush3.bf16.msra.mxu1 %v8399_v57 }
 0x17c   : > { %6418 = vmatprep.mubr.msk.f32.mxu0 %vm476_vm0, %v1152_v38  ;;  %7144 = vmatpush3.bf16.msra.mxu0 %v8399_v57 }
 0x17d   : > { %7024 = vmatprep.subr.bf16.mxu1 %v8415_v3  ;;  %7146 = vmatprep.subr.bf16.mxu0 %v8415_v3 }
 0x17f   : > { %1298 = vmatmul.mubr.f32.gmra.mrb[14].mxu0 %v1149_v39  ;;  %7026 = vmatpush3.bf16.msra.mxu1 %v8415_v3 }
 0x180   : > { %7148 = vmatpush3.bf16.msra.mxu0 %v8415_v3  ;;  %7028 = vmatprep.subr.bf16.mxu1 %v8431_v10 }
 0x181   : > { %7150 = vmatprep.subr.bf16.mxu0 %v8431_v10 }
 0x183   : > { %7030 = vmatpush3.bf16.msra.mxu1 %v8431_v10 }
 0x184   : > { %7152 = vmatpush3.bf16.msra.mxu0 %v8431_v10 }
 0x236   : > { %v8448_v17 = vpop.f32.mrb[0].mxu0 }
 0x237   : > { %v1311_v18 = vrot.slane %v8448_v17, 4  ;;  %v1359_v19 = vmul.f32 %v8448_v17, %v8448_v17  ;;  %v1266_v20 = vpop.f32.mrb[1].mxu0 }
 0x239   : > { %v1312_v21 = vadd.f32 %v1311_v18, %v8448_v17  ;;  %v1367_v22 = vrot.slane %v1359_v19, 4 }
 0x23a   : > { %v8454_v23 = vpop.f32.mrb[2].mxu0 }
 0x23b   : > { %v1313_v24 = vrot.slane %v1312_v21, 2  ;;  %v1368_v25 = vadd.f32 %v1367_v22, %v1359_v19  ;;  %v1317_v26 = vrot.slane %v8454_v23, 4  ;;  %v1360_v27 = vmul.f32 %v8454_v23, %v8454_v23  ;;  %v1271_v28 = vpop.f32.mrb[3].mxu0 }
 0x23d   : > { %v1314_v29 = vadd.f32 %v1313_v24, %v1312_v21  ;;  %v1369_v30 = vrot.slane %v1368_v25, 2  ;;  %v1318_v31 = vadd.f32 %v1317_v26, %v8454_v23  ;;  %v1373_v32 = vrot.slane %v1360_v27, 4 }
 0x23e   : > { %v8460_v33 = vpop.f32.mrb[4].mxu0 }
 0x23f   : > { %v1370_v34 = vadd.f32 %v1369_v30, %v1368_v25  ;;  %v1319_v35 = vrot.slane %v1318_v31, 2  ;;  %v1374_v36 = vadd.f32 %v1373_v32, %v1360_v27  ;;  %v1276_v37 = vpop.f32.mrb[5].mxu0  ;;  %v1323_v38 = vrot.slane %v8460_v33, 4 }
 0x240   : > { %v1361_v39 = vmul.f32 %v8460_v33, %v8460_v33  ;;  %v1315_v40 = vrot.slane %v1314_v29, 1 }
 0x241   : > { %v1320_v41 = vadd.f32 %v1319_v35, %v1318_v31  ;;  %v1375_v43 = vrot.slane %v1374_v36, 2  ;;  %v1371_v44 = vrot.slane %v1370_v34, 1  ;;  %v1324_v46 = vadd.f32 %v1323_v38, %v8460_v33 }
 0x242   : > { %v1379_v47 = vrot.slane %v1361_v39, 4  ;;  %v8466_v49 = vpop.f32.mrb[6].mxu0  ;;  %v1316_v60 = vadd.f32 %v1315_v40, %v1314_v29 }
 0x243   : > { %v1321_v50 = vrot.slane %v1320_v41, 1  ;;  %v1376_v52 = vadd.f32 %v1375_v43, %v1374_v36  ;;  %v1329_v53 = vrot.slane %v8466_v49, 4  ;;  %v1281_v55 = vpop.f32.mrb[7].mxu0  ;;  %v1325_v56 = vrot.slane %v1324_v46, 2 }
 0x244   : > { %v1380_v58 = vadd.f32 %v1379_v47, %v1361_v39  ;;  %v1362_v59 = vmul.f32 %v8466_v49, %v8466_v49  ;;  %v1372_v1 = vadd.f32 %v1371_v44, %v1370_v34 }
 0x245   : > { %v1322_v61 = vadd.f32 %v1321_v50, %v1320_v41  ;;  %v1377_v62 = vrot.slane %v1376_v52, 1  ;;  %v1330_v63 = vadd.f32 %v1329_v53, %v8466_v49  ;;  %v1326_v2 = vadd.f32 %v1325_v56, %v1324_v46 }
 0x246   : > { %v1381_v4 = vrot.slane %v1380_v58, 2  ;;  %v1385_v5 = vrot.slane %v1362_v59, 4  ;;  %v8472_v6 = vpop.f32.mrb[8].mxu0 }
 0x247   : > { %v1378_v7 = vadd.f32 %v1377_v62, %v1376_v52  ;;  %v1331_v8 = vrot.slane %v1330_v63, 2  ;;  %v1335_v9 = vrot.slane %v8472_v6, 4  ;;  %v1363_v11 = vmul.f32 %v8472_v6, %v8472_v6  ;;  %v1286_v12 = vpop.f32.mrb[9].mxu0 }
 0x248   : > { %v1327_v13 = vrot.slane %v1326_v2, 1  ;;  %v1382_v14 = vadd.f32 %v1381_v4, %v1380_v58  ;;  %v1386_v15 = vadd.f32 %v1385_v5, %v1362_v59  ;;  %v1424_v16 = vsel %vm1423_vm8, %v1322_v61, %v1316_v60 }
 0x249   : > { %v1332_v18 = vadd.f32 %v1331_v8, %v1330_v63  ;;  %v1336_v19 = vadd.f32 %v1335_v9, %v8472_v6  ;;  %v1391_v20 = vrot.slane %v1363_v11, 4  ;;  %v1446_v21 = vsel %vm1423_vm8, %v1378_v7, %v1372_v1 }
 0x24a   : > { %v1328_v22 = vadd.f32 %v1327_v13, %v1326_v2  ;;  %v1383_v24 = vrot.slane %v1382_v14, 1  ;;  %v1387_v25 = vrot.slane %v1386_v15, 2  ;;  %v8480_v26 = vpop.f32.mrb[10].mxu0 }
 0x24b   : > { %v1333_v27 = vrot.slane %v1332_v18, 1  ;;  %v1337_v28 = vrot.slane %v1336_v19, 2  ;;  %v1392_v29 = vadd.f32 %v1391_v20, %v1363_v11  ;;  %v1341_v30 = vrot.slane %v8480_v26, 4  ;;  %v1291_v31 = vpop.f32.mrb[11].mxu0 }
 0x24c   : > { %v1384_v32 = vadd.f32 %v1383_v24, %v1382_v14  ;;  %v1388_v34 = vadd.f32 %v1387_v25, %v1386_v15  ;;  %v1364_v35 = vmul.f32 %v8480_v26, %v8480_v26  ;;  %v1426_v36 = vsel %vm1425_vm9, %v1328_v22, %v1424_v16 }
 0x24d   : > { %v1334_v37 = vadd.f32 %v1333_v27, %v1332_v18  ;;  %v1338_v38 = vadd.f32 %v1337_v28, %v1336_v19  ;;  %v1393_v39 = vrot.slane %v1392_v29, 2  ;;  %v1342_v40 = vadd.f32 %v1341_v30, %v8480_v26 }
 0x24e   : > { %v1389_v41 = vrot.slane %v1388_v34, 1  ;;  %v1397_v43 = vrot.slane %v1364_v35, 4  ;;  %v8487_v44 = vpop.f32.mrb[12].mxu0  ;;  %v1447_v46 = vsel %vm1425_vm9, %v1384_v32, %v1446_v21 }
 0x24f   : > { %v1339_v47 = vrot.slane %v1338_v38, 1  ;;  %v1394_v50 = vadd.f32 %v1393_v39, %v1392_v29  ;;  %v1343_v52 = vrot.slane %v1342_v40, 2  ;;  %v1347_v53 = vrot.slane %v8487_v44, 4  ;;  %v1296_v55 = vpop.f32.mrb[13].mxu0 }
 0x250   : > { %v1390_v56 = vadd.f32 %v1389_v41, %v1388_v34  ;;  %v1398_v58 = vadd.f32 %v1397_v43, %v1364_v35  ;;  %v1365_v59 = vmul.f32 %v8487_v44, %v8487_v44  ;;  %v1428_v60 = vsel %vm1427_vm10, %v1334_v37, %v1426_v36 }
 0x251   : > { %v1340_v61 = vadd.f32 %v1339_v47, %v1338_v38  ;;  %v1395_v62 = vrot.slane %v1394_v50, 1  ;;  %v1344_v63 = vadd.f32 %v1343_v52, %v1342_v40  ;;  %v1348_v1 = vadd.f32 %v1347_v53, %v8487_v44 }
 0x252   : > { %v1399_v2 = vrot.slane %v1398_v58, 2  ;;  %v1403_v4 = vrot.slane %v1365_v59, 4  ;;  %v8495_v5 = vpop.f32.mrb[14].mxu0  ;;  %v1448_v7 = vsel %vm1427_vm10, %v1390_v56, %v1447_v46 }
 0x253   : > { %v1396_v8 = vadd.f32 %v1395_v62, %v1394_v50  ;;  %v1345_v9 = vrot.slane %v1344_v63, 1  ;;  %v1349_v11 = vrot.slane %v1348_v1, 2  ;;  %v1353_v12 = vrot.slane %v8495_v5, 4  ;;  %v1301_v13 = vpop.f32.mrb[15].mxu0 }
 0x254   : > { %v1400_v14 = vadd.f32 %v1399_v2, %v1398_v58  ;;  %v1404_v15 = vadd.f32 %v1403_v4, %v1365_v59  ;;  %v1366_v16 = vmul.f32 %v8495_v5, %v8495_v5  ;;  %v1430_v18 = vsel %vm1429_vm11, %v1340_v61, %v1428_v60  ;;  %v8513_v58 = vld [vmem:[%s9426_s8] sm:$0xf]  ;;  %v1866_v59 = vpop.permute.xlu0 %1865  ;;  %v1868_v60 = vpop.permute.xlu1 %1867 }
 0x255   : > { %v1350_v19 = vadd.f32 %v1349_v11, %v1348_v1  ;;  %v1354_v20 = vadd.f32 %v1353_v12, %v8495_v5  ;;  %v1346_v21 = vadd.f32 %v1345_v9, %v1344_v63  ;;  %v1449_v22 = vsel %vm1429_vm11, %v1396_v8, %v1448_v7  ;;  %6784 = vmatprep.subr.msk.mxu1 %vm1544_vm15, %v8513_v58 }
 0x256   : > { %v1401_v24 = vrot.slane %v1400_v14, 1  ;;  %v1405_v25 = vrot.slane %v1404_v15, 2  ;;  %v1409_v27 = vrot.slane %v1366_v16, 4  ;;  %6824 = vmatprep.subr.msk.mxu0 %vm1544_vm15, %v8513_v58  ;;  %1889 = vst.msk [vmem:[#allocation2] sm:$0xfe] %vm576_vm2, %v1866_v59 }
 0x257   : > { %v1355_v28 = vrot.slane %v1354_v20, 2  ;;  %v1351_v29 = vrot.slane %v1350_v19, 1  ;;  %v1432_v30 = vsel %vm1431_vm12, %v1346_v21, %v1430_v18  ;;  %1890 = vst.msk [vmem:[#allocation2 + $0x8] sm:$0xfe] %vm578_vm3, %v1866_v59  ;;  %1894 = vst.msk [vmem:[#allocation2 + $0x28] sm:$0xfe] %vm578_vm3, %v1868_v60 }
 0x258   : > { %v1406_v31 = vadd.f32 %v1405_v25, %v1404_v15  ;;  %v1410_v32 = vadd.f32 %v1409_v27, %v1366_v16  ;;  %v1402_v34 = vadd.f32 %v1401_v24, %v1400_v14  ;;  %1891 = vst.msk [vmem:[#allocation2 + $0x10] sm:$0x1] %vm580_vm4, %v1866_v59  ;;  %1895 = vst.msk [vmem:[#allocation2 + $0x30] sm:$0x1] %vm580_vm4, %v1868_v60  ;;  %v1870_v61 = vpop.permute.xlu0 %1869  ;;  %v1872_v62 = vpop.permute.xlu1 %1871  ;;  %v2081_v25 = vld [vmem:[#allocation6 + $0x290] sm:$0xff]  ;;  %v2082_v27 = vld [vmem:[#allocation6 + $0x298] sm:$0xff] }
 0x259   : > { %v1352_v35 = vadd.f32 %v1351_v29, %v1350_v19  ;;  %v1356_v36 = vadd.f32 %v1355_v28, %v1354_v20  ;;  %1892 = vst.msk [vmem:[#allocation2 + $0x18] sm:$0x1] %vm582_vm5, %v1866_v59  ;;  %1896 = vst.msk [vmem:[#allocation2 + $0x38] sm:$0x1] %vm582_vm5, %v1868_v60  ;;  %v2079_v19 = vld [vmem:[#allocation6 + $0x280] sm:$0xff]  ;;  %v2080_v20 = vld [vmem:[#allocation6 + $0x288] sm:$0xff] }
 0x25a   : > { %v1411_v37 = vrot.slane %v1410_v32, 2  ;;  %v1407_v38 = vrot.slane %v1406_v31, 1  ;;  %v1450_v39 = vsel %vm1431_vm12, %v1402_v34, %v1449_v22  ;;  %1893 = vst.msk [vmem:[#allocation2 + $0x20] sm:$0xfe] %vm576_vm2, %v1868_v60  ;;  %1897 = vst.msk [vmem:[#allocation2 + $0x40] sm:$0xfe] %vm576_vm2, %v1870_v61  ;;  %v7032_v24 = vpack.c.bf16 %v2080_v20, %v2079_v19 }
 0x25b   : > { %v1357_v40 = vrot.slane %v1356_v36, 1  ;;  %v1434_v41 = vsel %vm1433_vm13, %v1352_v35, %v1432_v30  ;;  %1898 = vst.msk [vmem:[#allocation2 + $0x48] sm:$0xfe] %vm578_vm3, %v1870_v61  ;;  %1902 = vst.msk [vmem:[#allocation2 + $0x68] sm:$0xfe] %vm578_vm3, %v1872_v62  ;;  %v7035_v30 = vpack.c.bf16 %v2082_v27, %v2081_v25  ;;  %v2085_v35 = vld [vmem:[#allocation6 + $0x2b0] sm:$0xff] }
 0x25c   : > { %v1408_v43 = vadd.f32 %v1407_v38, %v1406_v31  ;;  %v1412_v46 = vadd.f32 %v1411_v37, %v1410_v32  ;;  %1899 = vst.msk [vmem:[#allocation2 + $0x50] sm:$0x1] %vm580_vm4, %v1870_v61  ;;  %1903 = vst.msk [vmem:[#allocation2 + $0x70] sm:$0x1] %vm580_vm4, %v1872_v62  ;;  %v1874_v63 = vpop.permute.xlu0 %1873  ;;  %v1876_v1 = vpop.permute.xlu1 %1875  ;;  %v2083_v31 = vld [vmem:[#allocation6 + $0x2a0] sm:$0xff]  ;;  %v2084_v32 = vld [vmem:[#allocation6 + $0x2a8] sm:$0xff] }
 0x25d   : > { %v1358_v47 = vadd.f32 %v1357_v40, %v1356_v36  ;;  %1900 = vst.msk [vmem:[#allocation2 + $0x58] sm:$0x1] %vm582_vm5, %v1870_v61  ;;  %1904 = vst.msk [vmem:[#allocation2 + $0x78] sm:$0x1] %vm582_vm5, %v1872_v62  ;;  %v7038_v34 = vpack.c.bf16 %v2084_v32, %v2083_v31  ;;  %v2086_v36 = vld [vmem:[#allocation6 + $0x2b8] sm:$0xff]  ;;  %v2087_v38 = vld [vmem:[#allocation6 + $0x2c0] sm:$0xff] }
 0x25e   : > { %v1413_v50 = vrot.slane %v1412_v46, 1  ;;  %v1451_v52 = vsel %vm1433_vm13, %v1408_v43, %v1450_v39  ;;  %1901 = vst.msk [vmem:[#allocation2 + $0x60] sm:$0xfe] %vm576_vm2, %v1872_v62  ;;  %1905 = vst.msk [vmem:[#allocation2 + $0x80] sm:$0xfe] %vm576_vm2, %v1874_v63  ;;  %v7041_v37 = vpack.c.bf16 %v2086_v36, %v2085_v35  ;;  %v2088_v39 = vld [vmem:[#allocation6 + $0x2c8] sm:$0xff] }
 0x25f   : > { %v1436_v53 = vsel %vm1435_vm14, %v1358_v47, %v1434_v41  ;;  %1906 = vst.msk [vmem:[#allocation2 + $0x88] sm:$0xfe] %vm578_vm3, %v1874_v63  ;;  %1910 = vst.msk [vmem:[#allocation2 + $0xa8] sm:$0xfe] %vm578_vm3, %v1876_v1  ;;  %v1959_v16 = vld [vmem:[#allocation2 + $0x8] sm:$0xfe]  ;;  %v7044_v40 = vpack.c.bf16 %v2088_v39, %v2087_v38 }
 0x260   : > { %6781 = vmatprep.mubr.f32.mxu1 %v1436_v53  ;;  %v1414_v55 = vadd.f32 %v1413_v50, %v1412_v46  ;;  %1907 = vst.msk [vmem:[#allocation2 + $0x90] sm:$0x1] %vm580_vm4, %v1874_v63  ;;  %1911 = vst.msk [vmem:[#allocation2 + $0xb0] sm:$0x1] %vm580_vm4, %v1876_v1  ;;  %v1878_v2 = vpop.permute.xlu0 %1877  ;;  %v1880_v4 = vpop.permute.xlu1 %1879  ;;  %v1961_v18 = vld [vmem:[#allocation2 + $0x18] sm:$0x1] }
 0x261   : > { %1908 = vst.msk [vmem:[#allocation2 + $0x98] sm:$0x1] %vm582_vm5, %v1874_v63  ;;  %1912 = vst.msk [vmem:[#allocation2 + $0xb8] sm:$0x1] %vm582_vm5, %v1876_v1  ;;  %v2025_v21 = vrot.slane %v1959_v16, 1  ;;  %v2026_v22 = vrot.slane %v1961_v18, 1 }
 0x262   : > { %v1452_v56 = vsel %vm1435_vm14, %v1414_v55, %v1451_v52  ;;  %1909 = vst.msk [vmem:[#allocation2 + $0xa0] sm:$0xfe] %vm576_vm2, %v1876_v1  ;;  %1913 = vst.msk [vmem:[#allocation2 + $0xc0] sm:$0xfe] %vm576_vm2, %v1878_v2  ;;  %v2089_v41 = vld [vmem:[#allocation6 + $0x2d0] sm:$0xff]  ;;  %v2090_v43 = vld [vmem:[#allocation6 + $0x2d8] sm:$0xff] }
 0x263   : > { %6782 = vmatmul.mubr.f32.vlgmr.msra.gmra.mrb[0].mxu1 %v1452_v56  ;;  %1914 = vst.msk [vmem:[#allocation2 + $0xc8] sm:$0xfe] %vm578_vm3, %v1878_v2  ;;  %1918 = vst.msk [vmem:[#allocation2 + $0xe8] sm:$0xfe] %vm578_vm3, %v1880_v4  ;;  %v2027_v28 = vsel %vm712_vm6, %v2025_v21, %v2026_v22  ;;  %v7047_v46 = vpack.c.bf16 %v2090_v43, %v2089_v41  ;;  %v2091_v47 = vld [vmem:[#allocation6 + $0x2e0] sm:$0xff]  ;;  %v2092_v50 = vld [vmem:[#allocation6 + $0x2e8] sm:$0xff] }
 0x264   : > { %6785 = vmatpush3.msk.msra.mxu1 %vm1544_vm15, %v8513_v58  ;;  %1915 = vst.msk [vmem:[#allocation2 + $0xd0] sm:$0x1] %vm580_vm4, %v1878_v2  ;;  %1919 = vst.msk [vmem:[#allocation2 + $0xf0] sm:$0x1] %vm580_vm4, %v1880_v4  ;;  %v7050_v52 = vpack.c.bf16 %v2092_v50, %v2091_v47  ;;  %v2093_v53 = vld [vmem:[#allocation6 + $0x2f0] sm:$0xff]  ;;  %v2094_v55 = vld [vmem:[#allocation6 + $0x2f8] sm:$0xff] }
 0x265   : > { %7031 = vmatprep.subr.bf16.mxu1 %v7926_v0  ;;  %1916 = vst.msk [vmem:[#allocation2 + $0xd8] sm:$0x1] %vm582_vm5, %v1878_v2  ;;  %1920 = vst.msk [vmem:[#allocation2 + $0xf8] sm:$0x1] %vm582_vm5, %v1880_v4  ;;  %v7053_v56 = vpack.c.bf16 %v2094_v55, %v2093_v53  ;;  %v2095_v59 = vld [vmem:[#allocation6 + $0x300] sm:$0xff]  ;;  %v2096_v60 = vld [vmem:[#allocation6 + $0x308] sm:$0xff] }
 0x266   : > { %1917 = vst.msk [vmem:[#allocation2 + $0xe0] sm:$0xfe] %vm576_vm2, %v1880_v4  ;;  %v7056_v61 = vpack.c.bf16 %v2096_v60, %v2095_v59  ;;  %v2097_v62 = vld [vmem:[#allocation6 + $0x310] sm:$0xff]  ;;  %v2098_v63 = vld [vmem:[#allocation6 + $0x318] sm:$0xff]  ;;  %v1958_v1 = vld [vmem:[#allocation2] sm:$0xfe] }
 0x267   : > { %v1960_v2 = vld [vmem:[#allocation2 + $0x10] sm:$0x1]  ;;  %v1963_v4 = vld [vmem:[#allocation2 + $0x28] sm:$0xfe]  ;;  %v1962_v16 = vld [vmem:[#allocation2 + $0x20] sm:$0xfe] }
 0x268   : > { %v1964_v18 = vld [vmem:[#allocation2 + $0x30] sm:$0x1]  ;;  %v1967_v19 = vld [vmem:[#allocation2 + $0x48] sm:$0xfe]  ;;  %v1969_v20 = vld [vmem:[#allocation2 + $0x58] sm:$0x1] }
 0x269   : > { %v2029_v25 = vrot.slane %v1964_v18, 1  ;;  %v1940_v27 = vld [vmem:[#allocation6 + $0x1f0] sm:$0xff]  ;;  %v2038_v31 = vrot.slane %v1969_v20, 1  ;;  %v1966_v32 = vld [vmem:[#allocation2 + $0x40] sm:$0xfe]  ;;  %v1943_v43 = vld [vmem:[#allocation6 + $0x208] sm:$0xff] }
 0x26a   : > { %v1971_v35 = vld [vmem:[#allocation2 + $0x68] sm:$0xfe]  ;;  %v1973_v36 = vld [vmem:[#allocation2 + $0x78] sm:$0x1]  ;;  %v2034_v39 = vrot.slane %v1966_v32, 1  ;;  %v1942_v41 = vld [vmem:[#allocation6 + $0x200] sm:$0xff] }
 0x26b   : > { %v2043_v47 = vrot.slane %v1971_v35, 1  ;;  %v2044_v50 = vrot.slane %v1973_v36, 1  ;;  %v1972_v53 = vld [vmem:[#allocation2 + $0x70] sm:$0x1]  ;;  %v1975_v55 = vld [vmem:[#allocation2 + $0x88] sm:$0xfe]  ;;  %v7068_v60 = vpack.c.bf16 %v1943_v43, %v1942_v41 }
 0x26c   : > { %v1946_v18 = vld [vmem:[#allocation6 + $0x220] sm:$0xff]  ;;  %v1949_v35 = vld [vmem:[#allocation6 + $0x238] sm:$0xff]  ;;  %v1987_v41 = vld [vmem:[#allocation2 + $0xe8] sm:$0xfe] }
 0x26d   : > { %v1989_v43 = vld [vmem:[#allocation2 + $0xf8] sm:$0x1] }
 0x336   : > { %v6783_v7 = vpop.f32.mrb[0].mxu1 }
 0x337   : > { %v1520_v8 = vpop.f32.mrb[1].mxu1  ;;  %v1531_v11 = vmul.f32 0.00390625, %v6783_v7  ;;  %v1965_v7 = vld [vmem:[#allocation2 + $0x38] sm:$0x1] }
 0x338   : > { %v1530_v9 = vmul.f32 0.00390625, %v1520_v8  ;;  %v7059_v8 = vpack.c.bf16 %v2098_v63, %v2097_v62  ;;  %v2041_v62 = vrot.slane %v1972_v53, 1  ;;  %v1944_v63 = vld [vmem:[#allocation6 + $0x210] sm:$0xff]  ;;  %v1950_v53 = vld [vmem:[#allocation6 + $0x240] sm:$0xff] }
 0x33a   : > { %v1532_v12 = vmul.f32 %v1530_v9, %v1530_v9  ;;  %6786 = vmatprep.mubr.msk.f32.mxu1 %vm1537_vm1, %v1530_v9  ;;  %v2022_v9 = vrot.slane %v1958_v1, 1  ;;  %v1945_v1 = vld [vmem:[#allocation6 + $0x218] sm:$0xff] }
 0x33c   : > { %v1533_v13 = vsub.f32 %v1531_v11, %v1532_v12  ;;  %v2023_v11 = vrot.slane %v1960_v2, 1  ;;  %v1938_v12 = vld [vmem:[#allocation6 + $0x1e0] sm:$0xff]  ;;  %v2045_v2 = vsel %vm712_vm6, %v2043_v47, %v2044_v50 }
 0x33e   : > { %v1534_v14 = vmax.f32 %v1533_v13, 0.0  ;;  %v1939_v13 = vld [vmem:[#allocation6 + $0x1e8] sm:$0xff]  ;;  %v2024_v21 = vsel %vm712_vm6, %v2022_v9, %v2023_v11  ;;  %v1976_v9 = vld [vmem:[#allocation2 + $0x90] sm:$0x1] }
 0x33f   : > { %v7062_v22 = vpack.c.bf16 %v1939_v13, %v1938_v12  ;;  %v1979_v11 = vld [vmem:[#allocation2 + $0xa8] sm:$0xfe]  ;;  %v1981_v12 = vld [vmem:[#allocation2 + $0xb8] sm:$0x1] }
 0x340   : > { %v1535_v15 = vadd.f32 1e-05, %v1534_v14  ;;  %v2031_v14 = vrot.slane %v1963_v4, 1  ;;  %v2049_v4 = vrot.slane %v1975_v55, 1  ;;  %v1951_v55 = vld [vmem:[#allocation6 + $0x248] sm:$0xff] }
 0x342   : > { %7745 = vrsqrt.f32 %v1535_v15  ;;  %v2032_v15 = vrot.slane %v1965_v7, 1 }
 0x34c   : > { %v7746_v29 = vpop.eup %7745 }
 0x34d   : > { %6787 = vmatmul.mubr.msk.f32.vlgmr.msra.gmra.mrb[2].mxu1 %vm1537_vm1, %v7746_v29  ;;  %v2033_v29 = vsel %vm712_vm6, %v2031_v14, %v2032_v15  ;;  %v7071_v14 = vpack.c.bf16 %v1945_v1, %v1944_v63  ;;  %v7080_v1 = vpack.c.bf16 %v1951_v55, %v1950_v53  ;;  %v2480_v53 = vld [vmem:[#allocation6 + $0x370] sm:$0xff]  ;;  %v2481_v55 = vld [vmem:[#allocation6 + $0x378] sm:$0xff] }
 0x34e   : > { %7033 = vmatpush1.bf16.msra.mxu1 %v7032_v24  ;;  %6432 = vmatprep.mubr.msk.f32.mxu1 %vm476_vm0, %v2027_v28  ;;  %v2028_v24 = vrot.slane %v1962_v16, 1  ;;  %v1941_v28 = vld [vmem:[#allocation6 + $0x1f8] sm:$0xff]  ;;  %v2047_v16 = vrot.slane %v1976_v9, 1 }
 0x34f   : > { %7034 = vmatprep.subr.bf16.mxu1 %v7926_v0  ;;  %v7065_v38 = vpack.c.bf16 %v1941_v28, %v1940_v27  ;;  %v1983_v27 = vld [vmem:[#allocation2 + $0xc8] sm:$0xfe]  ;;  %v1985_v28 = vld [vmem:[#allocation2 + $0xd8] sm:$0x1] }
 0x350   : > { %v1953_v9 = vld [vmem:[#allocation6 + $0x258] sm:$0xff] }
 0x352   : > { %7036 = vmatpush1.bf16.msra.mxu1 %v7035_v30  ;;  %v2037_v30 = vrot.slane %v1967_v19, 1  ;;  %v1947_v19 = vld [vmem:[#allocation6 + $0x228] sm:$0xff] }
 0x353   : > { %7037 = vmatprep.subr.bf16.mxu1 %v7926_v0 }
 0x356   : > { %7039 = vmatpush1.bf16.msra.mxu1 %v7038_v34  ;;  %v1968_v34 = vld [vmem:[#allocation2 + $0x50] sm:$0x1] }
 0x357   : > { %7040 = vmatprep.subr.bf16.mxu1 %v7926_v0 }
 0x35a   : > { %7042 = vmatpush1.bf16.msra.mxu1 %v7041_v37  ;;  %v2030_v37 = vsel %vm712_vm6, %v2028_v24, %v2029_v25  ;;  %v1978_v24 = vld [vmem:[#allocation2 + $0xa0] sm:$0xfe]  ;;  %v1980_v25 = vld [vmem:[#allocation2 + $0xb0] sm:$0x1] }
 0x35b   : > { %7043 = vmatprep.subr.bf16.mxu1 %v7926_v0  ;;  %v2053_v32 = vrot.slane %v1980_v25, 1  ;;  %v2472_v25 = vld [vmem:[#allocation6 + $0x330] sm:$0xff] }
 0x35e   : > { %7045 = vmatpush1.bf16.msra.mxu1 %v7044_v40  ;;  %v2035_v40 = vrot.slane %v1968_v34, 1  ;;  %v1948_v34 = vld [vmem:[#allocation6 + $0x230] sm:$0xff] }
 0x35f   : > { %7046 = vmatprep.subr.bf16.mxu1 %v7926_v0  ;;  %v7077_v47 = vpack.c.bf16 %v1949_v35, %v1948_v34  ;;  %v1923_v34 = vld [vmem:[#allocation2 + $0x20] sm:$0xff]  ;;  %v1926_v35 = vld [vmem:[#allocation2 + $0x48] sm:$0xff] }
 0x360   : > { %v2036_v59 = vsel %vm712_vm6, %v2034_v39, %v2035_v40  ;;  %v1982_v39 = vld [vmem:[#allocation2 + $0xc0] sm:$0xfe]  ;;  %v1984_v40 = vld [vmem:[#allocation2 + $0xd0] sm:$0x1] }
 0x361   : > { %v2058_v50 = vrot.slane %v1982_v39, 1  ;;  %v1925_v39 = vld [vmem:[#allocation2 + $0x40] sm:$0xff] }
 0x362   : > { %7048 = vmatpush1.bf16.msra.mxu1 %v7047_v46  ;;  %v2039_v46 = vsel %vm712_vm6, %v2037_v30, %v2038_v31  ;;  %v7074_v30 = vpack.c.bf16 %v1947_v19, %v1946_v18  ;;  %v2052_v31 = vrot.slane %v1978_v24, 1  ;;  %v1956_v18 = vld [vmem:[#allocation6 + $0x270] sm:$0xff]  ;;  %v1957_v19 = vld [vmem:[#allocation6 + $0x278] sm:$0xff] }
 0x363   : > { %7049 = vmatprep.subr.bf16.mxu1 %v7926_v0 }
 0x366   : > { %7051 = vmatpush1.bf16.msra.mxu1 %v7050_v52  ;;  %v1970_v52 = vld [vmem:[#allocation2 + $0x60] sm:$0xfe] }
 0x367   : > { %7052 = vmatprep.subr.bf16.mxu1 %v7926_v0 }
 0x36a   : > { %7054 = vmatpush1.bf16.msra.mxu1 %v7053_v56  ;;  %v1977_v56 = vld [vmem:[#allocation2 + $0x98] sm:$0x1] }
 0x36b   : > { %7055 = vmatprep.subr.bf16.mxu1 %v7926_v0  ;;  %v2050_v7 = vrot.slane %v1977_v56, 1 }
 0x36d   : > { %v2051_v20 = vsel %vm712_vm6, %v2049_v4, %v2050_v7 }
 0x36e   : > { %7057 = vmatpush1.bf16.msra.mxu1 %v7056_v61  ;;  %v2040_v61 = vrot.slane %v1970_v52, 1  ;;  %v2059_v52 = vrot.slane %v1984_v40, 1  ;;  %v1928_v40 = vld [vmem:[#allocation2 + $0x68] sm:$0xff] }
 0x36f   : > { %7058 = vmatprep.subr.bf16.mxu1 %v7926_v0 }
 0x370   : > { %v2042_v13 = vsel %vm712_vm6, %v2040_v61, %v2041_v62  ;;  %v1986_v61 = vld [vmem:[#allocation2 + $0xe0] sm:$0xfe]  ;;  %v1988_v62 = vld [vmem:[#allocation2 + $0xf0] sm:$0x1]  ;;  %v2060_v63 = vsel %vm712_vm6, %v2058_v50, %v2059_v52  ;;  %v1930_v50 = vld [vmem:[#allocation2 + $0x88] sm:$0xff] }
 0x371   : > { %v2065_v4 = vrot.slane %v1988_v62, 1  ;;  %v2483_v62 = vld [vmem:[#allocation6 + $0x388] sm:$0xff] }
 0x372   : > { %7060 = vmatpush1.bf16.msra.mxu1 %v7059_v8  ;;  %v1974_v8 = vld [vmem:[#allocation2 + $0x80] sm:$0xfe] }
 0x373   : > { %7061 = vmatprep.subr.bf16.mxu1 %v7926_v0  ;;  %v2046_v15 = vrot.slane %v1974_v8, 1  ;;  %v1952_v8 = vld [vmem:[#allocation6 + $0x250] sm:$0xff] }
 0x375   : > { %2180 = vmatmul.mubr.f32.vlgmr.msra.gmra.mrb[4].mxu1 %v2024_v21  ;;  %v2055_v21 = vrot.slane %v1979_v11, 1 }
 0x376   : > { %7063 = vmatpush1.bf16.msra.mxu1 %v7062_v22  ;;  %6433 = vmatprep.mubr.msk.f32.mxu1 %vm476_vm0, %v2033_v29  ;;  %v2056_v22 = vrot.slane %v1981_v12, 1  ;;  %v2048_v29 = vsel %vm712_vm6, %v2046_v15, %v2047_v16  ;;  %v7083_v12 = vpack.c.bf16 %v1953_v9, %v1952_v8  ;;  %v1922_v15 = vld [vmem:[#allocation2 + $0x8] sm:$0xff]  ;;  %v2484_v8 = vld [vmem:[#allocation6 + $0x390] sm:$0xff]  ;;  %v2485_v9 = vld [vmem:[#allocation6 + $0x398] sm:$0xff] }
 0x377   : > { %7064 = vmatprep.subr.bf16.mxu1 %v7926_v0 }
 0x378   : > { %v2057_v36 = vsel %vm712_vm6, %v2055_v21, %v2056_v22  ;;  %v2470_v21 = vld [vmem:[#allocation6 + $0x320] sm:$0xff]  ;;  %v2471_v22 = vld [vmem:[#allocation6 + $0x328] sm:$0xff] }
 0x379   : > { %2185 = vmatmul.mubr.f32.gmra.mrb[6].mxu1 %v2030_v37  ;;  %v2061_v37 = vrot.slane %v1983_v27, 1  ;;  %v7092_v24 = vpack.c.bf16 %v2471_v22, %v2470_v21  ;;  %v2473_v27 = vld [vmem:[#allocation6 + $0x338] sm:$0xff]  ;;  %v2488_v22 = vld [vmem:[#allocation6 + $0x3b0] sm:$0xff] }
 0x37a   : > { %7066 = vmatpush1.bf16.msra.mxu1 %v7065_v38  ;;  %6434 = vmatprep.mubr.msk.f32.mxu1 %vm476_vm0, %v2039_v46  ;;  %v2062_v38 = vrot.slane %v1985_v28, 1  ;;  %v2054_v46 = vsel %vm712_vm6, %v2052_v31, %v2053_v32  ;;  %v1921_v28 = vld [vmem:[#allocation2] sm:$0xff]  ;;  %v2475_v32 = vld [vmem:[#allocation6 + $0x348] sm:$0xff] }
 0x37b   : > { %7067 = vmatprep.subr.bf16.mxu1 %v7926_v0  ;;  %v2474_v31 = vld [vmem:[#allocation6 + $0x340] sm:$0xff] }
 0x37c   : > { %v2063_v56 = vsel %vm712_vm6, %v2061_v37, %v2062_v38  ;;  %v2476_v37 = vld [vmem:[#allocation6 + $0x350] sm:$0xff]  ;;  %v2477_v38 = vld [vmem:[#allocation6 + $0x358] sm:$0xff] }
 0x37d   : > { %2190 = vmatmul.mubr.f32.gmra.mrb[8].mxu1 %v2036_v59  ;;  %v2067_v59 = vrot.slane %v1987_v41, 1  ;;  %v7101_v41 = vpack.c.bf16 %v2477_v38, %v2476_v37  ;;  %v2355_v37 = vld [vmem:[#allocation2 + $0x30] sm:$0x3]  ;;  %v2358_v38 = vld [vmem:[#allocation2 + $0x48] sm:$0xfc] }
 0x37e   : > { %7069 = vmatpush1.bf16.msra.mxu1 %v7068_v60  ;;  %6435 = vmatprep.mubr.msk.f32.mxu1 %vm476_vm0, %v2045_v2  ;;  %v2068_v60 = vrot.slane %v1989_v43, 1  ;;  %v2064_v2 = vrot.slane %v1986_v61, 1  ;;  %v2478_v43 = vld [vmem:[#allocation6 + $0x360] sm:$0xff] }
 0x37f   : > { %7070 = vmatprep.subr.bf16.mxu1 %v7926_v0  ;;  %v2482_v61 = vld [vmem:[#allocation6 + $0x380] sm:$0xff] }
 0x380   : > { %v2069_v7 = vsel %vm712_vm6, %v2067_v59, %v2068_v60  ;;  %v2066_v11 = vsel %vm712_vm6, %v2064_v2, %v2065_v4  ;;  %v1932_v59 = vld [vmem:[#allocation2 + $0xa8] sm:$0xff]  ;;  %v7107_v60 = vpack.c.bf16 %v2481_v55, %v2480_v53  ;;  %v7110_v2 = vpack.c.bf16 %v2483_v62, %v2482_v61  ;;  %v2359_v53 = vld [vmem:[#allocation2 + $0x50] sm:$0x3] }
 0x381   : > { %2195 = vmatmul.mubr.f32.gmra.mrb[10].mxu1 %v2042_v13  ;;  %v1954_v13 = vld [vmem:[#allocation6 + $0x260] sm:$0xff]  ;;  %v2350_v4 = vld [vmem:[#allocation2 + $0x8] sm:$0xfc]  ;;  %v2426_v61 = vrot.slane %v2359_v53, 2 }
 0x382   : > { %7072 = vmatpush1.bf16.msra.mxu1 %v7071_v14  ;;  %6436 = vmatprep.mubr.msk.f32.mxu1 %vm476_vm0, %v2051_v20  ;;  %v1955_v14 = vld [vmem:[#allocation6 + $0x268] sm:$0xff]  ;;  %v7089_v20 = vpack.c.bf16 %v1957_v19, %v1956_v18  ;;  %v1935_v19 = vld [vmem:[#allocation2 + $0xe0] sm:$0xff] }
 0x383   : > { %7073 = vmatprep.subr.bf16.mxu1 %v7926_v0  ;;  %v7086_v16 = vpack.c.bf16 %v1955_v14, %v1954_v13  ;;  %v2416_v13 = vrot.slane %v2350_v4, 2  ;;  %v2487_v18 = vld [vmem:[#allocation6 + $0x3a8] sm:$0xff]  ;;  %v2363_v4 = vld [vmem:[#allocation2 + $0x70] sm:$0x3] }
 0x384   : > { %v2362_v55 = vld [vmem:[#allocation2 + $0x68] sm:$0xfc] }
 0x385   : > { %2200 = vmatmul.mubr.f32.gmra.mrb[12].mxu1 %v2048_v29  ;;  %v1924_v29 = vld [vmem:[#allocation2 + $0x28] sm:$0xff] }
 0x386   : > { %7075 = vmatpush1.bf16.msra.mxu1 %v7074_v30  ;;  %6437 = vmatprep.mubr.msk.f32.mxu1 %vm476_vm0, %v2057_v36  ;;  %v7095_v30 = vpack.c.bf16 %v2473_v27, %v2472_v25  ;;  %v7098_v36 = vpack.c.bf16 %v2475_v32, %v2474_v31  ;;  %v2349_v25 = vld [vmem:[#allocation2] sm:$0xfc]  ;;  %v2351_v27 = vld [vmem:[#allocation2 + $0x10] sm:$0x3] }
 0x387   : > { %7076 = vmatprep.subr.bf16.mxu1 %v7926_v0  ;;  %v2413_v31 = vrot.slane %v2349_v25, 2  ;;  %v2414_v32 = vrot.slane %v2351_v27, 2 }
 0x389   : > { %2205 = vmatmul.mubr.f32.gmra.mrb[14].mxu1 %v2054_v46  ;;  %v2479_v46 = vld [vmem:[#allocation6 + $0x368] sm:$0xff] }
 0x38a   : > { %7078 = vmatpush1.bf16.msra.mxu1 %v7077_v47  ;;  %6438 = vmatprep.mubr.msk.f32.mxu1 %vm476_vm0, %v2063_v56  ;;  %v1927_v47 = vld [vmem:[#allocation2 + $0x60] sm:$0xff]  ;;  %v7104_v52 = vpack.c.bf16 %v2479_v46, %v2478_v43  ;;  %v2420_v43 = vrot.slane %v2355_v37, 2 }
 0x38b   : > { %7079 = vmatprep.subr.bf16.mxu1 %v7926_v0  ;;  %v1929_v56 = vld [vmem:[#allocation2 + $0x80] sm:$0xff] }
 0x38d   : > { %2210 = vmatmul.mubr.f32.gmra.mrb[16].mxu1 %v2060_v63  ;;  %v1931_v63 = vld [vmem:[#allocation2 + $0xa0] sm:$0xff] }
 0x38e   : > { %7081 = vmatpush1.bf16.msra.mxu1 %v7080_v1  ;;  %6439 = vmatprep.mubr.msk.f32.mxu1 %vm476_vm0, %v2069_v7  ;;  %v1934_v1 = vld [vmem:[#allocation2 + $0xc8] sm:$0xff]  ;;  %v2352_v7 = vld [vmem:[#allocation2 + $0x18] sm:$0x3] }
 0x38f   : > { %7082 = vmatprep.subr.bf16.mxu1 %v7926_v0  ;;  %v2417_v14 = vrot.slane %v2352_v7, 2  ;;  %v2366_v7 = vld [vmem:[#allocation2 + $0x88] sm:$0xfc] }
 0x391   : > { %2215 = vmatmul.mubr.f32.gmra.mrb[18].mxu1 %v2066_v11  ;;  %v1933_v11 = vld [vmem:[#allocation2 + $0xc0] sm:$0xff] }
 0x392   : > { %7084 = vmatpush1.bf16.msra.mxu1 %v7083_v12  ;;  %6440 = vmatprep.mubr.msk.f32.mxu1 %vm476_vm0, %v1922_v15  ;;  %v1936_v12 = vld [vmem:[#allocation2 + $0xe8] sm:$0xff]  ;;  %v7113_v15 = vpack.c.bf16 %v2485_v9, %v2484_v8  ;;  %v2368_v8 = vld [vmem:[#allocation2 + $0x98] sm:$0x3] }
 0x393   : > { %7085 = vmatprep.subr.bf16.mxu1 %v7926_v0 }
 0x396   : > { %7087 = vmatpush1.bf16.msra.mxu1 %v7086_v16  ;;  %v2486_v16 = vld [vmem:[#allocation6 + $0x3a0] sm:$0xff] }
 0x397   : > { %7088 = vmatprep.subr.bf16.mxu1 %v7926_v0  ;;  %v7116_v21 = vpack.c.bf16 %v2487_v18, %v2486_v16  ;;  %v2365_v16 = vld [vmem:[#allocation2 + $0x80] sm:$0xfc]  ;;  %v2367_v18 = vld [vmem:[#allocation2 + $0x90] sm:$0x3] }
 0x39a   : > { %7090 = vmatpush1.bf16.msra.mxu1 %v7089_v20  ;;  %v2418_v20 = vsel %vm1104_vm7, %v2416_v13, %v2417_v14  ;;  %v2440_v14 = vrot.slane %v2366_v7, 2 }
 0x39b   : > { %7091 = vmatprep.subr.bf16.mxu1 %v7926_v0 }
 0x39d   : > { %2309 = vmatmul.mubr.f32.vlgmr.msra.gmra.mrb[4].mxu1 %v1921_v28 }
 0x39e   : > { %6441 = vmatprep.mubr.msk.f32.mxu1 %vm476_vm0, %v1924_v29  ;;  %7093 = vmatpush1.bf16.msra.mxu1 %v7092_v24  ;;  %v2489_v24 = vld [vmem:[#allocation6 + $0x3b8] sm:$0xff]  ;;  %v2354_v29 = vld [vmem:[#allocation2 + $0x28] sm:$0xfc] }
 0x39f   : > { %7094 = vmatprep.subr.bf16.mxu1 %v7926_v0  ;;  %v7119_v28 = vpack.c.bf16 %v2489_v24, %v2488_v22  ;;  %v2437_v22 = vrot.slane %v2365_v16, 2  ;;  %v2438_v24 = vrot.slane %v2367_v18, 2 }
 0x3a1   : > { %2314 = vmatmul.mubr.f32.gmra.mrb[6].mxu1 %v1923_v34  ;;  %v2422_v34 = vrot.slane %v2354_v29, 2  ;;  %v2369_v29 = vld [vmem:[#allocation2 + $0xa0] sm:$0xfc] }
 0x3a2   : > { %6442 = vmatprep.mubr.msk.f32.mxu1 %vm476_vm0, %v1926_v35  ;;  %7096 = vmatpush1.bf16.msra.mxu1 %v7095_v30  ;;  %v2356_v30 = vld [vmem:[#allocation2 + $0x38] sm:$0x3] }
 0x3a3   : > { %7097 = vmatprep.subr.bf16.mxu1 %v7926_v0  ;;  %v2423_v35 = vrot.slane %v2356_v30, 2  ;;  %v2371_v30 = vld [vmem:[#allocation2 + $0xb0] sm:$0x3] }
 0x3a5   : > { %2319 = vmatmul.mubr.f32.gmra.mrb[8].mxu1 %v1925_v39  ;;  %v2360_v39 = vld [vmem:[#allocation2 + $0x58] sm:$0x3]  ;;  %v2424_v46 = vsel %vm1104_vm7, %v2422_v34, %v2423_v35  ;;  %v2439_v34 = vsel %vm1104_vm7, %v2437_v22, %v2438_v24  ;;  %v2443_v35 = vrot.slane %v2369_v29, 2 }
 0x3a6   : > { %6443 = vmatprep.mubr.msk.f32.mxu1 %vm476_vm0, %v1928_v40  ;;  %7099 = vmatpush1.bf16.msra.mxu1 %v7098_v36  ;;  %v2353_v36 = vld [vmem:[#allocation2 + $0x20] sm:$0xfc]  ;;  %v2415_v40 = vsel %vm1104_vm7, %v2413_v31, %v2414_v32  ;;  %v2374_v31 = vld [vmem:[#allocation2 + $0xc8] sm:$0xfc]  ;;  %v2376_v32 = vld [vmem:[#allocation2 + $0xd8] sm:$0x3] }
 0x3a7   : > { %7100 = vmatprep.subr.bf16.mxu1 %v7926_v0 }
 0x3a9   : > { %2324 = vmatmul.mubr.f32.gmra.mrb[10].mxu1 %v1927_v47  ;;  %v2428_v47 = vrot.slane %v2358_v38, 2  ;;  %v2452_v38 = vrot.slane %v2374_v31, 2 }
 0x3aa   : > { %6444 = vmatprep.mubr.msk.f32.mxu1 %vm476_vm0, %v1930_v50  ;;  %7102 = vmatpush1.bf16.msra.mxu1 %v7101_v41  ;;  %v2419_v41 = vrot.slane %v2353_v36, 2  ;;  %v2429_v50 = vrot.slane %v2360_v39, 2  ;;  %v2444_v36 = vrot.slane %v2371_v30, 2  ;;  %v2453_v39 = vrot.slane %v2376_v32, 2 }
 0x3ab   : > { %7103 = vmatprep.subr.bf16.mxu1 %v7926_v0 }
 0x3ac   : > { %v2430_v62 = vsel %vm1104_vm7, %v2428_v47, %v2429_v50  ;;  %v2445_v47 = vsel %vm1104_vm7, %v2443_v35, %v2444_v36  ;;  %v2454_v53 = vsel %vm1104_vm7, %v2452_v38, %v2453_v39 }
 0x3ad   : > { %2329 = vmatmul.mubr.f32.gmra.mrb[12].mxu1 %v1929_v56  ;;  %v2364_v56 = vld [vmem:[#allocation2 + $0x78] sm:$0x3] }
 0x3ae   : > { %6445 = vmatprep.mubr.msk.f32.mxu1 %vm476_vm0, %v1932_v59  ;;  %7105 = vmatpush1.bf16.msra.mxu1 %v7104_v52  ;;  %v2357_v52 = vld [vmem:[#allocation2 + $0x40] sm:$0xfc]  ;;  %v2421_v59 = vsel %vm1104_vm7, %v2419_v41, %v2420_v43  ;;  %v2375_v41 = vld [vmem:[#allocation2 + $0xd0] sm:$0x3]  ;;  %v2378_v43 = vld [vmem:[#allocation2 + $0xe8] sm:$0xfc] }
 0x3af   : > { %7106 = vmatprep.subr.bf16.mxu1 %v7926_v0 }
 0x3b1   : > { %2334 = vmatmul.mubr.f32.gmra.mrb[14].mxu1 %v1931_v63  ;;  %v2434_v63 = vrot.slane %v2362_v55, 2  ;;  %v2458_v55 = vrot.slane %v2378_v43, 2 }
 0x3b2   : > { %6446 = vmatprep.mubr.msk.f32.mxu1 %vm476_vm0, %v1934_v1  ;;  %7108 = vmatpush1.bf16.msra.mxu1 %v7107_v60  ;;  %v2425_v60 = vrot.slane %v2357_v52, 2  ;;  %v2435_v1 = vrot.slane %v2364_v56, 2  ;;  %v2450_v52 = vrot.slane %v2375_v41, 2 }
 0x3b3   : > { %7109 = vmatprep.subr.bf16.mxu1 %v7926_v0 }
 0x3b4   : > { %v2427_v9 = vsel %vm1104_vm7, %v2425_v60, %v2426_v61  ;;  %v2436_v13 = vsel %vm1104_vm7, %v2434_v63, %v2435_v1  ;;  %v2379_v60 = vld [vmem:[#allocation2 + $0xf0] sm:$0x3] }
 0x3b5   : > { %2339 = vmatmul.mubr.f32.gmra.mrb[16].mxu1 %v1933_v11  ;;  %v2456_v63 = vrot.slane %v2379_v60, 2 }
 0x3b6   : > { %6447 = vmatprep.mubr.msk.f32.mxu1 %vm476_vm0, %v1936_v12  ;;  %7111 = vmatpush1.bf16.msra.mxu1 %v7110_v2  ;;  %v2361_v2 = vld [vmem:[#allocation2 + $0x60] sm:$0xfc]  ;;  %v2432_v12 = vrot.slane %v2363_v4, 2  ;;  %v7929_v4 = vmov 1966171168  }
 0x3b7   : > { %7112 = vmatprep.subr.bf16.mxu1 %v7926_v0  ;;  %v2431_v11 = vrot.slane %v2361_v2, 2  ;;  %v1637_v7 = vunpack.c.l.s4 %v7929_v4 }
 0x3b9   : > { %2344 = vmatmul.mubr.f32.gmra.mrb[18].mxu1 %v1935_v19  ;;  %v2370_v19 = vld [vmem:[#allocation2 + $0xa8] sm:$0xfc] }
 0x3ba   : > { %7114 = vmatpush1.bf16.msra.mxu1 %v7113_v15  ;;  %6448 = vmatprep.mubr.msk.f32.mxu1 %vm476_vm0, %v2418_v20  ;;  %v2441_v15 = vrot.slane %v2368_v8, 2  ;;  %v2372_v20 = vld [vmem:[#allocation2 + $0xb8] sm:$0x3]  ;;  %v2446_v27 = vrot.slane %v2370_v19, 2  ;;  %v1639_v8 = vlaneseq }
 0x3bb   : > { %7115 = vmatprep.subr.bf16.mxu1 %v7926_v0 }
 0x3bc   : > { %v2442_v25 = vsel %vm1104_vm7, %v2440_v14, %v2441_v15 }
 0x3be   : > { %7117 = vmatpush1.bf16.msra.mxu1 %v7116_v21  ;;  %v2433_v21 = vsel %vm1104_vm7, %v2431_v11, %v2432_v12  ;;  %v8659_v11 = vshrl.u32 %v1639_v8, 7  ;;  %v6422_v12 = vld [vmem:[%s9420_s2] ss:$0 sm:$0xff] }
 0x3bf   : > { %7118 = vmatprep.subr.bf16.mxu1 %v7926_v0 }
 0x3c2   : > { %7120 = vmatpush1.bf16.msra.mxu1 %v7119_v28  ;;  %v2447_v28 = vrot.slane %v2372_v20, 2 }
 0x3c3   : > { %7244 = vmatprep.subr.bf16.mxu1 %v8342_v42 }
 0x3c4   : > { %v2448_v37 = vsel %vm1104_vm7, %v2446_v27, %v2447_v28 }
 0x3c5   : > { %2571 = vmatmul.mubr.f32.vlgmr.msra.gmra.mrb[4].mxu1 %v2415_v40  ;;  %v2373_v40 = vld [vmem:[#allocation2 + $0xc0] sm:$0xfc] }
 0x3c6   : > { %6449 = vmatprep.mubr.msk.f32.mxu1 %vm476_vm0, %v2424_v46  ;;  %7246 = vmatpush3.bf16.msra.mxu1 %v8342_v42  ;;  %v2380_v46 = vld [vmem:[#allocation2 + $0xf8] sm:$0x3]  ;;  %v2449_v50 = vrot.slane %v2373_v40, 2 }
 0x3c7   : > { %7248 = vmatprep.subr.bf16.mxu1 %v8353_v45  ;;  %v2459_v56 = vrot.slane %v2380_v46, 2 }
 0x3c8   : > { %v2451_v61 = vsel %vm1104_vm7, %v2449_v50, %v2450_v52 }
 0x3c9   : > { %2576 = vmatmul.mubr.f32.gmra.mrb[6].mxu1 %v2421_v59  ;;  %v2377_v59 = vld [vmem:[#allocation2 + $0xe0] sm:$0xfc]  ;;  %v2460_v1 = vsel %vm1104_vm7, %v2458_v55, %v2459_v56 }
 0x3ca   : > { %6450 = vmatprep.mubr.msk.f32.mxu1 %vm476_vm0, %v2430_v62  ;;  %7250 = vmatpush3.bf16.msra.mxu1 %v8353_v45  ;;  %v2455_v62 = vrot.slane %v2377_v59, 2 }
 0x3cb   : > { %7252 = vmatprep.subr.bf16.mxu1 %v8364_v48 }
 0x3cc   : > { %v2457_v2 = vsel %vm1104_vm7, %v2455_v62, %v2456_v63 }
 0x3cd   : > { %2581 = vmatmul.mubr.f32.gmra.mrb[8].mxu1 %v2427_v9  ;;  %v1638_v9 = vunpack.c.0.s8 %v1637_v7 }
 0x3ce   : > { %6451 = vmatprep.mubr.msk.f32.mxu1 %vm476_vm0, %v2436_v13  ;;  %7254 = vmatpush3.bf16.msra.mxu1 %v8364_v48 }
 0x3cf   : > { %7256 = vmatprep.subr.bf16.mxu1 %v8375_v51  ;;  %v8665_v13 = vsub.s32 %v1638_v9, %v8659_v11 }
 0x3d1   : > { %2586 = vmatmul.mubr.f32.gmra.mrb[10].mxu1 %v2433_v21  ;;  %v8672_v21 = vsub.s32 0, %v8659_v11 }
 0x3d2   : > { %6452 = vmatprep.mubr.msk.f32.mxu1 %vm476_vm0, %v2442_v25  ;;  %7258 = vmatpush3.bf16.msra.mxu1 %v8375_v51 }
 0x3d3   : > { %7260 = vmatprep.subr.bf16.mxu1 %v8387_v54 }
 0x3d5   : > { %2591 = vmatmul.mubr.f32.gmra.mrb[12].mxu1 %v2439_v34 }
 0x3d6   : > { %6453 = vmatprep.mubr.msk.f32.mxu1 %vm476_vm0, %v2448_v37  ;;  %7262 = vmatpush3.bf16.msra.mxu1 %v8387_v54 }
 0x3d7   : > { %7264 = vmatprep.subr.bf16.mxu1 %v8399_v57 }
 0x3d9   : > { %2596 = vmatmul.mubr.f32.gmra.mrb[14].mxu1 %v2445_v47 }
 0x3da   : > { %6454 = vmatprep.mubr.msk.f32.mxu1 %vm476_vm0, %v2454_v53  ;;  %7266 = vmatpush3.bf16.msra.mxu1 %v8399_v57 }
 0x3db   : > { %7268 = vmatprep.subr.bf16.mxu1 %v8415_v3 }
 0x3dd   : > { %2601 = vmatmul.mubr.f32.gmra.mrb[16].mxu1 %v2451_v61 }
 0x3de   : > { %6455 = vmatprep.mubr.msk.f32.mxu1 %vm476_vm0, %v2460_v1  ;;  %7270 = vmatpush3.bf16.msra.mxu1 %v8415_v3 }
 0x3df   : > { %7272 = vmatprep.subr.bf16.mxu1 %v8431_v10 }
 0x3e1   : > { %2606 = vmatmul.mubr.f32.gmra.mrb[18].mxu1 %v2457_v2 }
 0x3e2   : > { %7274 = vmatpush3.bf16.msra.mxu1 %v8431_v10 }
 0x3e3   : > { %6864 = vmatprep.subr.msk.mxu1 %vm1544_vm15, %v8513_v58  ;;  %v6423_v58 = vld [vmem:[%s9421_s3] ss:$0 sm:$0xff] }
 0x420   : > { %v6788_v14 = vpop.f32.mrb[2].mxu1 }
 0x421   : > { %v1627_v15 = vmul.f32 %v6788_v14, %v6422_v12  ;;  %v1614_v16 = vpop.f32.mrb[3].mxu1 }
 0x423   : > { %v1635_v18 = vcombine.high %v1627_v15, %v1627_v15  ;;  %v1642_v19 = vrot.slane %v1627_v15, %v8665_v13  ;;  %v1628_v20 = vmul.f32 %v1627_v15, %v1614_v16 }
 0x425   : > { %v1649_v22 = vrot.slane %v1635_v18, %v8665_v13  ;;  %v1650_v24 = vcombine.high %v1642_v19, %v1642_v19  ;;  %v1658_v25 = vrot.slane %v1642_v19, %v8665_v13  ;;  %v1633_v27 = vsub.f32 %v6423_v58, %v1628_v20 }
 0x427   : > { %v1651_v28 = vcombine.high %v1649_v22, %v1649_v22  ;;  %v1665_v29 = vrot.slane %v1649_v22, %v8665_v13  ;;  %v1672_v30 = vrot.slane %v1650_v24, %v8665_v13  ;;  %v1680_v31 = vcombine.high %v1658_v25, %v1658_v25 }
 0x428   : > { %v1687_v32 = vrot.slane %v1658_v25, %v8672_v21  ;;  %v1733_v34 = vcombine.high %v1633_v27, %v1633_v27  ;;  %v1740_v35 = vrot.slane %v1633_v27, %v8665_v13 }
 0x429   : > { %v1679_v36 = vrot.slane %v1651_v28, %v8665_v13  ;;  %v1681_v37 = vcombine.high %v1665_v29, %v1665_v29  ;;  %v1682_v38 = vcombine.high %v1672_v30, %v1672_v30  ;;  %v1691_v39 = vrot.slane %v1672_v30, %v8672_v21 }
 0x42a   : > { %v1747_v40 = vrot.slane %v1733_v34, %v8665_v13  ;;  %v1748_v41 = vcombine.high %v1740_v35, %v1740_v35  ;;  %v1756_v43 = vrot.slane %v1740_v35, %v8665_v13  ;;  %v1724_v46 = vmul.f32 %v1687_v32, %v8448_v17 }
 0x42b   : > { %v1725_v47 = vmul.f32 %v1691_v39, %v8454_v23  ;;  %v1695_v50 = vrot.slane %v1680_v31, %v8672_v21  ;;  %v1699_v52 = vrot.slane %v1682_v38, %v8672_v21  ;;  %v1703_v53 = vrot.slane %v1665_v29, %v8672_v21 }
 0x42c   : > { %v1749_v55 = vcombine.high %v1747_v40, %v1747_v40  ;;  %v1763_v56 = vrot.slane %v1747_v40, %v8665_v13  ;;  %v1770_v59 = vrot.slane %v1748_v41, %v8665_v13  ;;  %v1778_v60 = vcombine.high %v1756_v43, %v1756_v43 }
 0x42d   : > { %v1785_v61 = vrot.slane %v1756_v43, %v8672_v21  ;;  %v1726_v62 = vmul.f32 %v1695_v50, %v8460_v33  ;;  %v1727_v17 = vmul.f32 %v1699_v52, %v8466_v49  ;;  %v1728_v23 = vmul.f32 %v1703_v53, %v8472_v6 }
 0x42e   : > { %v1777_v63 = vrot.slane %v1749_v55, %v8665_v13  ;;  %v1779_v1 = vcombine.high %v1763_v56, %v1763_v56  ;;  %v1780_v2 = vcombine.high %v1770_v59, %v1770_v59  ;;  %v1789_v4 = vrot.slane %v1770_v59, %v8672_v21 }
 0x42f   : > { %v8697_v7 = vadd.f32 %v1785_v61, %v1724_v46  ;;  %v1793_v8 = vrot.slane %v1778_v60, %v8672_v21  ;;  %v1801_v9 = vrot.slane %v1763_v56, %v8672_v21  ;;  %v1707_v12 = vrot.slane %v1679_v36, %v8672_v21 }
 0x430   : > { %v8702_v14 = vadd.f32 %v1789_v4, %v1725_v47  ;;  %v1797_v33 = vrot.slane %v1780_v2, %v8672_v21  ;;  %v1805_v49 = vrot.slane %v1777_v63, %v8672_v21  ;;  %v1711_v6 = vrot.slane %v1681_v37, %v8672_v21 }
 0x431   : > { %v8707_v15 = vadd.f32 %v1793_v8, %v1726_v62  ;;  %v8709_v16 = vadd.f32 %v1801_v9, %v1728_v23  ;;  %v1729_v58 = vmul.f32 %v1707_v12, %v8480_v26  ;;  %v1809_v20 = vrot.slane %v1779_v1, %v8672_v21 }
 0x432   : > { %v8712_v18 = vadd.f32 %v1797_v33, %v1727_v17  ;;  %v1730_v19 = vmul.f32 %v1711_v6, %v8487_v44  ;;  %v1683_v24 = vcombine.high %v1679_v36, %v1679_v36  ;;  %v1781_v27 = vcombine.high %v1777_v63, %v1777_v63 }
 0x433   : > { %v8716_v22 = vadd.f32 %v1805_v49, %v1729_v58 }
 0x434   : > { %v8718_v25 = vadd.f32 %v1809_v20, %v1730_v19  ;;  %v1715_v28 = vrot.slane %v1683_v24, %v8672_v21  ;;  %v1813_v29 = vrot.slane %v1781_v27, %v8672_v21 }
 0x436   : > { %v1731_v30 = vmul.f32 %v1715_v28, %v8495_v5 }
 0x438   : > { %v8723_v31 = vadd.f32 %v1813_v29, %v1731_v30 }
 0x498   : > { %v8725_v26 = vpop.f32.mrb[4].mxu1 }
 0x499   : > { %v2619_v44 = vrot.slane %v8725_v26, 4  ;;  %v2667_v32 = vmul.f32 %v8725_v26, %v8725_v26  ;;  %v2574_v34 = vpop.f32.mrb[5].mxu1 }
 0x49b   : > { %v2620_v35 = vadd.f32 %v2619_v44, %v8725_v26  ;;  %v2675_v36 = vrot.slane %v2667_v32, 4 }
 0x49c   : > { %v8731_v37 = vpop.f32.mrb[6].mxu1 }
 0x49d   : > { %v2621_v38 = vrot.slane %v2620_v35, 2  ;;  %v2676_v39 = vadd.f32 %v2675_v36, %v2667_v32  ;;  %v2625_v40 = vrot.slane %v8731_v37, 4  ;;  %v2668_v5 = vmul.f32 %v8731_v37, %v8731_v37  ;;  %v2579_v41 = vpop.f32.mrb[7].mxu1 }
 0x49f   : > { %v2622_v43 = vadd.f32 %v2621_v38, %v2620_v35  ;;  %v2677_v46 = vrot.slane %v2676_v39, 2  ;;  %v2626_v47 = vadd.f32 %v2625_v40, %v8731_v37  ;;  %v2681_v50 = vrot.slane %v2668_v5, 4 }
 0x4a0   : > { %v8737_v52 = vpop.f32.mrb[8].mxu1 }
 0x4a1   : > { %v2678_v53 = vadd.f32 %v2677_v46, %v2676_v39  ;;  %v2627_v55 = vrot.slane %v2626_v47, 2  ;;  %v2682_v56 = vadd.f32 %v2681_v50, %v2668_v5  ;;  %v2584_v59 = vpop.f32.mrb[9].mxu1  ;;  %v2631_v60 = vrot.slane %v8737_v52, 4 }
 0x4a2   : > { %v2669_v61 = vmul.f32 %v8737_v52, %v8737_v52  ;;  %v2623_v62 = vrot.slane %v2622_v43, 1 }
 0x4a3   : > { %v2628_v17 = vadd.f32 %v2627_v55, %v2626_v47  ;;  %v2683_v23 = vrot.slane %v2682_v56, 2  ;;  %v2679_v63 = vrot.slane %v2678_v53, 1  ;;  %v2632_v1 = vadd.f32 %v2631_v60, %v8737_v52 }
 0x4a4   : > { %v2687_v2 = vrot.slane %v2669_v61, 4  ;;  %v8743_v4 = vpop.f32.mrb[10].mxu1  ;;  %v2624_v19 = vadd.f32 %v2623_v62, %v2622_v43 }
 0x4a5   : > { %v2629_v8 = vrot.slane %v2628_v17, 1  ;;  %v2684_v9 = vadd.f32 %v2683_v23, %v2682_v56  ;;  %v2637_v12 = vrot.slane %v8743_v4, 4  ;;  %v2589_v33 = vpop.f32.mrb[11].mxu1  ;;  %v2633_v49 = vrot.slane %v2632_v1, 2 }
 0x4a6   : > { %v2688_v6 = vadd.f32 %v2687_v2, %v2669_v61  ;;  %v2670_v58 = vmul.f32 %v8743_v4, %v8743_v4  ;;  %v2680_v28 = vadd.f32 %v2679_v63, %v2678_v53 }
 0x4a7   : > { %v2630_v20 = vadd.f32 %v2629_v8, %v2628_v17  ;;  %v2685_v24 = vrot.slane %v2684_v9, 1  ;;  %v2638_v27 = vadd.f32 %v2637_v12, %v8743_v4  ;;  %v2634_v29 = vadd.f32 %v2633_v49, %v2632_v1 }
 0x4a8   : > { %v2689_v30 = vrot.slane %v2688_v6, 2  ;;  %v2693_v44 = vrot.slane %v2670_v58, 4  ;;  %v8749_v32 = vpop.f32.mrb[12].mxu1 }
 0x4a9   : > { %v2686_v34 = vadd.f32 %v2685_v24, %v2684_v9  ;;  %v2731_v35 = vsel %vm1423_vm8, %v2630_v20, %v2624_v19  ;;  %v2639_v36 = vrot.slane %v2638_v27, 2  ;;  %v2643_v38 = vrot.slane %v8749_v32, 4  ;;  %v2594_v39 = vpop.f32.mrb[13].mxu1 }
 0x4aa   : > { %v2635_v40 = vrot.slane %v2634_v29, 1  ;;  %v2690_v5 = vadd.f32 %v2689_v30, %v2688_v6  ;;  %v2694_v41 = vadd.f32 %v2693_v44, %v2670_v58  ;;  %v2671_v43 = vmul.f32 %v8749_v32, %v8749_v32 }
 0x4ab   : > { %v2747_v46 = vsel %vm1423_vm8, %v2686_v34, %v2680_v28  ;;  %v2640_v47 = vadd.f32 %v2639_v36, %v2638_v27  ;;  %v2644_v50 = vadd.f32 %v2643_v38, %v8749_v32 }
 0x4ac   : > { %v2636_v53 = vadd.f32 %v2635_v40, %v2634_v29  ;;  %v2691_v55 = vrot.slane %v2690_v5, 1  ;;  %v2695_v56 = vrot.slane %v2694_v41, 2  ;;  %v2699_v59 = vrot.slane %v2671_v43, 4  ;;  %v8757_v60 = vpop.f32.mrb[14].mxu1 }
 0x4ad   : > { %v2641_v61 = vrot.slane %v2640_v47, 1  ;;  %v2645_v62 = vrot.slane %v2644_v50, 2  ;;  %v2649_v17 = vrot.slane %v8757_v60, 4  ;;  %v2672_v23 = vmul.f32 %v8757_v60, %v8757_v60  ;;  %v2599_v63 = vpop.f32.mrb[15].mxu1 }
 0x4ae   : > { %v2692_v1 = vadd.f32 %v2691_v55, %v2690_v5  ;;  %v2696_v2 = vadd.f32 %v2695_v56, %v2694_v41  ;;  %v2700_v8 = vadd.f32 %v2699_v59, %v2671_v43  ;;  %v2732_v9 = vsel %vm1425_vm9, %v2636_v53, %v2731_v35 }
 0x4af   : > { %v2642_v12 = vadd.f32 %v2641_v61, %v2640_v47  ;;  %v2646_v33 = vadd.f32 %v2645_v62, %v2644_v50  ;;  %v2650_v49 = vadd.f32 %v2649_v17, %v8757_v60  ;;  %v2705_v6 = vrot.slane %v2672_v23, 4 }
 0x4b0   : > { %v2748_v58 = vsel %vm1425_vm9, %v2692_v1, %v2747_v46  ;;  %v2697_v19 = vrot.slane %v2696_v2, 1  ;;  %v2701_v20 = vrot.slane %v2700_v8, 2  ;;  %v8765_v24 = vpop.f32.mrb[16].mxu1 }
 0x4b1   : > { %v2647_v27 = vrot.slane %v2646_v33, 1  ;;  %v2651_v28 = vrot.slane %v2650_v49, 2  ;;  %v2706_v29 = vadd.f32 %v2705_v6, %v2672_v23  ;;  %v2655_v30 = vrot.slane %v8765_v24, 4  ;;  %v2604_v44 = vpop.f32.mrb[17].mxu1 }
 0x4b2   : > { %v2698_v34 = vadd.f32 %v2697_v19, %v2696_v2  ;;  %v2702_v36 = vadd.f32 %v2701_v20, %v2700_v8  ;;  %v2673_v35 = vmul.f32 %v8765_v24, %v8765_v24  ;;  %v2733_v38 = vsel %vm1427_vm10, %v2642_v12, %v2732_v9 }
 0x4b3   : > { %v2648_v39 = vadd.f32 %v2647_v27, %v2646_v33  ;;  %v2652_v40 = vadd.f32 %v2651_v28, %v2650_v49  ;;  %v2707_v5 = vrot.slane %v2706_v29, 2  ;;  %v2656_v41 = vadd.f32 %v2655_v30, %v8765_v24 }
 0x4b4   : > { %v2703_v43 = vrot.slane %v2702_v36, 1  ;;  %v2711_v46 = vrot.slane %v2673_v35, 4  ;;  %v8772_v47 = vpop.f32.mrb[18].mxu1  ;;  %v2749_v50 = vsel %vm1427_vm10, %v2698_v34, %v2748_v58 }
 0x4b5   : > { %v2653_v53 = vrot.slane %v2652_v40, 1  ;;  %v2708_v55 = vadd.f32 %v2707_v5, %v2706_v29  ;;  %v2657_v56 = vrot.slane %v2656_v41, 2  ;;  %v2661_v59 = vrot.slane %v8772_v47, 4  ;;  %v2609_v61 = vpop.f32.mrb[19].mxu1 }
 0x4b6   : > { %v2704_v62 = vadd.f32 %v2703_v43, %v2702_v36  ;;  %v2712_v17 = vadd.f32 %v2711_v46, %v2673_v35  ;;  %v2674_v23 = vmul.f32 %v8772_v47, %v8772_v47  ;;  %v2734_v63 = vsel %vm1429_vm11, %v2648_v39, %v2733_v38 }
 0x4b7   : > { %v2654_v1 = vadd.f32 %v2653_v53, %v2652_v40  ;;  %v2709_v2 = vrot.slane %v2708_v55, 1  ;;  %v2658_v8 = vadd.f32 %v2657_v56, %v2656_v41  ;;  %v2662_v9 = vadd.f32 %v2661_v59, %v8772_v47 }
 0x4b8   : > { %v2713_v12 = vrot.slane %v2712_v17, 2  ;;  %v2717_v33 = vrot.slane %v2674_v23, 4  ;;  %v2750_v49 = vsel %vm1429_vm11, %v2704_v62, %v2749_v50 }
 0x4b9   : > { %v2710_v6 = vadd.f32 %v2709_v2, %v2708_v55  ;;  %v2659_v58 = vrot.slane %v2658_v8, 1  ;;  %v2663_v19 = vrot.slane %v2662_v9, 2  ;;  %v2735_v20 = vsel %vm1431_vm12, %v2654_v1, %v2734_v63  ;;  %v7753_v55 = vld [vmem:[%s9426_s8] sm:$0xf] }
 0x4ba   : > { %v2714_v27 = vadd.f32 %v2713_v12, %v2712_v17  ;;  %v2718_v28 = vadd.f32 %v2717_v33, %v2674_v23  ;;  %v3374_v12 = vld [vmem:[#allocation8 + $0xb0] sm:$0xff] }
 0x4bb   : > { %v2664_v29 = vadd.f32 %v2663_v19, %v2662_v9  ;;  %v2660_v30 = vadd.f32 %v2659_v58, %v2658_v8  ;;  %v2751_v44 = vsel %vm1431_vm12, %v2710_v6, %v2750_v49  ;;  %v3372_v8 = vld [vmem:[#allocation8 + $0xa0] sm:$0xff]  ;;  %v3373_v9 = vld [vmem:[#allocation8 + $0xa8] sm:$0xff]  ;;  %v3375_v49 = vld [vmem:[#allocation8 + $0xb8] sm:$0xff] }
 0x4bc   : > { %v2715_v34 = vrot.slane %v2714_v27, 1  ;;  %v2719_v36 = vrot.slane %v2718_v28, 2  ;;  %v7154_v33 = vpack.c.bf16 %v3373_v9, %v3372_v8  ;;  %v7157_v6 = vpack.c.bf16 %v3375_v49, %v3374_v12  ;;  %v3376_v58 = vld [vmem:[#allocation8 + $0xc0] sm:$0xff]  ;;  %v3377_v19 = vld [vmem:[#allocation8 + $0xc8] sm:$0xff] }
 0x4bd   : > { %v2665_v35 = vrot.slane %v2664_v29, 1  ;;  %v2736_v38 = vsel %vm1433_vm13, %v2660_v30, %v2735_v20  ;;  %v7160_v20 = vpack.c.bf16 %v3377_v19, %v3376_v58  ;;  %v3380_v30 = vld [vmem:[#allocation8 + $0xe0] sm:$0xff]  ;;  %v1833_v8 = vmax.f32 %v8712_v18, 0.0 }
 0x4be   : > { %v2716_v39 = vadd.f32 %v2715_v34, %v2714_v27  ;;  %v2720_v40 = vadd.f32 %v2719_v36, %v2718_v28  ;;  %v3378_v27 = vld [vmem:[#allocation8 + $0xd0] sm:$0xff]  ;;  %v3379_v28 = vld [vmem:[#allocation8 + $0xd8] sm:$0xff]  ;;  %v1834_v9 = vmax.f32 %v8709_v16, 0.0  ;;  %v1835_v12 = vmax.f32 %v8716_v22, 0.0 }
 0x4bf   : > { %v2666_v5 = vadd.f32 %v2665_v35, %v2664_v29  ;;  %v7163_v29 = vpack.c.bf16 %v3379_v28, %v3378_v27  ;;  %v3382_v36 = vld [vmem:[#allocation8 + $0xf0] sm:$0xff]  ;;  %v3383_v35 = vld [vmem:[#allocation8 + $0xf8] sm:$0xff] }
 0x4c0   : > { %v2721_v41 = vrot.slane %v2720_v40, 1  ;;  %v2752_v43 = vsel %vm1433_vm13, %v2716_v39, %v2751_v44  ;;  %v3381_v44 = vld [vmem:[#allocation8 + $0xe8] sm:$0xff]  ;;  %v3384_v39 = vld [vmem:[#allocation8 + $0x100] sm:$0xff] }
 0x4c1   : > { %v2737_v46 = vsel %vm1435_vm14, %v2666_v5, %v2736_v38  ;;  %v7166_v34 = vpack.c.bf16 %v3381_v44, %v3380_v30  ;;  %v7169_v38 = vpack.c.bf16 %v3383_v35, %v3382_v36 }
 0x4c2   : > { %6821 = vmatprep.mubr.f32.mxu0 %v2737_v46  ;;  %v2722_v50 = vadd.f32 %v2721_v41, %v2720_v40  ;;  %v3385_v40 = vld [vmem:[#allocation8 + $0x108] sm:$0xff]  ;;  %v6459_v41 = vld [vmem:[%s9420_s2 + $0x1] ss:$0 sm:$0xff] }
 0x4c3   : > { %v7172_v5 = vpack.c.bf16 %v3385_v40, %v3384_v39 }
 0x4c4   : > { %v2753_v53 = vsel %vm1435_vm14, %v2722_v50, %v2752_v43 }
 0x4c5   : > { %6822 = vmatmul.mubr.f32.vlgmr.msra.gmra.mrb[16].mxu0 %v2753_v53  ;;  %v6460_v53 = vld [vmem:[%s9421_s3 + $0x1] ss:$0 sm:$0xff] }
 0x4c6   : > { %6825 = vmatpush3.msk.msra.mxu0 %vm1544_vm15, %v7753_v55 }
 0x4c7   : > { %7153 = vmatprep.subr.bf16.mxu0 %v7926_v0 }
 0x598   : > { %v6823_v56 = vpop.f32.mrb[16].mxu0 }
 0x599   : > { %v2821_v59 = vpop.f32.mrb[17].mxu0  ;;  %v2831_v62 = vmul.f32 0.00390625, %v6823_v56 }
 0x59a   : > { %v2830_v61 = vmul.f32 0.00390625, %v2821_v59 }
 0x59c   : > { %v2832_v17 = vmul.f32 %v2830_v61, %v2830_v61  ;;  %6826 = vmatprep.mubr.msk.f32.mxu0 %vm1537_vm1, %v2830_v61  ;;  %v1830_v61 = vmax.f32 %v8697_v7, 0.0 }
 0x59e   : > { %v2833_v23 = vsub.f32 %v2831_v62, %v2832_v17  ;;  %v1831_v62 = vmax.f32 %v8702_v14, 0.0 }
 0x5a0   : > { %v2834_v63 = vmax.f32 %v2833_v23, 0.0 }
 0x5a2   : > { %v2835_v1 = vadd.f32 1e-05, %v2834_v63 }
 0x5a4   : > { %7747 = vrsqrt.f32 %v2835_v1 }
 0x5ae   : > { %v7748_v2 = vpop.eup %7747 }
 0x5af   : > { %6827 = vmatmul.mubr.msk.f32.vlgmr.msra.gmra.mrb[18].mxu0 %vm1537_vm1, %v7748_v2  ;;  %v1832_v2 = vmax.f32 %v8707_v15, 0.0 }
 0x5b0   : > { %7155 = vmatpush1.bf16.msra.mxu0 %v7154_v33 }
 0x5b1   : > { %7156 = vmatprep.subr.bf16.mxu0 %v7926_v0 }
 0x5b4   : > { %7158 = vmatpush1.bf16.msra.mxu0 %v7157_v6 }
 0x5b5   : > { %7159 = vmatprep.subr.bf16.mxu0 %v7926_v0 }
 0x5b8   : > { %7161 = vmatpush1.bf16.msra.mxu0 %v7160_v20  ;;  %v1836_v20 = vmax.f32 %v8718_v25, 0.0 }
 0x5b9   : > { %7162 = vmatprep.subr.bf16.mxu0 %v7926_v0 }
 0x5bc   : > { %7164 = vmatpush1.bf16.msra.mxu0 %v7163_v29 }
 0x5bd   : > { %7165 = vmatprep.subr.bf16.mxu0 %v7926_v0 }
 0x5c0   : > { %7167 = vmatpush1.bf16.msra.mxu0 %v7166_v34 }
 0x5c1   : > { %7168 = vmatprep.subr.bf16.mxu0 %v7926_v0 }
 0x5c4   : > { %7170 = vmatpush1.bf16.msra.mxu0 %v7169_v38 }
 0x5c5   : > { %7171 = vmatprep.subr.bf16.mxu0 %v7926_v0 }
 0x5c8   : > { %7173 = vmatpush1.bf16.msra.mxu0 %v7172_v5 }
 0x5c9   : > { %7174 = vmatprep.subr.bf16.mxu0 %v7926_v0 }
 0x682   : > { %v6828_v43 = vpop.f32.mrb[18].mxu0 }
 0x683   : > { %v2922_v46 = vmul.f32 %v6828_v43, %v6459_v41  ;;  %v2909_v50 = vpop.f32.mrb[19].mxu0 }
 0x685   : > { %v2930_v55 = vcombine.high %v2922_v46, %v2922_v46  ;;  %v2937_v56 = vrot.slane %v2922_v46, %v8665_v13  ;;  %v2923_v59 = vmul.f32 %v2922_v46, %v2909_v50 }
 0x687   : > { %v2944_v17 = vrot.slane %v2930_v55, %v8665_v13  ;;  %v2945_v23 = vcombine.high %v2937_v56, %v2937_v56  ;;  %v2953_v63 = vrot.slane %v2937_v56, %v8665_v13  ;;  %v2928_v1 = vsub.f32 %v6460_v53, %v2923_v59 }
 0x689   : > { %v2946_v33 = vcombine.high %v2944_v17, %v2944_v17  ;;  %v2960_v49 = vrot.slane %v2944_v17, %v8665_v13  ;;  %v2967_v7 = vrot.slane %v2945_v23, %v8665_v13  ;;  %v2975_v14 = vcombine.high %v2953_v63, %v2953_v63 }
 0x68a   : > { %v2982_v6 = vrot.slane %v2953_v63, %v8672_v21  ;;  %v3028_v58 = vcombine.high %v2928_v1, %v2928_v1  ;;  %v3035_v19 = vrot.slane %v2928_v1, %v8665_v13 }
 0x68b   : > { %v2974_v15 = vrot.slane %v2946_v33, %v8665_v13  ;;  %v2976_v27 = vcombine.high %v2960_v49, %v2960_v49  ;;  %v2977_v28 = vcombine.high %v2967_v7, %v2967_v7  ;;  %v2986_v16 = vrot.slane %v2967_v7, %v8672_v21 }
 0x68c   : > { %v3042_v29 = vrot.slane %v3028_v58, %v8665_v13  ;;  %v3043_v30 = vcombine.high %v3035_v19, %v3035_v19  ;;  %v3051_v44 = vrot.slane %v3035_v19, %v8665_v13  ;;  %v3019_v34 = vmul.f32 %v2982_v6, %v8725_v26 }
 0x68d   : > { %v3020_v36 = vmul.f32 %v2986_v16, %v8731_v37  ;;  %v2990_v35 = vrot.slane %v2975_v14, %v8672_v21  ;;  %v2994_v38 = vrot.slane %v2977_v28, %v8672_v21  ;;  %v2998_v39 = vrot.slane %v2960_v49, %v8672_v21 }
 0x68e   : > { %v3044_v40 = vcombine.high %v3042_v29, %v3042_v29  ;;  %v3058_v5 = vrot.slane %v3042_v29, %v8665_v13  ;;  %v3065_v41 = vrot.slane %v3043_v30, %v8665_v13  ;;  %v3073_v43 = vcombine.high %v3051_v44, %v3051_v44 }
 0x68f   : > { %v3080_v46 = vrot.slane %v3051_v44, %v8672_v21  ;;  %v3021_v50 = vmul.f32 %v2990_v35, %v8737_v52  ;;  %v3022_v26 = vmul.f32 %v2994_v38, %v8743_v4  ;;  %v3023_v37 = vmul.f32 %v2998_v39, %v8749_v32 }
 0x690   : > { %v3072_v53 = vrot.slane %v3044_v40, %v8665_v13  ;;  %v3074_v55 = vcombine.high %v3058_v5, %v3058_v5  ;;  %v3075_v56 = vcombine.high %v3065_v41, %v3065_v41  ;;  %v3084_v59 = vrot.slane %v3065_v41, %v8672_v21 }
 0x691   : > { %v3117_v17 = vadd.f32 %v3080_v46, %v3019_v34  ;;  %v3088_v23 = vrot.slane %v3073_v43, %v8672_v21  ;;  %v3096_v63 = vrot.slane %v3058_v5, %v8672_v21  ;;  %v3002_v1 = vrot.slane %v2974_v15, %v8672_v21  ;;  %v3386_v43 = vld [vmem:[#allocation8 + $0x110] sm:$0xff] }
 0x692   : > { %v3118_v33 = vadd.f32 %v3084_v59, %v3020_v36  ;;  %v3092_v52 = vrot.slane %v3075_v56, %v8672_v21  ;;  %v3100_v4 = vrot.slane %v3072_v53, %v8672_v21  ;;  %v3006_v32 = vrot.slane %v2976_v27, %v8672_v21 }
 0x693   : > { %v3125_v49 = vmax.f32 %v3117_v17, 0.0  ;;  %v3119_v7 = vadd.f32 %v3088_v23, %v3021_v50  ;;  %v3121_v14 = vadd.f32 %v3096_v63, %v3023_v37  ;;  %v3024_v6 = vmul.f32 %v3002_v1, %v8757_v60  ;;  %v3387_v60 = vld [vmem:[#allocation8 + $0x118] sm:$0xff]  ;;  %v3389_v37 = vld [vmem:[#allocation8 + $0x128] sm:$0xff] }
 0x694   : > { %v3126_v58 = vmax.f32 %v3118_v33, 0.0  ;;  %v3120_v19 = vadd.f32 %v3092_v52, %v3022_v26  ;;  %v3025_v28 = vmul.f32 %v3006_v32, %v8765_v24  ;;  %v3104_v16 = vrot.slane %v3074_v55, %v8672_v21 }
 0x695   : > { %v3133_v29 = vmax.f32 %v1830_v61, %v3125_v49  ;;  %v3127_v30 = vmax.f32 %v3119_v7, 0.0  ;;  %v3129_v44 = vmax.f32 %v3121_v14, 0.0  ;;  %v3122_v34 = vadd.f32 %v3100_v4, %v3024_v6  ;;  %v3231_v49 = vld [vmem:[#allocation8] sm:$0xff]  ;;  %v3232_v7 = vld [vmem:[#allocation8 + $0x8] sm:$0xff] }
 0x696   : > { %v3134_v36 = vmax.f32 %v1831_v62, %v3126_v58  ;;  %v3128_v35 = vmax.f32 %v3120_v19, 0.0  ;;  %v3123_v38 = vadd.f32 %v3104_v16, %v3025_v28  ;;  %v2978_v39 = vcombine.high %v2974_v15, %v2974_v15  ;;  %v3388_v15 = vld [vmem:[#allocation8 + $0x120] sm:$0xff] }
 0x697   : > { %v3151_v27 = vrot.slane %v3133_v29, 7  ;;  %v3135_v40 = vmax.f32 %v1832_v2, %v3127_v30  ;;  %v3137_v5 = vmax.f32 %v1834_v9, %v3129_v44  ;;  %v3130_v41 = vmax.f32 %v3122_v34, 0.0  ;;  %v3233_v34 = vld [vmem:[#allocation8 + $0x10] sm:$0xff] }
 0x698   : > { %v3152_v46 = vrot.slane %v3134_v36, 7  ;;  %v3136_v24 = vmax.f32 %v1833_v8, %v3128_v35  ;;  %v3131_v50 = vmax.f32 %v3123_v38, 0.0  ;;  %v3010_v61 = vrot.slane %v2978_v39, %v8672_v21 }
 0x699   : > { %3159 = vrot.lane.b32.xlu0 %v3151_v27, %s7928_s27  ;;  %v3138_v62 = vmax.f32 %v1835_v12, %v3130_v41  ;;  %v3076_v26 = vcombine.high %v3072_v53, %v3072_v53  ;;  %v7175_v18 = vpack.c.bf16 %v3387_v60, %v3386_v43  ;;  %v3153_v8 = vrot.slane %v3135_v40, 7  ;;  %v3390_v12 = vld [vmem:[#allocation8 + $0x130] sm:$0xff]  ;;  %v3391_v53 = vld [vmem:[#allocation8 + $0x138] sm:$0xff] }
 0x69a   : > { %3161 = vrot.lane.b32.xlu1 %v3152_v46, %s7928_s27  ;;  %v3139_v2 = vmax.f32 %v1836_v20, %v3131_v50  ;;  %v3026_v9 = vmul.f32 %v3010_v61, %v8772_v47  ;;  %v3154_v56 = vrot.slane %v3136_v24, 7  ;;  %v7178_v59 = vpack.c.bf16 %v3389_v37, %v3388_v15  ;;  %v3234_v27 = vld [vmem:[#allocation8 + $0x18] sm:$0xff] }
 0x69b   : > { %v3108_v55 = vrot.slane %v3076_v26, %v8672_v21  ;;  %7176 = vmatpush1.bf16.msra.mxu0 %v7175_v18  ;;  %v3155_v25 = vrot.slane %v3137_v5, 7  ;;  %v1837_v20 = vmax.f32 %v8723_v31, 0.0  ;;  %v3156_v17 = vrot.slane %v3138_v62, 7 }
 0x69c   : > { %7177 = vmatprep.subr.bf16.mxu0 %v7926_v0  ;;  %v7181_v23 = vpack.c.bf16 %v3391_v53, %v3390_v12  ;;  %v3157_v1 = vrot.slane %v3139_v2, 7  ;;  %v7184_v35 = vpack.c.bf16 %v3232_v7, %v3231_v49  ;;  %v3236_v12 = vld [vmem:[#allocation8 + $0x28] sm:$0xff] }
 0x69d   : > { %3163 = vrot.lane.b32.xlu0 %v3153_v8, %s7928_s27  ;;  %v3124_v22 = vadd.f32 %v3108_v55, %v3026_v9  ;;  %v7187_v55 = vpack.c.bf16 %v3234_v27, %v3233_v34  ;;  %v3239_v34 = vld [vmem:[#allocation8 + $0x40] sm:$0xff] }
 0x69e   : > { %3165 = vrot.lane.b32.xlu1 %v3154_v56, %s7928_s27 }
 0x69f   : > { %v3132_v47 = vmax.f32 %v3124_v22, 0.0  ;;  %7179 = vmatpush1.bf16.msra.mxu0 %v7178_v59  ;;  %v3235_v22 = vld [vmem:[#allocation8 + $0x20] sm:$0xff] }
 0x6a0   : > { %7180 = vmatprep.subr.bf16.mxu0 %v7926_v0 }
 0x6a1   : > { %3167 = vrot.lane.b32.xlu0 %v3155_v25, %s7928_s27  ;;  %v3140_v63 = vmax.f32 %v1837_v20, %v3132_v47 }
 0x6a2   : > { %3169 = vrot.lane.b32.xlu1 %v3156_v17, %s7928_s27 }
 0x6a3   : > { %v3158_v33 = vrot.slane %v3140_v63, 7  ;;  %7182 = vmatpush1.bf16.msra.mxu0 %v7181_v23 }
 0x6a4   : > { %7183 = vmatprep.subr.bf16.mxu0 %v7926_v0 }
 0x6a5   : > { %3171 = vrot.lane.b32.xlu0 %v3157_v1, %s7928_s27 }
 0x6a6   : > { %3173 = vrot.lane.b32.xlu1 %v3158_v33, %s7928_s27  ;;  %v7190_v33 = vpack.c.bf16 %v3236_v12, %v3235_v22  ;;  %v3243_v22 = vld [vmem:[#allocation8 + $0x60] sm:$0xff]  ;;  %v3244_v12 = vld [vmem:[#allocation8 + $0x68] sm:$0xff] }
 0x70b   : > { %v3160_v31 = vpop.permute.xlu0 %3159 }
 0x70c   : > { %3183 = vst.msk [vmem:[#allocation2] sm:$0xfe] %vm576_vm2, %v3160_v31  ;;  %v3162_v52 = vpop.permute.xlu1 %3161 }
 0x70d   : > { %3184 = vst.msk [vmem:[#allocation2 + $0x8] sm:$0xfe] %vm578_vm3, %v3160_v31  ;;  %3188 = vst.msk [vmem:[#allocation2 + $0x28] sm:$0xfe] %vm578_vm3, %v3162_v52 }
 0x70e   : > { %3185 = vst.msk [vmem:[#allocation2 + $0x10] sm:$0x1] %vm580_vm4, %v3160_v31  ;;  %3189 = vst.msk [vmem:[#allocation2 + $0x30] sm:$0x1] %vm580_vm4, %v3162_v52 }
 0x70f   : > { %3186 = vst.msk [vmem:[#allocation2 + $0x18] sm:$0x1] %vm582_vm5, %v3160_v31  ;;  %3190 = vst.msk [vmem:[#allocation2 + $0x38] sm:$0x1] %vm582_vm5, %v3162_v52  ;;  %v3164_v4 = vpop.permute.xlu0 %3163 }
 0x710   : > { %3187 = vst.msk [vmem:[#allocation2 + $0x20] sm:$0xfe] %vm576_vm2, %v3162_v52  ;;  %3191 = vst.msk [vmem:[#allocation2 + $0x40] sm:$0xfe] %vm576_vm2, %v3164_v4  ;;  %v3166_v32 = vpop.permute.xlu1 %3165 }
 0x711   : > { %3192 = vst.msk [vmem:[#allocation2 + $0x48] sm:$0xfe] %vm578_vm3, %v3164_v4  ;;  %3196 = vst.msk [vmem:[#allocation2 + $0x68] sm:$0xfe] %vm578_vm3, %v3166_v32 }
 0x712   : > { %3193 = vst.msk [vmem:[#allocation2 + $0x50] sm:$0x1] %vm580_vm4, %v3164_v4  ;;  %3197 = vst.msk [vmem:[#allocation2 + $0x70] sm:$0x1] %vm580_vm4, %v3166_v32 }
 0x713   : > { %3194 = vst.msk [vmem:[#allocation2 + $0x58] sm:$0x1] %vm582_vm5, %v3164_v4  ;;  %3198 = vst.msk [vmem:[#allocation2 + $0x78] sm:$0x1] %vm582_vm5, %v3166_v32  ;;  %v3168_v14 = vpop.permute.xlu0 %3167  ;;  %v3251_v19 = vld [vmem:[#allocation2] sm:$0xfe] }
 0x714   : > { %3195 = vst.msk [vmem:[#allocation2 + $0x60] sm:$0xfe] %vm576_vm2, %v3166_v32  ;;  %v3252_v6 = vld [vmem:[#allocation2 + $0x8] sm:$0xfe]  ;;  %3199 = vst.msk [vmem:[#allocation2 + $0x80] sm:$0xfe] %vm576_vm2, %v3168_v14  ;;  %v3170_v28 = vpop.permute.xlu1 %3169 }
 0x715   : > { %3200 = vst.msk [vmem:[#allocation2 + $0x88] sm:$0xfe] %vm578_vm3, %v3168_v14  ;;  %v3318_v16 = vrot.slane %v3252_v6, 1  ;;  %v3253_v30 = vld [vmem:[#allocation2 + $0x10] sm:$0x1]  ;;  %v3315_v44 = vrot.slane %v3251_v19, 1 }
 0x716   : > { %v3254_v58 = vld [vmem:[#allocation2 + $0x18] sm:$0x1]  ;;  %3201 = vst.msk [vmem:[#allocation2 + $0x90] sm:$0x1] %vm580_vm4, %v3168_v14  ;;  %3205 = vst.msk [vmem:[#allocation2 + $0xb0] sm:$0x1] %vm580_vm4, %v3170_v28 }
 0x717   : > { %3202 = vst.msk [vmem:[#allocation2 + $0x98] sm:$0x1] %vm582_vm5, %v3168_v14  ;;  %v3319_v29 = vrot.slane %v3254_v58, 1  ;;  %3206 = vst.msk [vmem:[#allocation2 + $0xb8] sm:$0x1] %vm582_vm5, %v3170_v28  ;;  %v3316_v36 = vrot.slane %v3253_v30, 1  ;;  %v3172_v46 = vpop.permute.xlu0 %3171 }
 0x718   : > { %3203 = vst.msk [vmem:[#allocation2 + $0xa0] sm:$0xfe] %vm576_vm2, %v3170_v28  ;;  %v3256_v38 = vld [vmem:[#allocation2 + $0x28] sm:$0xfe]  ;;  %v3258_v39 = vld [vmem:[#allocation2 + $0x38] sm:$0x1]  ;;  %v3174_v37 = vpop.permute.xlu1 %3173 }
 0x719   : > { %3204 = vst.msk [vmem:[#allocation2 + $0xa8] sm:$0xfe] %vm578_vm3, %v3170_v28  ;;  %v3320_v40 = vsel %vm712_vm6, %v3318_v16, %v3319_v29  ;;  %v3324_v5 = vrot.slane %v3256_v38, 1  ;;  %v3325_v41 = vrot.slane %v3258_v39, 1  ;;  %v3255_v43 = vld [vmem:[#allocation2 + $0x20] sm:$0xfe]  ;;  %v3317_v24 = vsel %vm712_vm6, %v3315_v44, %v3316_v36 }
 0x71a   : > { %v3257_v60 = vld [vmem:[#allocation2 + $0x30] sm:$0x1]  ;;  %6461 = vmatprep.mubr.msk.f32.mxu0 %vm476_vm0, %v3320_v40  ;;  %v3321_v50 = vrot.slane %v3255_v43, 1  ;;  %v3260_v62 = vld [vmem:[#allocation2 + $0x48] sm:$0xfe]  ;;  %v3238_v32 = vld [vmem:[#allocation8 + $0x38] sm:$0xff] }
 0x71b   : > { %v3322_v61 = vrot.slane %v3257_v60, 1  ;;  %v3262_v26 = vld [vmem:[#allocation2 + $0x58] sm:$0x1]  ;;  %3207 = vst.msk [vmem:[#allocation2 + $0xc0] sm:$0xfe] %vm576_vm2, %v3172_v46  ;;  %3473 = vmatmul.mubr.f32.vlgmr.msra.gmra.mrb[20].mxu0 %v3317_v24  ;;  %v3326_v15 = vsel %vm712_vm6, %v3324_v5, %v3325_v41  ;;  %v3330_v2 = vrot.slane %v3260_v62, 1 }
 0x71c   : > { %3208 = vst.msk [vmem:[#allocation2 + $0xc8] sm:$0xfe] %vm578_vm3, %v3172_v46  ;;  %v3331_v9 = vrot.slane %v3262_v26, 1  ;;  %v3259_v18 = vld [vmem:[#allocation2 + $0x40] sm:$0xfe]  ;;  %7185 = vmatpush1.bf16.msra.mxu0 %v7184_v35  ;;  %6462 = vmatprep.mubr.msk.f32.mxu0 %vm476_vm0, %v3326_v15  ;;  %v3237_v4 = vld [vmem:[#allocation8 + $0x30] sm:$0xff] }
 0x71d   : > { %3209 = vst.msk [vmem:[#allocation2 + $0xd0] sm:$0x1] %vm580_vm4, %v3172_v46  ;;  %v3261_v8 = vld [vmem:[#allocation2 + $0x50] sm:$0x1]  ;;  %3213 = vst.msk [vmem:[#allocation2 + $0xf0] sm:$0x1] %vm580_vm4, %v3174_v37  ;;  %7186 = vmatprep.subr.bf16.mxu0 %v7926_v0  ;;  %v3323_v53 = vsel %vm712_vm6, %v3321_v50, %v3322_v61  ;;  %v7193_v29 = vpack.c.bf16 %v3238_v32, %v3237_v4 }
 0x71e   : > { %3210 = vst.msk [vmem:[#allocation2 + $0xd8] sm:$0x1] %vm582_vm5, %v3172_v46  ;;  %3214 = vst.msk [vmem:[#allocation2 + $0xf8] sm:$0x1] %vm582_vm5, %v3174_v37  ;;  %v3264_v56 = vld [vmem:[#allocation2 + $0x68] sm:$0xfe]  ;;  %v3332_v47 = vsel %vm712_vm6, %v3330_v2, %v3331_v9 }
 0x71f   : > { %3211 = vst.msk [vmem:[#allocation2 + $0xe0] sm:$0xfe] %vm576_vm2, %v3174_v37  ;;  %v3266_v59 = vld [vmem:[#allocation2 + $0x78] sm:$0x1]  ;;  %v3327_v25 = vrot.slane %v3259_v18, 1  ;;  %v3328_v20 = vrot.slane %v3261_v8, 1  ;;  %3478 = vmatmul.mubr.f32.gmra.mrb[22].mxu0 %v3323_v53 }
 0x720   : > { %3212 = vst.msk [vmem:[#allocation2 + $0xe8] sm:$0xfe] %vm578_vm3, %v3174_v37  ;;  %v3336_v17 = vrot.slane %v3264_v56, 1  ;;  %v3337_v23 = vrot.slane %v3266_v59, 1  ;;  %v3263_v63 = vld [vmem:[#allocation2 + $0x60] sm:$0xfe]  ;;  %7188 = vmatpush1.bf16.msra.mxu0 %v7187_v55  ;;  %6463 = vmatprep.mubr.msk.f32.mxu0 %vm476_vm0, %v3332_v47 }
 0x721   : > { %v3265_v1 = vld [vmem:[#allocation2 + $0x70] sm:$0x1]  ;;  %v3268_v31 = vld [vmem:[#allocation2 + $0x88] sm:$0xfe]  ;;  %v3270_v52 = vld [vmem:[#allocation2 + $0x98] sm:$0x1]  ;;  %7189 = vmatprep.subr.bf16.mxu0 %v7926_v0  ;;  %v3329_v49 = vsel %vm712_vm6, %v3327_v25, %v3328_v20 }
 0x722   : > { %v3333_v7 = vrot.slane %v3263_v63, 1  ;;  %v3334_v14 = vrot.slane %v3265_v1, 1  ;;  %v3338_v6 = vsel %vm712_vm6, %v3336_v17, %v3337_v23  ;;  %v3342_v58 = vrot.slane %v3268_v31, 1  ;;  %v3267_v28 = vld [vmem:[#allocation2 + $0x80] sm:$0xfe]  ;;  %v3240_v36 = vld [vmem:[#allocation8 + $0x48] sm:$0xff] }
 0x723   : > { %3483 = vmatmul.mubr.f32.gmra.mrb[24].mxu0 %v3329_v49  ;;  %v3343_v19 = vrot.slane %v3270_v52, 1  ;;  %v3269_v16 = vld [vmem:[#allocation2 + $0x90] sm:$0x1]  ;;  %v3272_v30 = vld [vmem:[#allocation2 + $0xa8] sm:$0xfe]  ;;  %v3339_v38 = vrot.slane %v3267_v28, 1  ;;  %v7196_v60 = vpack.c.bf16 %v3240_v36, %v3239_v34 }
 0x724   : > { %7191 = vmatpush1.bf16.msra.mxu0 %v7190_v33  ;;  %6464 = vmatprep.mubr.msk.f32.mxu0 %vm476_vm0, %v3338_v6  ;;  %v3274_v44 = vld [vmem:[#allocation2 + $0xb8] sm:$0x1]  ;;  %v3335_v35 = vsel %vm712_vm6, %v3333_v7, %v3334_v14  ;;  %v3340_v39 = vrot.slane %v3269_v16, 1  ;;  %v3348_v40 = vrot.slane %v3272_v30, 1  ;;  %v3271_v41 = vld [vmem:[#allocation2 + $0xa0] sm:$0xfe]  ;;  %v7202_v33 = vpack.c.bf16 %v3244_v12, %v3243_v22 }
 0x725   : > { %7192 = vmatprep.subr.bf16.mxu0 %v7926_v0  ;;  %v3344_v27 = vsel %vm712_vm6, %v3342_v58, %v3343_v19  ;;  %v3349_v5 = vrot.slane %v3274_v44, 1  ;;  %v3273_v43 = vld [vmem:[#allocation2 + $0xb0] sm:$0x1]  ;;  %v3276_v46 = vld [vmem:[#allocation2 + $0xc8] sm:$0xfe]  ;;  %v3242_v61 = vld [vmem:[#allocation8 + $0x58] sm:$0xff] }
 0x726   : > { %v3278_v24 = vld [vmem:[#allocation2 + $0xd8] sm:$0x1]  ;;  %v3241_v50 = vld [vmem:[#allocation8 + $0x50] sm:$0xff]  ;;  %v3341_v62 = vsel %vm712_vm6, %v3339_v38, %v3340_v39  ;;  %v3345_v26 = vrot.slane %v3271_v41, 1  ;;  %v3346_v15 = vrot.slane %v3273_v43, 1  ;;  %v3354_v2 = vrot.slane %v3276_v46, 1 }
 0x727   : > { %3488 = vmatmul.mubr.f32.gmra.mrb[26].mxu0 %v3335_v35  ;;  %v3350_v37 = vsel %vm712_vm6, %v3348_v40, %v3349_v5  ;;  %v3355_v9 = vrot.slane %v3278_v24, 1  ;;  %v3275_v18 = vld [vmem:[#allocation2 + $0xc0] sm:$0xfe]  ;;  %v3277_v8 = vld [vmem:[#allocation2 + $0xd0] sm:$0x1]  ;;  %v7199_v55 = vpack.c.bf16 %v3242_v61, %v3241_v50  ;;  %v3246_v52 = vld [vmem:[#allocation8 + $0x78] sm:$0xff] }
 0x728   : > { %7194 = vmatpush1.bf16.msra.mxu0 %v7193_v29  ;;  %6465 = vmatprep.mubr.msk.f32.mxu0 %vm476_vm0, %v3344_v27  ;;  %v3280_v56 = vld [vmem:[#allocation2 + $0xe8] sm:$0xfe]  ;;  %v3282_v59 = vld [vmem:[#allocation2 + $0xf8] sm:$0x1]  ;;  %v3347_v53 = vsel %vm712_vm6, %v3345_v26, %v3346_v15  ;;  %v3351_v25 = vrot.slane %v3275_v18, 1  ;;  %v3352_v20 = vrot.slane %v3277_v8, 1 }
 0x729   : > { %7195 = vmatprep.subr.bf16.mxu0 %v7926_v0  ;;  %v3356_v47 = vsel %vm712_vm6, %v3354_v2, %v3355_v9  ;;  %v3360_v17 = vrot.slane %v3280_v56, 1  ;;  %v3361_v23 = vrot.slane %v3282_v59, 1  ;;  %v3279_v63 = vld [vmem:[#allocation2 + $0xe0] sm:$0xfe]  ;;  %v3281_v1 = vld [vmem:[#allocation2 + $0xf0] sm:$0x1] }
 0x72a   : > { %v3245_v31 = vld [vmem:[#allocation8 + $0x70] sm:$0xff]  ;;  %v3353_v4 = vsel %vm712_vm6, %v3351_v25, %v3352_v20  ;;  %v3357_v32 = vrot.slane %v3279_v63, 1  ;;  %v3358_v49 = vrot.slane %v3281_v1, 1  ;;  %v3247_v6 = vld [vmem:[#allocation8 + $0x80] sm:$0xff]  ;;  %v3248_v58 = vld [vmem:[#allocation8 + $0x88] sm:$0xff] }
 0x72b   : > { %3493 = vmatmul.mubr.f32.gmra.mrb[28].mxu0 %v3341_v62  ;;  %v3362_v7 = vsel %vm712_vm6, %v3360_v17, %v3361_v23  ;;  %v7205_v14 = vpack.c.bf16 %v3246_v52, %v3245_v31  ;;  %v3216_v28 = vld [vmem:[#allocation2 + $0x8] sm:$0xff]  ;;  %v7208_v16 = vpack.c.bf16 %v3248_v58, %v3247_v6  ;;  %v3249_v29 = vld [vmem:[#allocation8 + $0x90] sm:$0xff]  ;;  %v3250_v30 = vld [vmem:[#allocation8 + $0x98] sm:$0xff] }
 0x72c   : > { %7197 = vmatpush1.bf16.msra.mxu0 %v7196_v60  ;;  %6466 = vmatprep.mubr.msk.f32.mxu0 %vm476_vm0, %v3350_v37  ;;  %v3359_v19 = vsel %vm712_vm6, %v3357_v32, %v3358_v49  ;;  %v7211_v44 = vpack.c.bf16 %v3250_v30, %v3249_v29  ;;  %v3763_v34 = vld [vmem:[#allocation8 + $0x140] sm:$0xff]  ;;  %v3764_v36 = vld [vmem:[#allocation8 + $0x148] sm:$0xff]  ;;  %v3765_v38 = vld [vmem:[#allocation8 + $0x150] sm:$0xff] }
 0x72d   : > { %7198 = vmatprep.subr.bf16.mxu0 %v7926_v0  ;;  %v7214_v35 = vpack.c.bf16 %v3764_v36, %v3763_v34  ;;  %v3766_v39 = vld [vmem:[#allocation8 + $0x158] sm:$0xff]  ;;  %v3215_v27 = vld [vmem:[#allocation2] sm:$0xff]  ;;  %v3218_v40 = vld [vmem:[#allocation2 + $0x28] sm:$0xff] }
 0x72e   : > { %v7217_v5 = vpack.c.bf16 %v3766_v39, %v3765_v38  ;;  %v3767_v41 = vld [vmem:[#allocation8 + $0x160] sm:$0xff]  ;;  %v3768_v43 = vld [vmem:[#allocation8 + $0x168] sm:$0xff]  ;;  %v3769_v50 = vld [vmem:[#allocation8 + $0x170] sm:$0xff] }
 0x72f   : > { %3498 = vmatmul.mubr.f32.gmra.mrb[30].mxu0 %v3347_v53  ;;  %v3217_v60 = vld [vmem:[#allocation2 + $0x20] sm:$0xff]  ;;  %v3220_v46 = vld [vmem:[#allocation2 + $0x48] sm:$0xff]  ;;  %v7220_v24 = vpack.c.bf16 %v3768_v43, %v3767_v41  ;;  %v3770_v61 = vld [vmem:[#allocation8 + $0x178] sm:$0xff] }
 0x730   : > { %7200 = vmatpush1.bf16.msra.mxu0 %v7199_v55  ;;  %6467 = vmatprep.mubr.msk.f32.mxu0 %vm476_vm0, %v3356_v47  ;;  %v3219_v62 = vld [vmem:[#allocation2 + $0x40] sm:$0xff]  ;;  %v3222_v26 = vld [vmem:[#allocation2 + $0x68] sm:$0xff]  ;;  %v7223_v15 = vpack.c.bf16 %v3770_v61, %v3769_v50  ;;  %v3773_v55 = vld [vmem:[#allocation8 + $0x190] sm:$0xff] }
 0x731   : > { %7201 = vmatprep.subr.bf16.mxu0 %v7926_v0  ;;  %v3771_v37 = vld [vmem:[#allocation8 + $0x180] sm:$0xff]  ;;  %v3772_v2 = vld [vmem:[#allocation8 + $0x188] sm:$0xff]  ;;  %v3774_v56 = vld [vmem:[#allocation8 + $0x198] sm:$0xff] }
 0x732   : > { %v3221_v9 = vld [vmem:[#allocation2 + $0x60] sm:$0xff]  ;;  %v3224_v18 = vld [vmem:[#allocation2 + $0x88] sm:$0xff]  ;;  %v7226_v8 = vpack.c.bf16 %v3772_v2, %v3771_v37  ;;  %v7229_v12 = vpack.c.bf16 %v3774_v56, %v3773_v55  ;;  %v3645_v63 = vld [vmem:[#allocation2 + $0x18] sm:$0x3] }
 0x733   : > { %3503 = vmatmul.mubr.f32.gmra.mrb[32].mxu0 %v3353_v4  ;;  %v3223_v59 = vld [vmem:[#allocation2 + $0x80] sm:$0xff]  ;;  %v3226_v22 = vld [vmem:[#allocation2 + $0xa8] sm:$0xff]  ;;  %v3777_v1 = vld [vmem:[#allocation8 + $0x1b0] sm:$0xff]  ;;  %v3710_v32 = vrot.slane %v3645_v63, 2 }
 0x734   : > { %7203 = vmatpush1.bf16.msra.mxu0 %v7202_v33  ;;  %6468 = vmatprep.mubr.msk.f32.mxu0 %vm476_vm0, %v3362_v7  ;;  %v3775_v53 = vld [vmem:[#allocation8 + $0x1a0] sm:$0xff]  ;;  %v3776_v25 = vld [vmem:[#allocation8 + $0x1a8] sm:$0xff]  ;;  %v3778_v33 = vld [vmem:[#allocation8 + $0x1b8] sm:$0xff] }
 0x735   : > { %7204 = vmatprep.subr.bf16.mxu0 %v7926_v0  ;;  %v3225_v20 = vld [vmem:[#allocation2 + $0xa0] sm:$0xff]  ;;  %v3228_v47 = vld [vmem:[#allocation2 + $0xc8] sm:$0xff]  ;;  %v7232_v17 = vpack.c.bf16 %v3776_v25, %v3775_v53  ;;  %v7235_v49 = vpack.c.bf16 %v3778_v33, %v3777_v1  ;;  %v3644_v30 = vld [vmem:[#allocation2 + $0x10] sm:$0x3] }
 0x736   : > { %v3643_v23 = vld [vmem:[#allocation2 + $0x8] sm:$0xfc]  ;;  %v3227_v31 = vld [vmem:[#allocation2 + $0xc0] sm:$0xff]  ;;  %v3649_v36 = vld [vmem:[#allocation2 + $0x38] sm:$0x3]  ;;  %v3707_v38 = vrot.slane %v3644_v30, 2 }
 0x737   : > { %3508 = vmatmul.mubr.f32.gmra.mrb[34].mxu0 %v3359_v19  ;;  %v3230_v52 = vld [vmem:[#allocation2 + $0xe8] sm:$0xff]  ;;  %v3709_v4 = vrot.slane %v3643_v23, 2  ;;  %v3779_v7 = vld [vmem:[#allocation8 + $0x1c0] sm:$0xff]  ;;  %v3653_v43 = vld [vmem:[#allocation2 + $0x58] sm:$0x3] }
 0x738   : > { %7206 = vmatpush1.bf16.msra.mxu0 %v7205_v14  ;;  %6469 = vmatprep.mubr.msk.f32.mxu0 %vm476_vm0, %v3216_v28  ;;  %v3780_v14 = vld [vmem:[#allocation8 + $0x1c8] sm:$0xff]  ;;  %v3229_v6 = vld [vmem:[#allocation2 + $0xe0] sm:$0xff]  ;;  %v3781_v28 = vld [vmem:[#allocation8 + $0x1d0] sm:$0xff] }
 0x739   : > { %7207 = vmatprep.subr.bf16.mxu0 %v7926_v0  ;;  %v3711_v58 = vsel %vm1104_vm7, %v3709_v4, %v3710_v32  ;;  %v7238_v19 = vpack.c.bf16 %v3780_v14, %v3779_v7  ;;  %v3642_v29 = vld [vmem:[#allocation2] sm:$0xfc]  ;;  %v3647_v34 = vld [vmem:[#allocation2 + $0x28] sm:$0xfc]  ;;  %v3657_v2 = vld [vmem:[#allocation2 + $0x78] sm:$0x3] }
 0x73a   : > { %v3715_v39 = vrot.slane %v3647_v34, 2  ;;  %v3651_v41 = vld [vmem:[#allocation2 + $0x48] sm:$0xfc]  ;;  %v3661_v25 = vld [vmem:[#allocation2 + $0x98] sm:$0x3] }
 0x73b   : > { %v3721_v61 = vrot.slane %v3651_v41, 2  ;;  %v3655_v37 = vld [vmem:[#allocation2 + $0x68] sm:$0xfc]  ;;  %v3734_v63 = vrot.slane %v3661_v25, 2  ;;  %v3658_v1 = vld [vmem:[#allocation2 + $0x80] sm:$0xfc] }
 0x73c   : > { %7209 = vmatpush1.bf16.msra.mxu0 %v7208_v16  ;;  %v3782_v16 = vld [vmem:[#allocation8 + $0x1d8] sm:$0xff]  ;;  %v3727_v56 = vrot.slane %v3655_v37, 2  ;;  %v3659_v53 = vld [vmem:[#allocation2 + $0x88] sm:$0xfc]  ;;  %v3660_v33 = vld [vmem:[#allocation2 + $0x90] sm:$0x3] }
 0x73d   : > { %7210 = vmatprep.subr.bf16.mxu0 %v7926_v0  ;;  %v3733_v23 = vrot.slane %v3659_v53, 2  ;;  %v3730_v4 = vrot.slane %v3658_v1, 2  ;;  %v3731_v32 = vrot.slane %v3660_v33, 2 }
 0x740   : > { %7212 = vmatpush1.bf16.msra.mxu0 %v7211_v44  ;;  %v7241_v44 = vpack.c.bf16 %v3782_v16, %v3781_v28  ;;  %v3669_v28 = vld [vmem:[#allocation2 + $0xd8] sm:$0x3] }
 0x741   : > { %7213 = vmatprep.subr.bf16.mxu0 %v7926_v0  ;;  %v3746_v34 = vrot.slane %v3669_v28, 2 }
 0x743   : > { %3602 = vmatmul.mubr.f32.vlgmr.msra.gmra.mrb[20].mxu0 %v3215_v27  ;;  %v3716_v27 = vrot.slane %v3649_v36, 2  ;;  %v3666_v36 = vld [vmem:[#allocation2 + $0xc0] sm:$0xfc] }
 0x744   : > { %6470 = vmatprep.mubr.msk.f32.mxu0 %vm476_vm0, %v3218_v40  ;;  %7215 = vmatpush1.bf16.msra.mxu0 %v7214_v35  ;;  %v3706_v35 = vrot.slane %v3642_v29, 2  ;;  %v3646_v40 = vld [vmem:[#allocation2 + $0x20] sm:$0xfc] }
 0x745   : > { %7216 = vmatprep.subr.bf16.mxu0 %v7926_v0  ;;  %v3717_v50 = vsel %vm1104_vm7, %v3715_v39, %v3716_v27  ;;  %v3673_v39 = vld [vmem:[#allocation2 + $0xf8] sm:$0x3]  ;;  %v3742_v27 = vrot.slane %v3666_v36, 2 }
 0x747   : > { %3607 = vmatmul.mubr.f32.gmra.mrb[22].mxu0 %v3217_v60  ;;  %v3708_v60 = vsel %vm1104_vm7, %v3706_v35, %v3707_v38  ;;  %v3668_v35 = vld [vmem:[#allocation2 + $0xd0] sm:$0x3]  ;;  %v3671_v38 = vld [vmem:[#allocation2 + $0xe8] sm:$0xfc] }
 0x748   : > { %6471 = vmatprep.mubr.msk.f32.mxu0 %vm476_vm0, %v3220_v46  ;;  %7218 = vmatpush1.bf16.msra.mxu0 %v7217_v5  ;;  %v3648_v5 = vld [vmem:[#allocation2 + $0x30] sm:$0x3]  ;;  %v3712_v46 = vrot.slane %v3646_v40, 2  ;;  %v3743_v40 = vrot.slane %v3668_v35, 2  ;;  %v3751_v41 = vrot.slane %v3671_v38, 2 }
 0x749   : > { %7219 = vmatprep.subr.bf16.mxu0 %v7926_v0 }
 0x74b   : > { %3612 = vmatmul.mubr.f32.gmra.mrb[24].mxu0 %v3219_v62  ;;  %v3722_v62 = vrot.slane %v3653_v43, 2  ;;  %v3752_v43 = vrot.slane %v3673_v39, 2 }
 0x74c   : > { %6472 = vmatprep.mubr.msk.f32.mxu0 %vm476_vm0, %v3222_v26  ;;  %7221 = vmatpush1.bf16.msra.mxu0 %v7220_v24  ;;  %v3713_v24 = vrot.slane %v3648_v5, 2  ;;  %v3650_v26 = vld [vmem:[#allocation2 + $0x40] sm:$0xfc] }
 0x74d   : > { %7222 = vmatprep.subr.bf16.mxu0 %v7926_v0  ;;  %v3723_v55 = vsel %vm1104_vm7, %v3721_v61, %v3722_v62  ;;  %v3753_v61 = vsel %vm1104_vm7, %v3751_v41, %v3752_v43 }
 0x74f   : > { %3617 = vmatmul.mubr.f32.gmra.mrb[26].mxu0 %v3221_v9  ;;  %v3714_v9 = vsel %vm1104_vm7, %v3712_v46, %v3713_v24  ;;  %v3672_v46 = vld [vmem:[#allocation2 + $0xf0] sm:$0x3] }
 0x750   : > { %6473 = vmatprep.mubr.msk.f32.mxu0 %vm476_vm0, %v3224_v18  ;;  %7224 = vmatpush1.bf16.msra.mxu0 %v7223_v15  ;;  %v3652_v15 = vld [vmem:[#allocation2 + $0x50] sm:$0x3]  ;;  %v3718_v18 = vrot.slane %v3650_v26, 2 }
 0x751   : > { %7225 = vmatprep.subr.bf16.mxu0 %v7926_v0 }
 0x753   : > { %3622 = vmatmul.mubr.f32.gmra.mrb[28].mxu0 %v3223_v59  ;;  %v3728_v59 = vrot.slane %v3657_v2, 2 }
 0x754   : > { %6474 = vmatprep.mubr.msk.f32.mxu0 %vm476_vm0, %v3226_v22  ;;  %7227 = vmatpush1.bf16.msra.mxu0 %v7226_v8  ;;  %v3719_v8 = vrot.slane %v3652_v15, 2  ;;  %v3654_v22 = vld [vmem:[#allocation2 + $0x60] sm:$0xfc] }
 0x755   : > { %7228 = vmatprep.subr.bf16.mxu0 %v7926_v0 }
 0x757   : > { %3627 = vmatmul.mubr.f32.gmra.mrb[30].mxu0 %v3225_v20  ;;  %v3724_v20 = vrot.slane %v3654_v22, 2 }
 0x758   : > { %6475 = vmatprep.mubr.msk.f32.mxu0 %vm476_vm0, %v3228_v47  ;;  %7230 = vmatpush1.bf16.msra.mxu0 %v7229_v12  ;;  %v3656_v12 = vld [vmem:[#allocation2 + $0x70] sm:$0x3] }
 0x759   : > { %7231 = vmatprep.subr.bf16.mxu0 %v7926_v0  ;;  %v3725_v47 = vrot.slane %v3656_v12, 2 }
 0x75b   : > { %3632 = vmatmul.mubr.f32.gmra.mrb[32].mxu0 %v3227_v31  ;;  %v3663_v31 = vld [vmem:[#allocation2 + $0xa8] sm:$0xfc] }
 0x75c   : > { %6476 = vmatprep.mubr.msk.f32.mxu0 %vm476_vm0, %v3230_v52  ;;  %7233 = vmatpush1.bf16.msra.mxu0 %v7232_v17  ;;  %v3729_v17 = vsel %vm1104_vm7, %v3727_v56, %v3728_v59  ;;  %v3665_v52 = vld [vmem:[#allocation2 + $0xb8] sm:$0x3]  ;;  %v3739_v7 = vrot.slane %v3663_v31, 2 }
 0x75d   : > { %7234 = vmatprep.subr.bf16.mxu0 %v7926_v0  ;;  %v3740_v14 = vrot.slane %v3665_v52, 2 }
 0x75f   : > { %3637 = vmatmul.mubr.f32.gmra.mrb[34].mxu0 %v3229_v6  ;;  %v3662_v6 = vld [vmem:[#allocation2 + $0xa0] sm:$0xfc]  ;;  %v3741_v30 = vsel %vm1104_vm7, %v3739_v7, %v3740_v14 }
 0x760   : > { %7236 = vmatpush1.bf16.msra.mxu0 %v7235_v49  ;;  %6477 = vmatprep.mubr.msk.f32.mxu0 %vm476_vm0, %v3711_v58  ;;  %v3735_v49 = vsel %vm1104_vm7, %v3733_v23, %v3734_v63  ;;  %v3664_v58 = vld [vmem:[#allocation2 + $0xb0] sm:$0x3]  ;;  %v3736_v16 = vrot.slane %v3662_v6, 2 }
 0x761   : > { %7237 = vmatprep.subr.bf16.mxu0 %v7926_v0  ;;  %v3737_v29 = vrot.slane %v3664_v58, 2 }
 0x764   : > { %7239 = vmatpush1.bf16.msra.mxu0 %v7238_v19  ;;  %v3667_v19 = vld [vmem:[#allocation2 + $0xc8] sm:$0xfc] }
 0x765   : > { %7240 = vmatprep.subr.bf16.mxu0 %v7926_v0 }
 0x768   : > { %7242 = vmatpush1.bf16.msra.mxu0 %v7241_v44  ;;  %v3745_v44 = vrot.slane %v3667_v19, 2 }
 0x769   : > { %7366 = vmatprep.subr.bf16.mxu0 %v8342_v42 }
 0x76a   : > { %v3747_v5 = vsel %vm1104_vm7, %v3745_v44, %v3746_v34 }
 0x76b   : > { %3864 = vmatmul.mubr.f32.vlgmr.msra.gmra.mrb[20].mxu0 %v3708_v60  ;;  %v3670_v60 = vld [vmem:[#allocation2 + $0xe0] sm:$0xfc] }
 0x76c   : > { %6478 = vmatprep.mubr.msk.f32.mxu0 %vm476_vm0, %v3717_v50  ;;  %7368 = vmatpush3.bf16.msra.mxu0 %v8342_v42  ;;  %v3720_v42 = vsel %vm1104_vm7, %v3718_v18, %v3719_v8  ;;  %v3748_v24 = vrot.slane %v3670_v60, 2  ;;  %v3749_v50 = vrot.slane %v3672_v46, 2 }
 0x76d   : > { %7370 = vmatprep.subr.bf16.mxu0 %v8353_v45 }
 0x76e   : > { %v3750_v62 = vsel %vm1104_vm7, %v3748_v24, %v3749_v50 }
 0x76f   : > { %3869 = vmatmul.mubr.f32.gmra.mrb[22].mxu0 %v3714_v9 }
 0x770   : > { %6479 = vmatprep.mubr.msk.f32.mxu0 %vm476_vm0, %v3723_v55  ;;  %7372 = vmatpush3.bf16.msra.mxu0 %v8353_v45  ;;  %v3726_v45 = vsel %vm1104_vm7, %v3724_v20, %v3725_v47 }
 0x771   : > { %7374 = vmatprep.subr.bf16.mxu0 %v8364_v48 }
 0x773   : > { %3874 = vmatmul.mubr.f32.gmra.mrb[24].mxu0 %v3720_v42 }
 0x774   : > { %6480 = vmatprep.mubr.msk.f32.mxu0 %vm476_vm0, %v3729_v17  ;;  %7376 = vmatpush3.bf16.msra.mxu0 %v8364_v48  ;;  %v3732_v48 = vsel %vm1104_vm7, %v3730_v4, %v3731_v32 }
 0x775   : > { %7378 = vmatprep.subr.bf16.mxu0 %v8375_v51 }
 0x777   : > { %3879 = vmatmul.mubr.f32.gmra.mrb[26].mxu0 %v3726_v45 }
 0x778   : > { %6481 = vmatprep.mubr.msk.f32.mxu0 %vm476_vm0, %v3735_v49  ;;  %7380 = vmatpush3.bf16.msra.mxu0 %v8375_v51  ;;  %v3738_v51 = vsel %vm1104_vm7, %v3736_v16, %v3737_v29 }
 0x779   : > { %7382 = vmatprep.subr.bf16.mxu0 %v8387_v54 }
 0x77b   : > { %3884 = vmatmul.mubr.f32.gmra.mrb[28].mxu0 %v3732_v48 }
 0x77c   : > { %6482 = vmatprep.mubr.msk.f32.mxu0 %vm476_vm0, %v3741_v30  ;;  %7384 = vmatpush3.bf16.msra.mxu0 %v8387_v54  ;;  %v3744_v54 = vsel %vm1104_vm7, %v3742_v27, %v3743_v40 }
 0x77d   : > { %7386 = vmatprep.subr.bf16.mxu0 %v8399_v57 }
 0x77f   : > { %3889 = vmatmul.mubr.f32.gmra.mrb[30].mxu0 %v3738_v51 }
 0x780   : > { %6483 = vmatprep.mubr.msk.f32.mxu0 %vm476_vm0, %v3747_v5  ;;  %7388 = vmatpush3.bf16.msra.mxu0 %v8399_v57  ;;  %v8994_v57 = vld [vmem:[%s9426_s8] sm:$0xf] }
 0x781   : > { %7390 = vmatprep.subr.bf16.mxu0 %v8415_v3 }
 0x783   : > { %3894 = vmatmul.mubr.f32.gmra.mrb[32].mxu0 %v3744_v54 }
 0x784   : > { %6484 = vmatprep.mubr.msk.f32.mxu0 %vm476_vm0, %v3753_v61  ;;  %7392 = vmatpush3.bf16.msra.mxu0 %v8415_v3 }
 0x785   : > { %7394 = vmatprep.subr.bf16.mxu0 %v8431_v10 }
 0x787   : > { %3899 = vmatmul.mubr.f32.gmra.mrb[34].mxu0 %v3750_v62 }
 0x788   : > { %7396 = vmatpush3.bf16.msra.mxu0 %v8431_v10 }
 0x789   : > { %6904 = vmatprep.subr.msk.mxu0 %vm1544_vm15, %v8994_v57 }
 0x83e   : > { %v8998_v26 = vpop.f32.mrb[20].mxu0 }
 0x83f   : > { %v3912_v15 = vrot.slane %v8998_v26, 4  ;;  %v3960_v3 = vmul.f32 %v8998_v26, %v8998_v26  ;;  %v3867_v37 = vpop.f32.mrb[21].mxu0 }
 0x841   : > { %v3913_v2 = vadd.f32 %v3912_v15, %v8998_v26  ;;  %v3968_v9 = vrot.slane %v3960_v3, 4 }
 0x842   : > { %v9004_v10 = vpop.f32.mrb[22].mxu0 }
 0x843   : > { %v3914_v18 = vrot.slane %v3913_v2, 2  ;;  %v3969_v8 = vadd.f32 %v3968_v9, %v3960_v3  ;;  %v3918_v55 = vrot.slane %v9004_v10, 4  ;;  %v3961_v56 = vmul.f32 %v9004_v10, %v9004_v10  ;;  %v3872_v59 = vpop.f32.mrb[23].mxu0 }
 0x845   : > { %v3915_v22 = vadd.f32 %v3914_v18, %v3913_v2  ;;  %v3970_v12 = vrot.slane %v3969_v8, 2  ;;  %v3919_v53 = vadd.f32 %v3918_v55, %v9004_v10  ;;  %v3974_v25 = vrot.slane %v3961_v56, 4 }
 0x846   : > { %v9010_v42 = vpop.f32.mrb[24].mxu0 }
 0x847   : > { %v3971_v20 = vadd.f32 %v3970_v12, %v3969_v8  ;;  %v3920_v47 = vrot.slane %v3919_v53, 2  ;;  %v3975_v17 = vadd.f32 %v3974_v25, %v3961_v56  ;;  %v3877_v23 = vpop.f32.mrb[25].mxu0  ;;  %v3924_v63 = vrot.slane %v9010_v42, 4 }
 0x848   : > { %v3962_v1 = vmul.f32 %v9010_v42, %v9010_v42  ;;  %v3916_v33 = vrot.slane %v3915_v22, 1 }
 0x849   : > { %v3921_v31 = vadd.f32 %v3920_v47, %v3919_v53  ;;  %v3976_v52 = vrot.slane %v3975_v17, 2  ;;  %v3972_v45 = vrot.slane %v3971_v20, 1  ;;  %v3925_v4 = vadd.f32 %v3924_v63, %v9010_v42 }
 0x84a   : > { %v3980_v32 = vrot.slane %v3962_v1, 4  ;;  %v9016_v49 = vpop.f32.mrb[26].mxu0  ;;  %v3917_v16 = vadd.f32 %v3916_v33, %v3915_v22 }
 0x84b   : > { %v3922_v7 = vrot.slane %v3921_v31, 1  ;;  %v3977_v14 = vadd.f32 %v3976_v52, %v3975_v17  ;;  %v3930_v6 = vrot.slane %v9016_v49, 4  ;;  %v3882_v58 = vpop.f32.mrb[27].mxu0  ;;  %v3926_v19 = vrot.slane %v3925_v4, 2 }
 0x84c   : > { %v3981_v28 = vadd.f32 %v3980_v32, %v3962_v1  ;;  %v3963_v48 = vmul.f32 %v9016_v49, %v9016_v49  ;;  %v3973_v34 = vadd.f32 %v3972_v45, %v3971_v20 }
 0x84d   : > { %v3923_v29 = vadd.f32 %v3922_v7, %v3921_v31  ;;  %v3978_v30 = vrot.slane %v3977_v14, 1  ;;  %v3931_v44 = vadd.f32 %v3930_v6, %v9016_v49  ;;  %v3927_v36 = vadd.f32 %v3926_v19, %v3925_v4 }
 0x84e   : > { %v3982_v35 = vrot.slane %v3981_v28, 2  ;;  %v3986_v38 = vrot.slane %v3963_v48, 4  ;;  %v9022_v39 = vpop.f32.mrb[28].mxu0 }
 0x84f   : > { %v3979_v51 = vadd.f32 %v3978_v30, %v3977_v14  ;;  %v4024_v27 = vsel %vm1423_vm8, %v3923_v29, %v3917_v16  ;;  %v3932_v40 = vrot.slane %v3931_v44, 2  ;;  %v3936_v5 = vrot.slane %v9022_v39, 4  ;;  %v3887_v41 = vpop.f32.mrb[29].mxu0 }
 0x850   : > { %v3928_v43 = vrot.slane %v3927_v36, 1  ;;  %v3983_v60 = vadd.f32 %v3982_v35, %v3981_v28  ;;  %v3987_v46 = vadd.f32 %v3986_v38, %v3963_v48  ;;  %v3964_v54 = vmul.f32 %v9022_v39, %v9022_v39 }
 0x851   : > { %v4040_v24 = vsel %vm1423_vm8, %v3979_v51, %v3973_v34  ;;  %v3933_v50 = vadd.f32 %v3932_v40, %v3931_v44  ;;  %v3937_v61 = vadd.f32 %v3936_v5, %v9022_v39 }
 0x852   : > { %v3929_v62 = vadd.f32 %v3928_v43, %v3927_v36  ;;  %v3984_v15 = vrot.slane %v3983_v60, 1  ;;  %v3988_v3 = vrot.slane %v3987_v46, 2  ;;  %v3992_v37 = vrot.slane %v3964_v54, 4  ;;  %v9030_v2 = vpop.f32.mrb[30].mxu0 }
 0x853   : > { %v3934_v9 = vrot.slane %v3933_v50, 1  ;;  %v3938_v18 = vrot.slane %v3937_v61, 2  ;;  %v3942_v8 = vrot.slane %v9030_v2, 4  ;;  %v3965_v55 = vmul.f32 %v9030_v2, %v9030_v2  ;;  %v3892_v56 = vpop.f32.mrb[31].mxu0 }
 0x854   : > { %v3985_v59 = vadd.f32 %v3984_v15, %v3983_v60  ;;  %v3989_v22 = vadd.f32 %v3988_v3, %v3987_v46  ;;  %v3993_v12 = vadd.f32 %v3992_v37, %v3964_v54  ;;  %v4025_v53 = vsel %vm1425_vm9, %v3929_v62, %v4024_v27 }
 0x855   : > { %v3935_v25 = vadd.f32 %v3934_v9, %v3933_v50  ;;  %v3939_v20 = vadd.f32 %v3938_v18, %v3937_v61  ;;  %v3943_v47 = vadd.f32 %v3942_v8, %v9030_v2  ;;  %v3998_v17 = vrot.slane %v3965_v55, 4 }
 0x856   : > { %v4041_v23 = vsel %vm1425_vm9, %v3985_v59, %v4040_v24  ;;  %v3990_v63 = vrot.slane %v3989_v22, 1  ;;  %v3994_v1 = vrot.slane %v3993_v12, 2  ;;  %v9038_v33 = vpop.f32.mrb[32].mxu0 }
 0x857   : > { %v3940_v31 = vrot.slane %v3939_v20, 1  ;;  %v3944_v52 = vrot.slane %v3943_v47, 2  ;;  %v3999_v45 = vadd.f32 %v3998_v17, %v3965_v55  ;;  %v3948_v4 = vrot.slane %v9038_v33, 4  ;;  %v3897_v32 = vpop.f32.mrb[33].mxu0 }
 0x858   : > { %v3991_v7 = vadd.f32 %v3990_v63, %v3989_v22  ;;  %v3995_v14 = vadd.f32 %v3994_v1, %v3993_v12  ;;  %v3966_v6 = vmul.f32 %v9038_v33, %v9038_v33  ;;  %v4026_v58 = vsel %vm1427_vm10, %v3935_v25, %v4025_v53 }
 0x859   : > { %v3941_v19 = vadd.f32 %v3940_v31, %v3939_v20  ;;  %v3945_v28 = vadd.f32 %v3944_v52, %v3943_v47  ;;  %v4000_v48 = vrot.slane %v3999_v45, 2  ;;  %v3949_v16 = vadd.f32 %v3948_v4, %v9038_v33 }
 0x85a   : > { %v3996_v29 = vrot.slane %v3995_v14, 1  ;;  %v4004_v30 = vrot.slane %v3966_v6, 4  ;;  %v9045_v44 = vpop.f32.mrb[34].mxu0  ;;  %v4042_v34 = vsel %vm1427_vm10, %v3991_v7, %v4041_v23 }
 0x85b   : > { %v3946_v36 = vrot.slane %v3945_v28, 1  ;;  %v4001_v35 = vadd.f32 %v4000_v48, %v3999_v45  ;;  %v3950_v38 = vrot.slane %v3949_v16, 2  ;;  %v3954_v51 = vrot.slane %v9045_v44, 4  ;;  %v3902_v27 = vpop.f32.mrb[35].mxu0  ;;  %v4658_v48 = vld [vmem:[#allocation8 + $0x280] sm:$0xff] }
 0x85c   : > { %v3997_v40 = vadd.f32 %v3996_v29, %v3995_v14  ;;  %v4005_v5 = vadd.f32 %v4004_v30, %v3966_v6  ;;  %v3967_v41 = vmul.f32 %v9045_v44, %v9045_v44  ;;  %v4027_v43 = vsel %vm1429_vm11, %v3941_v19, %v4026_v58  ;;  %v4660_v29 = vld [vmem:[#allocation8 + $0x290] sm:$0xff]  ;;  %v4661_v30 = vld [vmem:[#allocation8 + $0x298] sm:$0xff] }
 0x85d   : > { %v3947_v60 = vadd.f32 %v3946_v36, %v3945_v28  ;;  %v4002_v46 = vrot.slane %v4001_v35, 1  ;;  %v3951_v54 = vadd.f32 %v3950_v38, %v3949_v16  ;;  %v3955_v24 = vadd.f32 %v3954_v51, %v9045_v44  ;;  %v4659_v16 = vld [vmem:[#allocation8 + $0x288] sm:$0xff]  ;;  %v4662_v36 = vld [vmem:[#allocation8 + $0x2a0] sm:$0xff]  ;;  %v4664_v51 = vld [vmem:[#allocation8 + $0x2b0] sm:$0xff] }
 0x85e   : > { %v4006_v50 = vrot.slane %v4005_v5, 2  ;;  %v4010_v61 = vrot.slane %v3967_v41, 4  ;;  %v4043_v62 = vsel %vm1429_vm11, %v3997_v40, %v4042_v34  ;;  %v7279_v34 = vpack.c.bf16 %v4661_v30, %v4660_v29  ;;  %v4665_v27 = vld [vmem:[#allocation8 + $0x2b8] sm:$0xff] }
 0x85f   : > { %v4003_v15 = vadd.f32 %v4002_v46, %v4001_v35  ;;  %v3952_v3 = vrot.slane %v3951_v54, 1  ;;  %v3956_v37 = vrot.slane %v3955_v24, 2  ;;  %v4028_v9 = vsel %vm1431_vm12, %v3947_v60, %v4027_v43  ;;  %v4663_v35 = vld [vmem:[#allocation8 + $0x2a8] sm:$0xff]  ;;  %v4668_v60 = vld [vmem:[#allocation8 + $0x2d0] sm:$0xff]  ;;  %v4669_v46 = vld [vmem:[#allocation8 + $0x2d8] sm:$0xff] }
 0x860   : > { %v4007_v18 = vadd.f32 %v4006_v50, %v4005_v5  ;;  %v4011_v8 = vadd.f32 %v4010_v61, %v3967_v41  ;;  %v7282_v38 = vpack.c.bf16 %v4663_v35, %v4662_v36  ;;  %v7285_v40 = vpack.c.bf16 %v4665_v27, %v4664_v51  ;;  %v4666_v5 = vld [vmem:[#allocation8 + $0x2c0] sm:$0xff]  ;;  %v4667_v41 = vld [vmem:[#allocation8 + $0x2c8] sm:$0xff] }
 0x861   : > { %v3957_v55 = vadd.f32 %v3956_v37, %v3955_v24  ;;  %v3953_v56 = vadd.f32 %v3952_v3, %v3951_v54  ;;  %v4044_v59 = vsel %vm1431_vm12, %v4003_v15, %v4043_v62  ;;  %v7288_v43 = vpack.c.bf16 %v4667_v41, %v4666_v5  ;;  %v4670_v24 = vld [vmem:[#allocation8 + $0x2e0] sm:$0xff]  ;;  %v4671_v50 = vld [vmem:[#allocation8 + $0x2e8] sm:$0xff] }
 0x862   : > { %v4008_v22 = vrot.slane %v4007_v18, 1  ;;  %v4012_v12 = vrot.slane %v4011_v8, 2  ;;  %v7291_v54 = vpack.c.bf16 %v4669_v46, %v4668_v60  ;;  %v7294_v61 = vpack.c.bf16 %v4671_v50, %v4670_v24  ;;  %v6488_v62 = vld [vmem:[%s9423_s5] ss:$0 sm:$0xff] }
 0x863   : > { %v3958_v53 = vrot.slane %v3957_v55, 1  ;;  %v4029_v25 = vsel %vm1433_vm13, %v3953_v56, %v4028_v9  ;;  %v6489_v9 = vld [vmem:[%s9467_s28] ss:$0 sm:$0xff] }
 0x864   : > { %v4009_v20 = vadd.f32 %v4008_v22, %v4007_v18  ;;  %v4013_v47 = vadd.f32 %v4012_v12, %v4011_v8 }
 0x865   : > { %v3959_v17 = vadd.f32 %v3958_v53, %v3957_v55 }
 0x866   : > { %v4014_v23 = vrot.slane %v4013_v47, 1  ;;  %v4045_v63 = vsel %vm1433_vm13, %v4009_v20, %v4044_v59 }
 0x867   : > { %v4030_v1 = vsel %vm1435_vm14, %v3959_v17, %v4029_v25 }
 0x868   : > { %6861 = vmatprep.mubr.f32.mxu1 %v4030_v1  ;;  %v4015_v31 = vadd.f32 %v4014_v23, %v4013_v47 }
 0x86a   : > { %v4046_v52 = vsel %vm1435_vm14, %v4015_v31, %v4045_v63 }
 0x86b   : > { %6862 = vmatmul.mubr.f32.vlgmr.msra.gmra.mrb[20].mxu1 %v4046_v52 }
 0x86c   : > { %6865 = vmatpush3.msk.msra.mxu1 %vm1544_vm15, %v8994_v57  ;;  %v7276_v57 = vpack.c.bf16 %v4659_v16, %v4658_v48 }
 0x86d   : > { %7275 = vmatprep.subr.bf16.mxu1 %v7926_v0 }
 0x93e   : > { %v6863_v45 = vpop.f32.mrb[20].mxu1 }
 0x93f   : > { %v4114_v4 = vpop.f32.mrb[21].mxu1  ;;  %v4124_v7 = vmul.f32 0.00390625, %v6863_v45 }
 0x940   : > { %v4123_v32 = vmul.f32 0.00390625, %v4114_v4 }
 0x942   : > { %v4125_v14 = vmul.f32 %v4123_v32, %v4123_v32  ;;  %6866 = vmatprep.mubr.msk.f32.mxu1 %vm1537_vm1, %v4123_v32 }
 0x944   : > { %v4126_v6 = vsub.f32 %v4124_v7, %v4125_v14 }
 0x946   : > { %v4127_v58 = vmax.f32 %v4126_v6, 0.0 }
 0x948   : > { %v4128_v19 = vadd.f32 1e-05, %v4127_v58 }
 0x94a   : > { %7749 = vrsqrt.f32 %v4128_v19 }
 0x954   : > { %v7750_v28 = vpop.eup %7749 }
 0x955   : > { %6867 = vmatmul.mubr.msk.f32.vlgmr.msra.gmra.mrb[22].mxu1 %vm1537_vm1, %v7750_v28 }
 0x956   : > { %7277 = vmatpush1.bf16.msra.mxu1 %v7276_v57 }
 0x957   : > { %7278 = vmatprep.subr.bf16.mxu1 %v7926_v0 }
 0x95a   : > { %7280 = vmatpush1.bf16.msra.mxu1 %v7279_v34 }
 0x95b   : > { %7281 = vmatprep.subr.bf16.mxu1 %v7926_v0 }
 0x95e   : > { %7283 = vmatpush1.bf16.msra.mxu1 %v7282_v38 }
 0x95f   : > { %7284 = vmatprep.subr.bf16.mxu1 %v7926_v0 }
 0x962   : > { %7286 = vmatpush1.bf16.msra.mxu1 %v7285_v40 }
 0x963   : > { %7287 = vmatprep.subr.bf16.mxu1 %v7926_v0 }
 0x966   : > { %7289 = vmatpush1.bf16.msra.mxu1 %v7288_v43 }
 0x967   : > { %7290 = vmatprep.subr.bf16.mxu1 %v7926_v0 }
 0x96a   : > { %7292 = vmatpush1.bf16.msra.mxu1 %v7291_v54 }
 0x96b   : > { %7293 = vmatprep.subr.bf16.mxu1 %v7926_v0 }
 0x96e   : > { %7295 = vmatpush1.bf16.msra.mxu1 %v7294_v61 }
 0x96f   : > { %7296 = vmatprep.subr.bf16.mxu1 %v7926_v0 }
 0xa28   : > { %v6868_v15 = vpop.f32.mrb[22].mxu1 }
 0xa29   : > { %v4215_v3 = vmul.f32 %v6868_v15, %v6488_v62  ;;  %v4202_v37 = vpop.f32.mrb[23].mxu1 }
 0xa2b   : > { %v4223_v18 = vcombine.high %v4215_v3, %v4215_v3  ;;  %v4230_v8 = vrot.slane %v4215_v3, %v8665_v13  ;;  %v4216_v55 = vmul.f32 %v4215_v3, %v4202_v37 }
 0xa2d   : > { %v4237_v56 = vrot.slane %v4223_v18, %v8665_v13  ;;  %v4238_v59 = vcombine.high %v4230_v8, %v4230_v8  ;;  %v4246_v22 = vrot.slane %v4230_v8, %v8665_v13  ;;  %v4221_v12 = vsub.f32 %v6489_v9, %v4216_v55  ;;  %v4672_v18 = vld [vmem:[#allocation8 + $0x2f0] sm:$0xff]  ;;  %v4673_v8 = vld [vmem:[#allocation8 + $0x2f8] sm:$0xff] }
 0xa2f   : > { %v4253_v53 = vrot.slane %v4237_v56, %v8665_v13  ;;  %v4260_v25 = vrot.slane %v4238_v59, %v8665_v13  ;;  %v4268_v20 = vcombine.high %v4246_v22, %v4246_v22  ;;  %v4239_v47 = vcombine.high %v4237_v56, %v4237_v56 }
 0xa30   : > { %v4321_v17 = vcombine.high %v4221_v12, %v4221_v12  ;;  %v4328_v23 = vrot.slane %v4221_v12, %v8665_v13  ;;  %v4275_v63 = vrot.slane %v4246_v22, %v8672_v21  ;;  %v4674_v12 = vld [vmem:[#allocation8 + $0x300] sm:$0xff] }
 0xa31   : > { %v4279_v1 = vrot.slane %v4260_v25, %v8672_v21  ;;  %v4283_v31 = vrot.slane %v4268_v20, %v8672_v21  ;;  %v4270_v52 = vcombine.high %v4260_v25, %v4260_v25  ;;  %v4291_v45 = vrot.slane %v4253_v53, %v8672_v21 }
 0xa32   : > { %v4335_v4 = vrot.slane %v4321_v17, %v8665_v13  ;;  %v4336_v32 = vcombine.high %v4328_v23, %v4328_v23  ;;  %v4344_v7 = vrot.slane %v4328_v23, %v8665_v13  ;;  %v4312_v14 = vmul.f32 %v4275_v63, %v8998_v26 }
 0xa33   : > { %v4313_v6 = vmul.f32 %v4279_v1, %v9004_v10  ;;  %v4314_v58 = vmul.f32 %v4283_v31, %v9010_v42  ;;  %v4287_v19 = vrot.slane %v4270_v52, %v8672_v21  ;;  %v4316_v28 = vmul.f32 %v4291_v45, %v9022_v39  ;;  %v4676_v45 = vld [vmem:[#allocation8 + $0x310] sm:$0xff] }
 0xa34   : > { %v4337_v48 = vcombine.high %v4335_v4, %v4335_v4  ;;  %v4351_v16 = vrot.slane %v4335_v4, %v8665_v13  ;;  %v4358_v29 = vrot.slane %v4336_v32, %v8665_v13  ;;  %v4366_v57 = vcombine.high %v4344_v7, %v4344_v7  ;;  %v4677_v4 = vld [vmem:[#allocation8 + $0x318] sm:$0xff] }
 0xa35   : > { %v4373_v30 = vrot.slane %v4344_v7, %v8672_v21  ;;  %v4315_v34 = vmul.f32 %v4287_v19, %v9016_v49  ;;  %v4267_v26 = vrot.slane %v4239_v47, %v8665_v13  ;;  %v4269_v36 = vcombine.high %v4253_v53, %v4253_v53 }
 0xa36   : > { %v4377_v10 = vrot.slane %v4358_v29, %v8672_v21  ;;  %v4381_v42 = vrot.slane %v4366_v57, %v8672_v21  ;;  %v4368_v35 = vcombine.high %v4358_v29, %v4358_v29  ;;  %v4389_v39 = vrot.slane %v4351_v16, %v8672_v21  ;;  %v4517_v57 = vld [vmem:[#allocation8 + $0x1e0] sm:$0xff] }
 0xa37   : > { %v4410_v38 = vadd.f32 %v4373_v30, %v4312_v14  ;;  %v4295_v51 = vrot.slane %v4267_v26, %v8672_v21  ;;  %v4365_v27 = vrot.slane %v4337_v48, %v8665_v13  ;;  %v4299_v40 = vrot.slane %v4269_v36, %v8672_v21  ;;  %v4518_v30 = vld [vmem:[#allocation8 + $0x1e8] sm:$0xff] }
 0xa38   : > { %v4411_v5 = vadd.f32 %v4377_v10, %v4313_v6  ;;  %v4412_v41 = vadd.f32 %v4381_v42, %v4314_v58  ;;  %v4385_v49 = vrot.slane %v4368_v35, %v8672_v21  ;;  %v4414_v43 = vadd.f32 %v4389_v39, %v4316_v28 }
 0xa39   : > { %v4418_v60 = vmax.f32 %v4410_v38, 0.0  ;;  %v4317_v46 = vmul.f32 %v4295_v51, %v9030_v2  ;;  %v4393_v54 = vrot.slane %v4365_v27, %v8672_v21  ;;  %v4318_v24 = vmul.f32 %v4299_v40, %v9038_v33  ;;  %v4675_v33 = vld [vmem:[#allocation8 + $0x308] sm:$0xff] }
 0xa3a   : > { %v4419_v50 = vmax.f32 %v4411_v5, 0.0  ;;  %v4420_v61 = vmax.f32 %v4412_v41, 0.0  ;;  %v4413_v62 = vadd.f32 %v4385_v49, %v4315_v34  ;;  %v4367_v37 = vcombine.high %v4351_v16, %v4351_v16 }
 0xa3b   : > { %v4436_v15 = vrot.slane %v4418_v60, 7  ;;  %v4415_v3 = vadd.f32 %v4393_v54, %v4317_v46  ;;  %v4271_v9 = vcombine.high %v4267_v26, %v4267_v26  ;;  %v4369_v22 = vcombine.high %v4365_v27, %v4365_v27  ;;  %v4519_v27 = vld [vmem:[#allocation8 + $0x1f0] sm:$0xff] }
 0xa3c   : > { %v4437_v55 = vrot.slane %v4419_v50, 7  ;;  %v4421_v56 = vmax.f32 %v4413_v62, 0.0  ;;  %v4397_v59 = vrot.slane %v4367_v37, %v8672_v21  ;;  %v4422_v53 = vmax.f32 %v4414_v43, 0.0  ;;  %v4520_v43 = vld [vmem:[#allocation8 + $0x1f8] sm:$0xff] }
 0xa3d   : > { %4444 = vrot.lane.b32.xlu0 %v4436_v15, %s7928_s27  ;;  %v4303_v2 = vrot.slane %v4271_v9, %v8672_v21  ;;  %v7297_v25 = vpack.c.bf16 %v4673_v8, %v4672_v18  ;;  %v4438_v20 = vrot.slane %v4420_v61, 7  ;;  %v4401_v23 = vrot.slane %v4369_v22, %v8672_v21 }
 0xa3e   : > { %4446 = vrot.lane.b32.xlu1 %v4437_v55, %s7928_s27  ;;  %v4416_v47 = vadd.f32 %v4397_v59, %v4318_v24  ;;  %v4439_v63 = vrot.slane %v4421_v56, 7  ;;  %v4423_v1 = vmax.f32 %v4415_v3, 0.0  ;;  %v7300_v31 = vpack.c.bf16 %v4675_v33, %v4674_v12 }
 0xa3f   : > { %v4319_v17 = vmul.f32 %v4303_v2, %v9045_v44  ;;  %7298 = vmatpush1.bf16.msra.mxu1 %v7297_v25  ;;  %v4440_v32 = vrot.slane %v4422_v53, 7  ;;  %v7303_v44 = vpack.c.bf16 %v4677_v4, %v4676_v45  ;;  %v7306_v5 = vpack.c.bf16 %v4518_v30, %v4517_v57  ;;  %v4521_v53 = vld [vmem:[#allocation8 + $0x200] sm:$0xff]  ;;  %v4522_v25 = vld [vmem:[#allocation8 + $0x208] sm:$0xff] }
 0xa40   : > { %7299 = vmatprep.subr.bf16.mxu1 %v7926_v0  ;;  %v4424_v7 = vmax.f32 %v4416_v47, 0.0  ;;  %v4441_v14 = vrot.slane %v4423_v1, 7  ;;  %v7309_v22 = vpack.c.bf16 %v4520_v43, %v4519_v27  ;;  %v7312_v45 = vpack.c.bf16 %v4522_v25, %v4521_v53  ;;  %v4527_v43 = vld [vmem:[#allocation8 + $0x230] sm:$0xff] }
 0xa41   : > { %4448 = vrot.lane.b32.xlu0 %v4438_v20, %s7928_s27  ;;  %v4417_v52 = vadd.f32 %v4401_v23, %v4319_v17 }
 0xa42   : > { %4450 = vrot.lane.b32.xlu1 %v4439_v63, %s7928_s27  ;;  %v4442_v58 = vrot.slane %v4424_v7, 7  ;;  %v4523_v7 = vld [vmem:[#allocation8 + $0x210] sm:$0xff] }
 0xa43   : > { %v4425_v6 = vmax.f32 %v4417_v52, 0.0  ;;  %7301 = vmatpush1.bf16.msra.mxu1 %v7300_v31 }
 0xa44   : > { %7302 = vmatprep.subr.bf16.mxu1 %v7926_v0 }
 0xa45   : > { %4452 = vrot.lane.b32.xlu0 %v4440_v32, %s7928_s27  ;;  %v4443_v19 = vrot.slane %v4425_v6, 7 }
 0xa46   : > { %4454 = vrot.lane.b32.xlu1 %v4441_v14, %s7928_s27  ;;  %v4524_v14 = vld [vmem:[#allocation8 + $0x218] sm:$0xff] }
 0xa47   : > { %7304 = vmatpush1.bf16.msra.mxu1 %v7303_v44  ;;  %v7315_v57 = vpack.c.bf16 %v4524_v14, %v4523_v7 }
 0xa48   : > { %7305 = vmatprep.subr.bf16.mxu1 %v7926_v0 }
 0xa49   : > { %4456 = vrot.lane.b32.xlu0 %v4442_v58, %s7928_s27 }
 0xa4a   : > { %4458 = vrot.lane.b32.xlu1 %v4443_v19, %s7928_s27  ;;  %s9374_s27 = scalar_lea.hbm %s9470_s29, %s6521_s6 }
 0xaaf   : > { %v4445_v28 = vpop.permute.xlu0 %4444 }
 0xab0   : > { %4470 = vst.msk [vmem:[#allocation2 + $0x10] sm:$0x1] %vm580_vm4, %v4445_v28  ;;  %v4447_v48 = vpop.permute.xlu1 %4446 }
 0xab1   : > { %4471 = vst.msk [vmem:[#allocation2 + $0x18] sm:$0x1] %vm582_vm5, %v4445_v28  ;;  %4475 = vst.msk [vmem:[#allocation2 + $0x38] sm:$0x1] %vm582_vm5, %v4447_v48 }
 0xab2   : > { %4468 = vst.msk [vmem:[#allocation2] sm:$0xfe] %vm576_vm2, %v4445_v28  ;;  %4472 = vst.msk [vmem:[#allocation2 + $0x20] sm:$0xfe] %vm576_vm2, %v4447_v48 }
 0xab3   : > { %4469 = vst.msk [vmem:[#allocation2 + $0x8] sm:$0xfe] %vm578_vm3, %v4445_v28  ;;  %4473 = vst.msk [vmem:[#allocation2 + $0x28] sm:$0xfe] %vm578_vm3, %v4447_v48  ;;  %v4449_v16 = vpop.permute.xlu0 %4448 }
 0xab4   : > { %4474 = vst.msk [vmem:[#allocation2 + $0x30] sm:$0x1] %vm580_vm4, %v4447_v48  ;;  %4478 = vst.msk [vmem:[#allocation2 + $0x50] sm:$0x1] %vm580_vm4, %v4449_v16  ;;  %v4451_v29 = vpop.permute.xlu1 %4450 }
 0xab5   : > { %4479 = vst.msk [vmem:[#allocation2 + $0x58] sm:$0x1] %vm582_vm5, %v4449_v16  ;;  %4483 = vst.msk [vmem:[#allocation2 + $0x78] sm:$0x1] %vm582_vm5, %v4451_v29 }
 0xab6   : > { %4476 = vst.msk [vmem:[#allocation2 + $0x40] sm:$0xfe] %vm576_vm2, %v4449_v16  ;;  %4480 = vst.msk [vmem:[#allocation2 + $0x60] sm:$0xfe] %vm576_vm2, %v4451_v29 }
 0xab7   : > { %4477 = vst.msk [vmem:[#allocation2 + $0x48] sm:$0xfe] %vm578_vm3, %v4449_v16  ;;  %4481 = vst.msk [vmem:[#allocation2 + $0x68] sm:$0xfe] %vm578_vm3, %v4451_v29  ;;  %v4453_v34 = vpop.permute.xlu0 %4452  ;;  %v4539_v38 = vld [vmem:[#allocation2 + $0x10] sm:$0x1] }
 0xab8   : > { %4482 = vst.msk [vmem:[#allocation2 + $0x70] sm:$0x1] %vm580_vm4, %v4451_v29  ;;  %v4540_v36 = vld [vmem:[#allocation2 + $0x18] sm:$0x1]  ;;  %4486 = vst.msk [vmem:[#allocation2 + $0x90] sm:$0x1] %vm580_vm4, %v4453_v34  ;;  %v4455_v42 = vpop.permute.xlu1 %4454 }
 0xab9   : > { %v4537_v10 = vld [vmem:[#allocation2] sm:$0xfe]  ;;  %4487 = vst.msk [vmem:[#allocation2 + $0x98] sm:$0x1] %vm582_vm5, %v4453_v34  ;;  %v4605_v39 = vrot.slane %v4540_v36, 1  ;;  %v4602_v40 = vrot.slane %v4539_v38, 1 }
 0xaba   : > { %v4538_v26 = vld [vmem:[#allocation2 + $0x8] sm:$0xfe]  ;;  %4484 = vst.msk [vmem:[#allocation2 + $0x80] sm:$0xfe] %vm576_vm2, %v4453_v34  ;;  %v4601_v51 = vrot.slane %v4537_v10, 1 }
 0xabb   : > { %4485 = vst.msk [vmem:[#allocation2 + $0x88] sm:$0xfe] %vm578_vm3, %v4453_v34  ;;  %v4604_v35 = vrot.slane %v4538_v26, 1  ;;  %4489 = vst.msk [vmem:[#allocation2 + $0xa8] sm:$0xfe] %vm578_vm3, %v4455_v42  ;;  %v4457_v61 = vpop.permute.xlu0 %4456  ;;  %v4525_v26 = vld [vmem:[#allocation8 + $0x220] sm:$0xff] }
 0xabc   : > { %4490 = vst.msk [vmem:[#allocation2 + $0xb0] sm:$0x1] %vm580_vm4, %v4455_v42  ;;  %v4542_v41 = vld [vmem:[#allocation2 + $0x28] sm:$0xfe]  ;;  %v4544_v49 = vld [vmem:[#allocation2 + $0x38] sm:$0x1]  ;;  %v4603_v62 = vsel %vm712_vm6, %v4601_v51, %v4602_v40  ;;  %v4459_v8 = vpop.permute.xlu1 %4458 }
 0xabd   : > { %4491 = vst.msk [vmem:[#allocation2 + $0xb8] sm:$0x1] %vm582_vm5, %v4455_v42  ;;  %v4606_v60 = vsel %vm712_vm6, %v4604_v35, %v4605_v39  ;;  %v4610_v46 = vrot.slane %v4542_v41, 1  ;;  %v4611_v54 = vrot.slane %v4544_v49, 1  ;;  %v4541_v24 = vld [vmem:[#allocation2 + $0x20] sm:$0xfe] }
 0xabe   : > { %4488 = vst.msk [vmem:[#allocation2 + $0xa0] sm:$0xfe] %vm576_vm2, %v4455_v42  ;;  %v4543_v50 = vld [vmem:[#allocation2 + $0x30] sm:$0x1]  ;;  %6490 = vmatprep.mubr.msk.f32.mxu1 %vm476_vm0, %v4606_v60  ;;  %v4607_v15 = vrot.slane %v4541_v24, 1  ;;  %v4526_v36 = vld [vmem:[#allocation8 + $0x228] sm:$0xff] }
 0xabf   : > { %v4608_v3 = vrot.slane %v4543_v50, 1  ;;  %v4546_v37 = vld [vmem:[#allocation2 + $0x48] sm:$0xfe]  ;;  %v4548_v9 = vld [vmem:[#allocation2 + $0x58] sm:$0x1]  ;;  %4759 = vmatmul.mubr.f32.vlgmr.msra.gmra.mrb[24].mxu1 %v4603_v62  ;;  %v4612_v18 = vsel %vm712_vm6, %v4610_v46, %v4611_v54 }
 0xac0   : > { %4494 = vst.msk [vmem:[#allocation2 + $0xd0] sm:$0x1] %vm580_vm4, %v4457_v61  ;;  %v4616_v55 = vrot.slane %v4546_v37, 1  ;;  %v4617_v56 = vrot.slane %v4548_v9, 1  ;;  %v4545_v59 = vld [vmem:[#allocation2 + $0x40] sm:$0xfe]  ;;  %7307 = vmatpush1.bf16.msra.mxu1 %v7306_v5  ;;  %6491 = vmatprep.mubr.msk.f32.mxu1 %vm476_vm0, %v4612_v18  ;;  %v7318_v5 = vpack.c.bf16 %v4526_v36, %v4525_v26 }
 0xac1   : > { %4495 = vst.msk [vmem:[#allocation2 + $0xd8] sm:$0x1] %vm582_vm5, %v4457_v61  ;;  %v4547_v2 = vld [vmem:[#allocation2 + $0x50] sm:$0x1]  ;;  %4499 = vst.msk [vmem:[#allocation2 + $0xf8] sm:$0x1] %vm582_vm5, %v4459_v8  ;;  %7308 = vmatprep.subr.bf16.mxu1 %v7926_v0  ;;  %v4609_v20 = vsel %vm712_vm6, %v4607_v15, %v4608_v3 }
 0xac2   : > { %4492 = vst.msk [vmem:[#allocation2 + $0xc0] sm:$0xfe] %vm576_vm2, %v4457_v61  ;;  %4496 = vst.msk [vmem:[#allocation2 + $0xe0] sm:$0xfe] %vm576_vm2, %v4459_v8  ;;  %v4550_v12 = vld [vmem:[#allocation2 + $0x68] sm:$0xfe]  ;;  %v4618_v23 = vsel %vm712_vm6, %v4616_v55, %v4617_v56 }
 0xac3   : > { %4493 = vst.msk [vmem:[#allocation2 + $0xc8] sm:$0xfe] %vm578_vm3, %v4457_v61  ;;  %4497 = vst.msk [vmem:[#allocation2 + $0xe8] sm:$0xfe] %vm578_vm3, %v4459_v8  ;;  %v4552_v33 = vld [vmem:[#allocation2 + $0x78] sm:$0x1]  ;;  %4764 = vmatmul.mubr.f32.gmra.mrb[26].mxu1 %v4609_v20 }
 0xac4   : > { %4498 = vst.msk [vmem:[#allocation2 + $0xf0] sm:$0x1] %vm580_vm4, %v4459_v8  ;;  %v4613_v47 = vrot.slane %v4545_v59, 1  ;;  %v4614_v17 = vrot.slane %v4547_v2, 1  ;;  %v4622_v63 = vrot.slane %v4550_v12, 1  ;;  %v4623_v1 = vrot.slane %v4552_v33, 1  ;;  %7310 = vmatpush1.bf16.msra.mxu1 %v7309_v22  ;;  %6492 = vmatprep.mubr.msk.f32.mxu1 %vm476_vm0, %v4618_v23 }
 0xac5   : > { %v4549_v31 = vld [vmem:[#allocation2 + $0x60] sm:$0xfe]  ;;  %v4551_v52 = vld [vmem:[#allocation2 + $0x70] sm:$0x1]  ;;  %v4554_v4 = vld [vmem:[#allocation2 + $0x88] sm:$0xfe]  ;;  %7311 = vmatprep.subr.bf16.mxu1 %v7926_v0 }
 0xac6   : > { %v4556_v32 = vld [vmem:[#allocation2 + $0x98] sm:$0x1]  ;;  %v4615_v6 = vsel %vm712_vm6, %v4613_v47, %v4614_v17  ;;  %v4619_v44 = vrot.slane %v4549_v31, 1  ;;  %v4620_v58 = vrot.slane %v4551_v52, 1  ;;  %v4624_v19 = vsel %vm712_vm6, %v4622_v63, %v4623_v1  ;;  %v4553_v16 = vld [vmem:[#allocation2 + $0x80] sm:$0xfe] }
 0xac7   : > { %4769 = vmatmul.mubr.f32.gmra.mrb[28].mxu1 %v4615_v6  ;;  %v4628_v28 = vrot.slane %v4554_v4, 1  ;;  %v4629_v48 = vrot.slane %v4556_v32, 1  ;;  %v4555_v29 = vld [vmem:[#allocation2 + $0x90] sm:$0x1]  ;;  %v4558_v30 = vld [vmem:[#allocation2 + $0xa8] sm:$0xfe] }
 0xac8   : > { %7313 = vmatpush1.bf16.msra.mxu1 %v7312_v45  ;;  %6493 = vmatprep.mubr.msk.f32.mxu1 %vm476_vm0, %v4624_v19  ;;  %v4560_v34 = vld [vmem:[#allocation2 + $0xb8] sm:$0x1]  ;;  %v4621_v10 = vsel %vm712_vm6, %v4619_v44, %v4620_v58  ;;  %v4625_v42 = vrot.slane %v4553_v16, 1  ;;  %v4626_v35 = vrot.slane %v4555_v29, 1  ;;  %v4634_v38 = vrot.slane %v4558_v30, 1  ;;  %v4529_v8 = vld [vmem:[#allocation8 + $0x240] sm:$0xff] }
 0xac9   : > { %7314 = vmatprep.subr.bf16.mxu1 %v7926_v0  ;;  %v4630_v39 = vsel %vm712_vm6, %v4628_v28, %v4629_v48  ;;  %v4635_v51 = vrot.slane %v4560_v34, 1  ;;  %v4557_v27 = vld [vmem:[#allocation2 + $0xa0] sm:$0xfe]  ;;  %v4559_v40 = vld [vmem:[#allocation2 + $0xb0] sm:$0x1]  ;;  %v4528_v60 = vld [vmem:[#allocation8 + $0x238] sm:$0xff] }
 0xaca   : > { %v4562_v41 = vld [vmem:[#allocation2 + $0xc8] sm:$0xfe]  ;;  %v4564_v49 = vld [vmem:[#allocation2 + $0xd8] sm:$0x1]  ;;  %v4627_v46 = vsel %vm712_vm6, %v4625_v42, %v4626_v35  ;;  %v4631_v54 = vrot.slane %v4557_v27, 1  ;;  %v4632_v24 = vrot.slane %v4559_v40, 1  ;;  %v7321_v37 = vpack.c.bf16 %v4528_v60, %v4527_v43 }
 0xacb   : > { %4774 = vmatmul.mubr.f32.gmra.mrb[30].mxu1 %v4621_v10  ;;  %v4636_v50 = vsel %vm712_vm6, %v4634_v38, %v4635_v51  ;;  %v4640_v61 = vrot.slane %v4562_v41, 1  ;;  %v4641_v62 = vrot.slane %v4564_v49, 1  ;;  %v4561_v15 = vld [vmem:[#allocation2 + $0xc0] sm:$0xfe]  ;;  %v4563_v3 = vld [vmem:[#allocation2 + $0xd0] sm:$0x1] }
 0xacc   : > { %7316 = vmatpush1.bf16.msra.mxu1 %v7315_v57  ;;  %6494 = vmatprep.mubr.msk.f32.mxu1 %vm476_vm0, %v4630_v39  ;;  %v4566_v9 = vld [vmem:[#allocation2 + $0xe8] sm:$0xfe]  ;;  %v4568_v18 = vld [vmem:[#allocation2 + $0xf8] sm:$0x1]  ;;  %v4633_v56 = vsel %vm712_vm6, %v4631_v54, %v4632_v24  ;;  %v4637_v59 = vrot.slane %v4561_v15, 1  ;;  %v4638_v2 = vrot.slane %v4563_v3, 1 }
 0xacd   : > { %7317 = vmatprep.subr.bf16.mxu1 %v7926_v0  ;;  %v4530_v55 = vld [vmem:[#allocation8 + $0x248] sm:$0xff]  ;;  %v4642_v22 = vsel %vm712_vm6, %v4640_v61, %v4641_v62  ;;  %v4646_v12 = vrot.slane %v4566_v9, 1  ;;  %v4647_v33 = vrot.slane %v4568_v18, 1  ;;  %v4565_v53 = vld [vmem:[#allocation2 + $0xe0] sm:$0xfe]  ;;  %v4531_v47 = vld [vmem:[#allocation8 + $0x250] sm:$0xff] }
 0xace   : > { %v4567_v25 = vld [vmem:[#allocation2 + $0xf0] sm:$0x1]  ;;  %v7324_v20 = vpack.c.bf16 %v4530_v55, %v4529_v8  ;;  %v4532_v17 = vld [vmem:[#allocation8 + $0x258] sm:$0xff]  ;;  %v4639_v23 = vsel %vm712_vm6, %v4637_v59, %v4638_v2  ;;  %v4643_v63 = vrot.slane %v4565_v53, 1  ;;  %v4533_v45 = vld [vmem:[#allocation8 + $0x260] sm:$0xff] }
 0xacf   : > { %4779 = vmatmul.mubr.f32.gmra.mrb[32].mxu1 %v4627_v46  ;;  %v4644_v1 = vrot.slane %v4567_v25, 1  ;;  %v4648_v31 = vsel %vm712_vm6, %v4646_v12, %v4647_v33  ;;  %v7327_v52 = vpack.c.bf16 %v4532_v17, %v4531_v47  ;;  %v4534_v4 = vld [vmem:[#allocation8 + $0x268] sm:$0xff]  ;;  %v4535_v6 = vld [vmem:[#allocation8 + $0x270] sm:$0xff]  ;;  %v4536_v44 = vld [vmem:[#allocation8 + $0x278] sm:$0xff] }
 0xad0   : > { %7319 = vmatpush1.bf16.msra.mxu1 %v7318_v5  ;;  %6495 = vmatprep.mubr.msk.f32.mxu1 %vm476_vm0, %v4636_v50  ;;  %v4501_v7 = vld [vmem:[#allocation2 + $0x8] sm:$0xff]  ;;  %v7330_v14 = vpack.c.bf16 %v4534_v4, %v4533_v45  ;;  %v7333_v58 = vpack.c.bf16 %v4536_v44, %v4535_v6  ;;  %v5049_v19 = vld [vmem:[#allocation8 + $0x320] sm:$0xff]  ;;  %v5051_v16 = vld [vmem:[#allocation8 + $0x330] sm:$0xff] }
 0xad1   : > { %7320 = vmatprep.subr.bf16.mxu1 %v7926_v0  ;;  %v4645_v32 = vsel %vm712_vm6, %v4643_v63, %v4644_v1  ;;  %v5050_v28 = vld [vmem:[#allocation8 + $0x328] sm:$0xff]  ;;  %v5052_v29 = vld [vmem:[#allocation8 + $0x338] sm:$0xff]  ;;  %v4500_v57 = vld [vmem:[#allocation2] sm:$0xff] }
 0xad2   : > { %v7336_v48 = vpack.c.bf16 %v5050_v28, %v5049_v19  ;;  %v4503_v30 = vld [vmem:[#allocation2 + $0x28] sm:$0xff]  ;;  %v7339_v34 = vpack.c.bf16 %v5052_v29, %v5051_v16  ;;  %v5053_v26 = vld [vmem:[#allocation8 + $0x340] sm:$0xff]  ;;  %v5055_v39 = vld [vmem:[#allocation8 + $0x350] sm:$0xff] }
 0xad3   : > { %4784 = vmatmul.mubr.f32.gmra.mrb[34].mxu1 %v4633_v56  ;;  %v5054_v36 = vld [vmem:[#allocation8 + $0x348] sm:$0xff]  ;;  %v4502_v10 = vld [vmem:[#allocation2 + $0x20] sm:$0xff]  ;;  %v5056_v38 = vld [vmem:[#allocation8 + $0x358] sm:$0xff] }
 0xad4   : > { %7322 = vmatpush1.bf16.msra.mxu1 %v7321_v37  ;;  %6496 = vmatprep.mubr.msk.f32.mxu1 %vm476_vm0, %v4642_v22  ;;  %v4505_v42 = vld [vmem:[#allocation2 + $0x48] sm:$0xff]  ;;  %v7342_v35 = vpack.c.bf16 %v5054_v36, %v5053_v26  ;;  %v4504_v51 = vld [vmem:[#allocation2 + $0x40] sm:$0xff]  ;;  %v7345_v40 = vpack.c.bf16 %v5056_v38, %v5055_v39  ;;  %v5059_v46 = vld [vmem:[#allocation8 + $0x370] sm:$0xff] }
 0xad5   : > { %7323 = vmatprep.subr.bf16.mxu1 %v7926_v0  ;;  %v4507_v27 = vld [vmem:[#allocation2 + $0x68] sm:$0xff]  ;;  %v5057_v5 = vld [vmem:[#allocation8 + $0x360] sm:$0xff]  ;;  %v5060_v54 = vld [vmem:[#allocation8 + $0x378] sm:$0xff] }
 0xad6   : > { %v5058_v41 = vld [vmem:[#allocation8 + $0x368] sm:$0xff]  ;;  %v4506_v49 = vld [vmem:[#allocation2 + $0x60] sm:$0xff]  ;;  %v7351_v61 = vpack.c.bf16 %v5060_v54, %v5059_v46  ;;  %v4931_v8 = vld [vmem:[#allocation2 + $0x18] sm:$0x3] }
 0xad7   : > { %4789 = vmatmul.mubr.f32.gmra.mrb[36].mxu1 %v4639_v23  ;;  %v4509_v43 = vld [vmem:[#allocation2 + $0x88] sm:$0xff]  ;;  %v7348_v60 = vpack.c.bf16 %v5058_v41, %v5057_v5  ;;  %v4508_v24 = vld [vmem:[#allocation2 + $0x80] sm:$0xff]  ;;  %v5063_v55 = vld [vmem:[#allocation8 + $0x390] sm:$0xff]  ;;  %v4996_v12 = vrot.slane %v4931_v8, 2 }
 0xad8   : > { %7325 = vmatpush1.bf16.msra.mxu1 %v7324_v20  ;;  %6497 = vmatprep.mubr.msk.f32.mxu1 %vm476_vm0, %v4648_v31  ;;  %v4511_v50 = vld [vmem:[#allocation2 + $0xa8] sm:$0xff]  ;;  %v5061_v62 = vld [vmem:[#allocation8 + $0x380] sm:$0xff]  ;;  %v5064_v56 = vld [vmem:[#allocation8 + $0x398] sm:$0xff] }
 0xad9   : > { %7326 = vmatprep.subr.bf16.mxu1 %v7926_v0  ;;  %v5062_v15 = vld [vmem:[#allocation8 + $0x388] sm:$0xff]  ;;  %v4510_v3 = vld [vmem:[#allocation2 + $0xa0] sm:$0xff]  ;;  %v7357_v33 = vpack.c.bf16 %v5064_v56, %v5063_v55  ;;  %v5067_v23 = vld [vmem:[#allocation8 + $0x3b0] sm:$0xff] }
 0xada   : > { %v4513_v37 = vld [vmem:[#allocation2 + $0xc8] sm:$0xff]  ;;  %v7354_v9 = vpack.c.bf16 %v5062_v15, %v5061_v62  ;;  %v4512_v59 = vld [vmem:[#allocation2 + $0xc0] sm:$0xff]  ;;  %v5068_v63 = vld [vmem:[#allocation8 + $0x3b8] sm:$0xff] }
 0xadb   : > { %4794 = vmatmul.mubr.f32.gmra.mrb[38].mxu1 %v4645_v32  ;;  %v4929_v18 = vld [vmem:[#allocation2 + $0x8] sm:$0xfc]  ;;  %v5065_v53 = vld [vmem:[#allocation8 + $0x3a0] sm:$0xff]  ;;  %v4930_v31 = vld [vmem:[#allocation2 + $0x10] sm:$0x3] }
 0xadc   : > { %7328 = vmatpush1.bf16.msra.mxu1 %v7327_v52  ;;  %6498 = vmatprep.mubr.msk.f32.mxu1 %vm476_vm0, %v4501_v7  ;;  %v4515_v2 = vld [vmem:[#allocation2 + $0xe8] sm:$0xff]  ;;  %v4995_v22 = vrot.slane %v4929_v18, 2  ;;  %v4514_v20 = vld [vmem:[#allocation2 + $0xe0] sm:$0xff]  ;;  %v7363_v52 = vpack.c.bf16 %v5068_v63, %v5067_v23  ;;  %v4935_v4 = vld [vmem:[#allocation2 + $0x38] sm:$0x3]  ;;  %v4993_v7 = vrot.slane %v4930_v31, 2 }
 0xadd   : > { %7329 = vmatprep.subr.bf16.mxu1 %v7926_v0  ;;  %v5066_v25 = vld [vmem:[#allocation8 + $0x3a8] sm:$0xff]  ;;  %v4928_v1 = vld [vmem:[#allocation2] sm:$0xfc]  ;;  %v5002_v6 = vrot.slane %v4935_v4, 2  ;;  %v4939_v28 = vld [vmem:[#allocation2 + $0x58] sm:$0x3] }
 0xade   : > { %v4997_v47 = vsel %vm1104_vm7, %v4995_v22, %v4996_v12  ;;  %v7360_v17 = vpack.c.bf16 %v5066_v25, %v5065_v53  ;;  %v4933_v45 = vld [vmem:[#allocation2 + $0x28] sm:$0xfc]  ;;  %v4992_v32 = vrot.slane %v4928_v1, 2  ;;  %v4932_v44 = vld [vmem:[#allocation2 + $0x20] sm:$0xfc] }
 0xadf   : > { %v4937_v19 = vld [vmem:[#allocation2 + $0x48] sm:$0xfc]  ;;  %v4998_v16 = vrot.slane %v4932_v44, 2  ;;  %v4936_v26 = vld [vmem:[#allocation2 + $0x40] sm:$0xfc] }
 0xae0   : > { %7331 = vmatpush1.bf16.msra.mxu1 %v7330_v14  ;;  %v5001_v14 = vrot.slane %v4933_v45, 2  ;;  %v4941_v36 = vld [vmem:[#allocation2 + $0x68] sm:$0xfc]  ;;  %v4942_v5 = vld [vmem:[#allocation2 + $0x70] sm:$0x3] }
 0xae1   : > { %7332 = vmatprep.subr.bf16.mxu1 %v7926_v0  ;;  %v4945_v41 = vld [vmem:[#allocation2 + $0x88] sm:$0xfc]  ;;  %v5011_v46 = vrot.slane %v4942_v5, 2  ;;  %v4946_v62 = vld [vmem:[#allocation2 + $0x90] sm:$0x3] }
 0xae2   : > { %v4949_v15 = vld [vmem:[#allocation2 + $0xa8] sm:$0xfc]  ;;  %v5017_v18 = vrot.slane %v4946_v62, 2  ;;  %v4955_v12 = vld [vmem:[#allocation2 + $0xd8] sm:$0x3] }
 0xae3   : > { %v5025_v55 = vrot.slane %v4949_v15, 2  ;;  %v4953_v22 = vld [vmem:[#allocation2 + $0xc8] sm:$0xfc]  ;;  %v4952_v23 = vld [vmem:[#allocation2 + $0xc0] sm:$0xfc] }
 0xae4   : > { %7334 = vmatpush1.bf16.msra.mxu1 %v7333_v58  ;;  %v4934_v58 = vld [vmem:[#allocation2 + $0x30] sm:$0x3]  ;;  %v4957_v1 = vld [vmem:[#allocation2 + $0xe8] sm:$0xfc]  ;;  %v4959_v31 = vld [vmem:[#allocation2 + $0xf8] sm:$0x3] }
 0xae5   : > { %7335 = vmatprep.subr.bf16.mxu1 %v7926_v0  ;;  %v4999_v29 = vrot.slane %v4934_v58, 2  ;;  %v4954_v63 = vld [vmem:[#allocation2 + $0xd0] sm:$0x3]  ;;  %v5028_v45 = vrot.slane %v4952_v23, 2 }
 0xae6   : > { %v5029_v4 = vrot.slane %v4954_v63, 2  ;;  %v4958_v44 = vld [vmem:[#allocation2 + $0xf0] sm:$0x3] }
 0xae7   : > { %4888 = vmatmul.mubr.f32.vlgmr.msra.gmra.mrb[24].mxu1 %v4500_v57  ;;  %v5003_v57 = vsel %vm1104_vm7, %v5001_v14, %v5002_v6  ;;  %v5038_v14 = vrot.slane %v4959_v31, 2  ;;  %v4956_v6 = vld [vmem:[#allocation2 + $0xe0] sm:$0xfc] }
 0xae8   : > { %6499 = vmatprep.mubr.msk.f32.mxu1 %vm476_vm0, %v4503_v30  ;;  %7337 = vmatpush1.bf16.msra.mxu1 %v7336_v48  ;;  %v4994_v48 = vsel %vm1104_vm7, %v4992_v32, %v4993_v7  ;;  %v5007_v30 = vrot.slane %v4937_v19, 2  ;;  %v5037_v7 = vrot.slane %v4957_v1, 2  ;;  %v5030_v58 = vsel %vm1104_vm7, %v5028_v45, %v5029_v4 }
 0xae9   : > { %7338 = vmatprep.subr.bf16.mxu1 %v7926_v0  ;;  %v5034_v19 = vrot.slane %v4956_v6, 2 }
 0xaeb   : > { %4893 = vmatmul.mubr.f32.gmra.mrb[26].mxu1 %v4502_v10  ;;  %v4943_v10 = vld [vmem:[#allocation2 + $0x78] sm:$0x3] }
 0xaec   : > { %6500 = vmatprep.mubr.msk.f32.mxu1 %vm476_vm0, %v4505_v42  ;;  %7340 = vmatpush1.bf16.msra.mxu1 %v7339_v34  ;;  %v5008_v34 = vrot.slane %v4939_v28, 2  ;;  %v5000_v42 = vsel %vm1104_vm7, %v4998_v16, %v4999_v29  ;;  %v5035_v28 = vrot.slane %v4958_v44, 2 }
 0xaed   : > { %7341 = vmatprep.subr.bf16.mxu1 %v7926_v0 }
 0xaee   : > { %v5009_v38 = vsel %vm1104_vm7, %v5007_v30, %v5008_v34  ;;  %v5036_v16 = vsel %vm1104_vm7, %v5034_v19, %v5035_v28 }
 0xaef   : > { %4898 = vmatmul.mubr.f32.gmra.mrb[28].mxu1 %v4504_v51  ;;  %v5013_v51 = vrot.slane %v4941_v36, 2 }
 0xaf0   : > { %6501 = vmatprep.mubr.msk.f32.mxu1 %vm476_vm0, %v4507_v27  ;;  %7343 = vmatpush1.bf16.msra.mxu1 %v7342_v35  ;;  %v5004_v35 = vrot.slane %v4936_v26, 2  ;;  %v5014_v27 = vrot.slane %v4943_v10, 2 }
 0xaf1   : > { %7344 = vmatprep.subr.bf16.mxu1 %v7926_v0 }
 0xaf2   : > { %v5015_v54 = vsel %vm1104_vm7, %v5013_v51, %v5014_v27 }
 0xaf3   : > { %4903 = vmatmul.mubr.f32.gmra.mrb[30].mxu1 %v4506_v49  ;;  %v4947_v49 = vld [vmem:[#allocation2 + $0x98] sm:$0x3] }
 0xaf4   : > { %6502 = vmatprep.mubr.msk.f32.mxu1 %vm476_vm0, %v4509_v43  ;;  %7346 = vmatpush1.bf16.msra.mxu1 %v7345_v40  ;;  %v4940_v40 = vld [vmem:[#allocation2 + $0x60] sm:$0xfc] }
 0xaf5   : > { %7347 = vmatprep.subr.bf16.mxu1 %v7926_v0 }
 0xaf7   : > { %4908 = vmatmul.mubr.f32.gmra.mrb[32].mxu1 %v4508_v24  ;;  %v5019_v24 = vrot.slane %v4945_v41, 2 }
 0xaf8   : > { %6503 = vmatprep.mubr.msk.f32.mxu1 %vm476_vm0, %v4511_v50  ;;  %7349 = vmatpush1.bf16.msra.mxu1 %v7348_v60  ;;  %v5010_v60 = vrot.slane %v4940_v40, 2  ;;  %v5020_v50 = vrot.slane %v4947_v49, 2 }
 0xaf9   : > { %7350 = vmatprep.subr.bf16.mxu1 %v7926_v0 }
 0xafa   : > { %v5021_v8 = vsel %vm1104_vm7, %v5019_v24, %v5020_v50 }
 0xafb   : > { %4913 = vmatmul.mubr.f32.gmra.mrb[34].mxu1 %v4510_v3  ;;  %v4951_v3 = vld [vmem:[#allocation2 + $0xb8] sm:$0x3] }
 0xafc   : > { %6504 = vmatprep.mubr.msk.f32.mxu1 %vm476_vm0, %v4513_v37  ;;  %7352 = vmatpush1.bf16.msra.mxu1 %v7351_v61  ;;  %v4944_v61 = vld [vmem:[#allocation2 + $0x80] sm:$0xfc]  ;;  %v5012_v37 = vsel %vm1104_vm7, %v5010_v60, %v5011_v46  ;;  %v5026_v56 = vrot.slane %v4951_v3, 2 }
 0xafd   : > { %7353 = vmatprep.subr.bf16.mxu1 %v7926_v0 }
 0xaff   : > { %4918 = vmatmul.mubr.f32.gmra.mrb[36].mxu1 %v4512_v59  ;;  %v4948_v59 = vld [vmem:[#allocation2 + $0xa0] sm:$0xfc] }
 0xb00   : > { %6505 = vmatprep.mubr.msk.f32.mxu1 %vm476_vm0, %v4515_v2  ;;  %7355 = vmatpush1.bf16.msra.mxu1 %v7354_v9  ;;  %v5016_v9 = vrot.slane %v4944_v61, 2  ;;  %v4950_v2 = vld [vmem:[#allocation2 + $0xb0] sm:$0x3]  ;;  %v5022_v53 = vrot.slane %v4948_v59, 2 }
 0xb01   : > { %7356 = vmatprep.subr.bf16.mxu1 %v7926_v0  ;;  %v5023_v25 = vrot.slane %v4950_v2, 2 }
 0xb03   : > { %4923 = vmatmul.mubr.f32.gmra.mrb[38].mxu1 %v4514_v20  ;;  %v5027_v20 = vsel %vm1104_vm7, %v5025_v55, %v5026_v56 }
 0xb04   : > { %7358 = vmatpush1.bf16.msra.mxu1 %v7357_v33  ;;  %6506 = vmatprep.mubr.msk.f32.mxu1 %vm476_vm0, %v4997_v47  ;;  %v5018_v33 = vsel %vm1104_vm7, %v5016_v9, %v5017_v18  ;;  %v5031_v47 = vrot.slane %v4953_v22, 2 }
 0xb05   : > { %7359 = vmatprep.subr.bf16.mxu1 %v7926_v0 }
 0xb08   : > { %7361 = vmatpush1.bf16.msra.mxu1 %v7360_v17  ;;  %v5032_v17 = vrot.slane %v4955_v12, 2 }
 0xb09   : > { %7362 = vmatprep.subr.bf16.mxu1 %v7926_v0  ;;  %v4938_v0 = vld [vmem:[#allocation2 + $0x50] sm:$0x3] }
 0xb0a   : > { %v5005_v39 = vrot.slane %v4938_v0, 2  ;;  %v5033_v32 = vsel %vm1104_vm7, %v5031_v47, %v5032_v17 }
 0xb0c   : > { %7364 = vmatpush1.bf16.msra.mxu1 %v7363_v52  ;;  %v5006_v43 = vsel %vm1104_vm7, %v5004_v35, %v5005_v39  ;;  %v5024_v52 = vsel %vm1104_vm7, %v5022_v53, %v5023_v25 }
 0xb0f   : > { %5150 = vmatmul.mubr.f32.vlgmr.msra.gmra.mrb[24].mxu1 %v4994_v48  ;;  %v5039_v48 = vsel %vm1104_vm7, %v5037_v7, %v5038_v14 }
 0xb10   : > { %6507 = vmatprep.mubr.msk.f32.mxu1 %vm476_vm0, %v5003_v57 }
 0xb13   : > { %5155 = vmatmul.mubr.f32.gmra.mrb[26].mxu1 %v5000_v42 }
 0xb14   : > { %6508 = vmatprep.mubr.msk.f32.mxu1 %vm476_vm0, %v5009_v38 }
 0xb17   : > { %5160 = vmatmul.mubr.f32.gmra.mrb[28].mxu1 %v5006_v43 }
 0xb18   : > { %6509 = vmatprep.mubr.msk.f32.mxu1 %vm476_vm0, %v5015_v54 }
 0xb1b   : > { %5165 = vmatmul.mubr.f32.gmra.mrb[30].mxu1 %v5012_v37 }
 0xb1c   : > { %6510 = vmatprep.mubr.msk.f32.mxu1 %vm476_vm0, %v5021_v8 }
 0xb1f   : > { %5170 = vmatmul.mubr.f32.gmra.mrb[32].mxu1 %v5018_v33 }
 0xb20   : > { %6511 = vmatprep.mubr.msk.f32.mxu1 %vm476_vm0, %v5027_v20 }
 0xb23   : > { %5175 = vmatmul.mubr.f32.gmra.mrb[34].mxu1 %v5024_v52 }
 0xb24   : > { %6512 = vmatprep.mubr.msk.f32.mxu1 %vm476_vm0, %v5033_v32 }
 0xb27   : > { %5180 = vmatmul.mubr.f32.gmra.mrb[36].mxu1 %v5030_v58 }
 0xb28   : > { %6513 = vmatprep.mubr.msk.f32.mxu1 %vm476_vm0, %v5039_v48 }
 0xb2b   : > { %5185 = vmatmul.mubr.f32.gmra.mrb[38].mxu1 %v5036_v16 }
 0xbe2   : > { %v9232_v29 = vpop.f32.mrb[24].mxu1 }
 0xbe3   : > { %v5198_v57 = vrot.slane %v9232_v29, 4  ;;  %v5246_v30 = vmul.f32 %v9232_v29, %v9232_v29  ;;  %v5153_v34 = vpop.f32.mrb[25].mxu1 }
 0xbe5   : > { %v5199_v26 = vadd.f32 %v5198_v57, %v9232_v29  ;;  %v5254_v0 = vrot.slane %v5246_v30, 4 }
 0xbe6   : > { %v9238_v36 = vpop.f32.mrb[26].mxu1 }
 0xbe7   : > { %v5200_v10 = vrot.slane %v5199_v26, 2  ;;  %v5255_v42 = vadd.f32 %v5254_v0, %v5246_v30  ;;  %v5204_v35 = vrot.slane %v9238_v36, 4  ;;  %v5247_v39 = vmul.f32 %v9238_v36, %v9238_v36  ;;  %v5158_v38 = vpop.f32.mrb[27].mxu1 }
 0xbe9   : > { %v5201_v51 = vadd.f32 %v5200_v10, %v5199_v26  ;;  %v5256_v27 = vrot.slane %v5255_v42, 2  ;;  %v5205_v40 = vadd.f32 %v5204_v35, %v9238_v36  ;;  %v5260_v5 = vrot.slane %v5247_v39, 4 }
 0xbea   : > { %v9244_v41 = vpop.f32.mrb[28].mxu1 }
 0xbeb   : > { %v5257_v49 = vadd.f32 %v5256_v27, %v5255_v42  ;;  %v5206_v43 = vrot.slane %v5205_v40, 2  ;;  %v5261_v60 = vadd.f32 %v5260_v5, %v5247_v39  ;;  %v5163_v46 = vpop.f32.mrb[29].mxu1  ;;  %v5210_v54 = vrot.slane %v9244_v41, 4 }
 0xbec   : > { %v5248_v24 = vmul.f32 %v9244_v41, %v9244_v41  ;;  %v5202_v50 = vrot.slane %v5201_v51, 1 }
 0xbed   : > { %v5207_v61 = vadd.f32 %v5206_v43, %v5205_v40  ;;  %v5262_v62 = vrot.slane %v5261_v60, 2  ;;  %v5258_v15 = vrot.slane %v5257_v49, 1  ;;  %v5211_v3 = vadd.f32 %v5210_v54, %v9244_v41 }
 0xbee   : > { %v5266_v37 = vrot.slane %v5248_v24, 4  ;;  %v9250_v9 = vpop.f32.mrb[30].mxu1  ;;  %v5203_v12 = vadd.f32 %v5202_v50, %v5201_v51 }
 0xbef   : > { %v5208_v18 = vrot.slane %v5207_v61, 1  ;;  %v5263_v8 = vadd.f32 %v5262_v62, %v5261_v60  ;;  %v5216_v55 = vrot.slane %v9250_v9, 4  ;;  %v5168_v56 = vpop.f32.mrb[31].mxu1  ;;  %v5212_v59 = vrot.slane %v5211_v3, 2 }
 0xbf0   : > { %v5267_v2 = vadd.f32 %v5266_v37, %v5248_v24  ;;  %v5249_v22 = vmul.f32 %v9250_v9, %v9250_v9  ;;  %v5259_v20 = vadd.f32 %v5258_v15, %v5257_v49 }
 0xbf1   : > { %v5209_v33 = vadd.f32 %v5208_v18, %v5207_v61  ;;  %v5264_v53 = vrot.slane %v5263_v8, 1  ;;  %v5217_v25 = vadd.f32 %v5216_v55, %v9250_v9  ;;  %v5213_v47 = vadd.f32 %v5212_v59, %v5211_v3 }
 0xbf2   : > { %v5268_v17 = vrot.slane %v5267_v2, 2  ;;  %v5272_v23 = vrot.slane %v5249_v22, 4  ;;  %v9256_v63 = vpop.f32.mrb[32].mxu1 }
 0xbf3   : > { %v5265_v1 = vadd.f32 %v5264_v53, %v5263_v8  ;;  %v5310_v31 = vsel %vm1423_vm8, %v5209_v33, %v5203_v12  ;;  %v5218_v52 = vrot.slane %v5217_v25, 2  ;;  %v5222_v45 = vrot.slane %v9256_v63, 4  ;;  %v5173_v4 = vpop.f32.mrb[33].mxu1 }
 0xbf4   : > { %v5214_v32 = vrot.slane %v5213_v47, 1  ;;  %v5269_v7 = vadd.f32 %v5268_v17, %v5267_v2  ;;  %v5273_v14 = vadd.f32 %v5272_v23, %v5249_v22  ;;  %v5250_v6 = vmul.f32 %v9256_v63, %v9256_v63 }
 0xbf5   : > { %v5326_v44 = vsel %vm1423_vm8, %v5265_v1, %v5259_v20  ;;  %v5219_v58 = vadd.f32 %v5218_v52, %v5217_v25  ;;  %v5223_v19 = vadd.f32 %v5222_v45, %v9256_v63 }
 0xbf6   : > { %v5215_v28 = vadd.f32 %v5214_v32, %v5213_v47  ;;  %v5270_v48 = vrot.slane %v5269_v7, 1  ;;  %v5274_v16 = vrot.slane %v5273_v14, 2  ;;  %v5278_v57 = vrot.slane %v5250_v6, 4  ;;  %v9264_v30 = vpop.f32.mrb[34].mxu1 }
 0xbf7   : > { %v5220_v34 = vrot.slane %v5219_v58, 1  ;;  %v5224_v26 = vrot.slane %v5223_v19, 2  ;;  %v5228_v0 = vrot.slane %v9264_v30, 4  ;;  %v5251_v10 = vmul.f32 %v9264_v30, %v9264_v30  ;;  %v5178_v42 = vpop.f32.mrb[35].mxu1 }
 0xbf8   : > { %v5271_v35 = vadd.f32 %v5270_v48, %v5269_v7  ;;  %v5275_v39 = vadd.f32 %v5274_v16, %v5273_v14  ;;  %v5279_v38 = vadd.f32 %v5278_v57, %v5250_v6  ;;  %v5311_v51 = vsel %vm1425_vm9, %v5215_v28, %v5310_v31 }
 0xbf9   : > { %v5221_v27 = vadd.f32 %v5220_v34, %v5219_v58  ;;  %v5225_v40 = vadd.f32 %v5224_v26, %v5223_v19  ;;  %v5229_v5 = vadd.f32 %v5228_v0, %v9264_v30  ;;  %v5284_v49 = vrot.slane %v5251_v10, 4 }
 0xbfa   : > { %v5327_v43 = vsel %vm1425_vm9, %v5271_v35, %v5326_v44  ;;  %v5276_v60 = vrot.slane %v5275_v39, 1  ;;  %v5280_v46 = vrot.slane %v5279_v38, 2  ;;  %v9272_v54 = vpop.f32.mrb[36].mxu1 }
 0xbfb   : > { %v5226_v24 = vrot.slane %v5225_v40, 1  ;;  %v5230_v50 = vrot.slane %v5229_v5, 2  ;;  %v5285_v61 = vadd.f32 %v5284_v49, %v5251_v10  ;;  %v5234_v62 = vrot.slane %v9272_v54, 4  ;;  %v5183_v15 = vpop.f32.mrb[37].mxu1 }
 0xbfc   : > { %v5277_v3 = vadd.f32 %v5276_v60, %v5275_v39  ;;  %v5281_v37 = vadd.f32 %v5280_v46, %v5279_v38  ;;  %v5252_v18 = vmul.f32 %v9272_v54, %v9272_v54  ;;  %v5312_v8 = vsel %vm1427_vm10, %v5221_v27, %v5311_v51 }
 0xbfd   : > { %v5227_v55 = vadd.f32 %v5226_v24, %v5225_v40  ;;  %v5231_v56 = vadd.f32 %v5230_v50, %v5229_v5  ;;  %v5286_v59 = vrot.slane %v5285_v61, 2  ;;  %v5235_v2 = vadd.f32 %v5234_v62, %v9272_v54  ;;  %v7755_v24 = vld [vmem:[%s9426_s8] sm:$0xf] }
 0xbfe   : > { %v5282_v22 = vrot.slane %v5281_v37, 1  ;;  %v5290_v12 = vrot.slane %v5252_v18, 4  ;;  %v9279_v33 = vpop.f32.mrb[38].mxu1  ;;  %v5328_v53 = vsel %vm1427_vm10, %v5277_v3, %v5327_v43 }
 0xbff   : > { %v5232_v25 = vrot.slane %v5231_v56, 1  ;;  %v5287_v20 = vadd.f32 %v5286_v59, %v5285_v61  ;;  %v5236_v47 = vrot.slane %v5235_v2, 2  ;;  %v5240_v17 = vrot.slane %v9279_v33, 4  ;;  %v5188_v23 = vpop.f32.mrb[39].mxu1  ;;  %v5865_v59 = vld [vmem:[#allocation9 + $0x88] sm:$0xff] }
 0xc00   : > { %v5283_v1 = vadd.f32 %v5282_v22, %v5281_v37  ;;  %v5291_v31 = vadd.f32 %v5290_v12, %v5252_v18  ;;  %v5253_v52 = vmul.f32 %v9279_v33, %v9279_v33  ;;  %v5313_v45 = vsel %vm1429_vm11, %v5227_v55, %v5312_v8  ;;  %v5897_v12 = vld [vmem:[#allocation9 + $0x188] sm:$0xff] }
 0xc01   : > { %v5233_v4 = vadd.f32 %v5232_v25, %v5231_v56  ;;  %v5288_v32 = vrot.slane %v5287_v20, 1  ;;  %v5237_v7 = vadd.f32 %v5236_v47, %v5235_v2  ;;  %v5241_v14 = vadd.f32 %v5240_v17, %v9279_v33  ;;  %v5864_v56 = vld [vmem:[#allocation9 + $0x80] sm:$0xff]  ;;  %v5849_v25 = vld [vmem:[#allocation9 + $0x8] sm:$0xff] }
 0xc02   : > { %v5292_v6 = vrot.slane %v5291_v31, 2  ;;  %v5296_v44 = vrot.slane %v5253_v52, 4  ;;  %v5329_v58 = vsel %vm1429_vm11, %v5283_v1, %v5328_v53  ;;  %v5896_v2 = vld [vmem:[#allocation9 + $0x180] sm:$0xff]  ;;  %v7397_v22 = vpack.c.bf16 %v5865_v59, %v5864_v56  ;;  %v5881_v23 = vld [vmem:[#allocation9 + $0x108] sm:$0xff] }
 0xc03   : > { %v5289_v19 = vadd.f32 %v5288_v32, %v5287_v20  ;;  %v5238_v28 = vrot.slane %v5237_v7, 1  ;;  %v5242_v48 = vrot.slane %v5241_v14, 2  ;;  %v5314_v16 = vsel %vm1431_vm12, %v5233_v4, %v5313_v45  ;;  %v5848_v53 = vld [vmem:[#allocation9] sm:$0xff]  ;;  %v5898_v45 = vld [vmem:[#allocation9 + $0x190] sm:$0xff]  ;;  %v5899_v32 = vld [vmem:[#allocation9 + $0x198] sm:$0xff] }
 0xc04   : > { %v5293_v57 = vadd.f32 %v5292_v6, %v5291_v31  ;;  %v5297_v34 = vadd.f32 %v5296_v44, %v5253_v52  ;;  %v7429_v20 = vpack.c.bf16 %v5897_v12, %v5896_v2  ;;  %v7399_v47 = vpack.c.bf16 %v5849_v25, %v5848_v53  ;;  %v5880_v17 = vld [vmem:[#allocation9 + $0x100] sm:$0xff]  ;;  %v5866_v31 = vld [vmem:[#allocation9 + $0x90] sm:$0xff]  ;;  %v5867_v52 = vld [vmem:[#allocation9 + $0x98] sm:$0xff] }
 0xc05   : > { %v5243_v26 = vadd.f32 %v5242_v48, %v5241_v14  ;;  %v5239_v0 = vadd.f32 %v5238_v28, %v5237_v7  ;;  %v5330_v10 = vsel %vm1431_vm12, %v5289_v19, %v5329_v58  ;;  %v7431_v1 = vpack.c.bf16 %v5881_v23, %v5880_v17  ;;  %v5850_v7 = vld [vmem:[#allocation9 + $0x10] sm:$0xff]  ;;  %v5851_v14 = vld [vmem:[#allocation9 + $0x18] sm:$0xff]  ;;  %v5868_v28 = vld [vmem:[#allocation9 + $0xa0] sm:$0xff] }
 0xc06   : > { %v5294_v42 = vrot.slane %v5293_v57, 1  ;;  %v5298_v35 = vrot.slane %v5297_v34, 2  ;;  %7430 = vmatprep.subr.bf16.mxu1 %v7429_v20  ;;  %v7401_v4 = vpack.c.bf16 %v5867_v52, %v5866_v31  ;;  %v7433_v6 = vpack.c.bf16 %v5899_v32, %v5898_v45  ;;  %v5882_v58 = vld [vmem:[#allocation9 + $0x110] sm:$0xff]  ;;  %v5883_v19 = vld [vmem:[#allocation9 + $0x118] sm:$0xff]  ;;  %v5856_v56 = vld [vmem:[#allocation9 + $0x40] sm:$0xff] }
 0xc07   : > { %v5244_v39 = vrot.slane %v5243_v26, 1  ;;  %v5315_v38 = vsel %vm1433_vm13, %v5239_v0, %v5314_v16  ;;  %7432 = vmatpush3.bf16.msra.mxu1 %v7431_v1  ;;  %v7403_v44 = vpack.c.bf16 %v5851_v14, %v5850_v7  ;;  %v7435_v48 = vpack.c.bf16 %v5883_v19, %v5882_v58  ;;  %v5869_v16 = vld [vmem:[#allocation9 + $0xa8] sm:$0xff]  ;;  %v5874_v53 = vld [vmem:[#allocation9 + $0xd0] sm:$0xff]  ;;  %v5875_v25 = vld [vmem:[#allocation9 + $0xd8] sm:$0xff] }
 0xc08   : > { %v5295_v51 = vadd.f32 %v5294_v42, %v5293_v57  ;;  %v5299_v27 = vadd.f32 %v5298_v35, %v5297_v34  ;;  %v5900_v57 = vld [vmem:[#allocation9 + $0x1a0] sm:$0xff]  ;;  %v5901_v34 = vld [vmem:[#allocation9 + $0x1a8] sm:$0xff]  ;;  %7434 = vmatprep.subr.bf16.mxu1 %v7433_v6  ;;  %v5906_v20 = vld [vmem:[#allocation9 + $0x1d0] sm:$0xff]  ;;  %v7417_v1 = vpack.c.bf16 %v5875_v25, %v5874_v53 }
 0xc09   : > { %v5245_v40 = vadd.f32 %v5244_v39, %v5243_v26  ;;  %v7405_v26 = vpack.c.bf16 %v5869_v16, %v5868_v28  ;;  %v7437_v0 = vpack.c.bf16 %v5901_v34, %v5900_v57  ;;  %v5853_v42 = vld [vmem:[#allocation9 + $0x28] sm:$0xff]  ;;  %v5884_v35 = vld [vmem:[#allocation9 + $0x120] sm:$0xff]  ;;  %v5858_v31 = vld [vmem:[#allocation9 + $0x50] sm:$0xff] }
 0xc0a   : > { %v5300_v5 = vrot.slane %v5299_v27, 1  ;;  %v5331_v49 = vsel %vm1433_vm13, %v5295_v51, %v5330_v10  ;;  %v5852_v10 = vld [vmem:[#allocation9 + $0x20] sm:$0xff]  ;;  %v5870_v51 = vld [vmem:[#allocation9 + $0xb0] sm:$0xff]  ;;  %v5857_v59 = vld [vmem:[#allocation9 + $0x48] sm:$0xff] }
 0xc0b   : > { %v5316_v43 = vsel %vm1435_vm14, %v5245_v40, %v5315_v38  ;;  %7436 = vmatpush3.bf16.msra.mxu1 %v7435_v48  ;;  %v7407_v39 = vpack.c.bf16 %v5853_v42, %v5852_v10  ;;  %v5885_v38 = vld [vmem:[#allocation9 + $0x128] sm:$0xff]  ;;  %v7415_v17 = vpack.c.bf16 %v5857_v59, %v5856_v56  ;;  %v5859_v52 = vld [vmem:[#allocation9 + $0x58] sm:$0xff]  ;;  %v5890_v45 = vld [vmem:[#allocation9 + $0x150] sm:$0xff] }
 0xc0c   : > { %6901 = vmatprep.mubr.f32.mxu0 %v5316_v43  ;;  %v5301_v60 = vadd.f32 %v5300_v5, %v5299_v27  ;;  %v5871_v27 = vld [vmem:[#allocation9 + $0xb8] sm:$0xff]  ;;  %7438 = vmatprep.subr.bf16.mxu1 %v7437_v0  ;;  %v7439_v40 = vpack.c.bf16 %v5885_v38, %v5884_v35  ;;  %v5889_v12 = vld [vmem:[#allocation9 + $0x148] sm:$0xff]  ;;  %v5876_v7 = vld [vmem:[#allocation9 + $0xe0] sm:$0xff]  ;;  %v7419_v58 = vpack.c.bf16 %v5859_v52, %v5858_v31 }
 0xc0d   : > { %v7409_v5 = vpack.c.bf16 %v5871_v27, %v5870_v51  ;;  %v5903_v43 = vld [vmem:[#allocation9 + $0x1b8] sm:$0xff]  ;;  %v5877_v14 = vld [vmem:[#allocation9 + $0xe8] sm:$0xff]  ;;  %v5908_v6 = vld [vmem:[#allocation9 + $0x1e0] sm:$0xff] }
 0xc0e   : > { %v5332_v46 = vsel %vm1435_vm14, %v5301_v60, %v5331_v49  ;;  %v5902_v49 = vld [vmem:[#allocation9 + $0x1b0] sm:$0xff]  ;;  %v5891_v32 = vld [vmem:[#allocation9 + $0x158] sm:$0xff]  ;;  %v7421_v28 = vpack.c.bf16 %v5877_v14, %v5876_v7  ;;  %v5860_v48 = vld [vmem:[#allocation9 + $0x60] sm:$0xff] }
 0xc0f   : > { %6902 = vmatmul.mubr.f32.vlgmr.msra.gmra.mrb[36].mxu0 %v5332_v46  ;;  %v5854_v60 = vld [vmem:[#allocation9 + $0x30] sm:$0xff]  ;;  %v7441_v46 = vpack.c.bf16 %v5903_v43, %v5902_v49  ;;  %7440 = vmatpush3.bf16.msra.mxu1 %v7439_v40  ;;  %v7451_v19 = vpack.c.bf16 %v5891_v32, %v5890_v45  ;;  %v5861_v16 = vld [vmem:[#allocation9 + $0x68] sm:$0xff]  ;;  %v5892_v57 = vld [vmem:[#allocation9 + $0x160] sm:$0xff] }
 0xc10   : > { %6905 = vmatpush3.msk.msra.mxu0 %vm1544_vm15, %v7755_v24  ;;  %v5855_v24 = vld [vmem:[#allocation9 + $0x38] sm:$0xff]  ;;  %v5878_v0 = vld [vmem:[#allocation9 + $0xf0] sm:$0xff]  ;;  %v6518_v56 = vld [vmem:[%s9467_s28 + $0x1] ss:$0 sm:$0xff] }
 0xc11   : > { %7398 = vmatprep.subr.bf16.mxu0 %v7397_v22  ;;  %7442 = vmatprep.subr.bf16.mxu1 %v7441_v46  ;;  %v5888_v22 = vld [vmem:[#allocation9 + $0x140] sm:$0xff]  ;;  %v5879_v10 = vld [vmem:[#allocation9 + $0xf8] sm:$0xff]  ;;  %v5910_v42 = vld [vmem:[#allocation9 + $0x1f0] sm:$0xff] }
 0xc12   : > { %v7447_v23 = vpack.c.bf16 %v5889_v12, %v5888_v22  ;;  %v5911_v35 = vld [vmem:[#allocation9 + $0x1f8] sm:$0xff]  ;;  %v7425_v51 = vpack.c.bf16 %v5879_v10, %v5878_v0  ;;  %v5862_v27 = vld [vmem:[#allocation9 + $0x70] sm:$0xff]  ;;  %v5929_v46 = vld [vmem:[#allocation9 + $0x288] sm:$0xff] }
 0xc13   : > { %v5863_v40 = vld [vmem:[#allocation9 + $0x78] sm:$0xff]  ;;  %v7457_v49 = vpack.c.bf16 %v5911_v35, %v5910_v42 }
 0xc14   : > { %v5895_v43 = vld [vmem:[#allocation9 + $0x178] sm:$0xff] }
 0xce2   : > { %v6903_v50 = vpop.f32.mrb[36].mxu0 }
 0xce3   : > { %v5400_v61 = vpop.f32.mrb[37].mxu0  ;;  %v5410_v15 = vmul.f32 0.00390625, %v6903_v50  ;;  %v5886_v50 = vld [vmem:[#allocation9 + $0x130] sm:$0xff] }
 0xce4   : > { %v5409_v62 = vmul.f32 0.00390625, %v5400_v61  ;;  %v5887_v61 = vld [vmem:[#allocation9 + $0x138] sm:$0xff] }
 0xce6   : > { %v5411_v3 = vmul.f32 %v5409_v62, %v5409_v62  ;;  %6906 = vmatprep.mubr.msk.f32.mxu0 %vm1537_vm1, %v5409_v62  ;;  %v7411_v62 = vpack.c.bf16 %v5855_v24, %v5854_v60  ;;  %v5928_v60 = vld [vmem:[#allocation9 + $0x280] sm:$0xff] }
 0xce7   : > { %v5960_v24 = vld [vmem:[#allocation9 + $0x380] sm:$0xff] }
 0xce8   : > { %v5412_v37 = vsub.f32 %v5410_v15, %v5411_v3  ;;  %v5872_v15 = vld [vmem:[#allocation9 + $0xc0] sm:$0xff]  ;;  %v5873_v3 = vld [vmem:[#allocation9 + $0xc8] sm:$0xff] }
 0xcea   : > { %v5413_v18 = vmax.f32 %v5412_v37, 0.0  ;;  %v5904_v37 = vld [vmem:[#allocation9 + $0x1c0] sm:$0xff] }
 0xcec   : > { %v5414_v8 = vadd.f32 1e-05, %v5413_v18  ;;  %v7443_v18 = vpack.c.bf16 %v5887_v61, %v5886_v50  ;;  %v5961_v50 = vld [vmem:[#allocation9 + $0x388] sm:$0xff]  ;;  %v7427_v61 = vpack.c.bf16 %v5863_v40, %v5862_v27 }
 0xcee   : > { %7751 = vrsqrt.f32 %v5414_v8  ;;  %v7413_v8 = vpack.c.bf16 %v5873_v3, %v5872_v15  ;;  %7444 = vmatpush3.bf16.msra.mxu1 %v7443_v18  ;;  %v7461_v15 = vpack.c.bf16 %v5929_v46, %v5928_v60  ;;  %v7493_v3 = vpack.c.bf16 %v5961_v50, %v5960_v24 }
 0xcef   : > { %v7931_v24 = vmov 1934713408  }
 0xcf0   : > { %v5779_v50 = vunpack.c.l.s4 %v7931_v24 }
 0xcf8   : > { %v7752_v55 = vpop.eup %7751 }
 0xcf9   : > { %6907 = vmatmul.mubr.msk.f32.vlgmr.msra.gmra.mrb[38].mxu0 %vm1537_vm1, %v7752_v55  ;;  %v5905_v55 = vld [vmem:[#allocation9 + $0x1c8] sm:$0xff] }
 0xcfa   : > { %7400 = vmatpush3.bf16.msra.mxu0 %v7399_v47  ;;  %v7445_v2 = vpack.c.bf16 %v5905_v55, %v5904_v37  ;;  %v5907_v47 = vld [vmem:[#allocation9 + $0x1d8] sm:$0xff]  ;;  %v6517_v37 = vld [vmem:[%s9423_s5 + $0x1] ss:$0 sm:$0xff] }
 0xcfb   : > { %7402 = vmatprep.subr.bf16.mxu0 %v7401_v4  ;;  %v7449_v4 = vpack.c.bf16 %v5907_v47, %v5906_v20  ;;  %v7930_v47 = vmov 1983009808  }
 0xcfc   : > { %7446 = vmatprep.subr.bf16.mxu1 %v7445_v2 }
 0xcfd   : > { %7448 = vmatpush3.bf16.msra.mxu1 %v7447_v23 }
 0xcfe   : > { %7404 = vmatpush3.bf16.msra.mxu0 %v7403_v44  ;;  %v5909_v44 = vld [vmem:[#allocation9 + $0x1e8] sm:$0xff]  ;;  %7450 = vmatprep.subr.bf16.mxu1 %v7449_v4 }
 0xcff   : > { %7406 = vmatprep.subr.bf16.mxu0 %v7405_v26  ;;  %v7453_v34 = vpack.c.bf16 %v5909_v44, %v5908_v6  ;;  %v5893_v26 = vld [vmem:[#allocation9 + $0x168] sm:$0xff] }
 0xd00   : > { %v7455_v38 = vpack.c.bf16 %v5893_v26, %v5892_v57 }
 0xd01   : > { %7452 = vmatpush3.bf16.msra.mxu1 %v7451_v19 }
 0xd02   : > { %7408 = vmatpush3.bf16.msra.mxu0 %v7407_v39  ;;  %v7423_v39 = vpack.c.bf16 %v5861_v16, %v5860_v48  ;;  %7454 = vmatprep.subr.bf16.mxu1 %v7453_v34 }
 0xd03   : > { %7410 = vmatprep.subr.bf16.mxu0 %v7409_v5  ;;  %v5894_v5 = vld [vmem:[#allocation9 + $0x170] sm:$0xff] }
 0xd05   : > { %7456 = vmatpush3.bf16.msra.mxu1 %v7455_v38 }
 0xd06   : > { %7412 = vmatpush3.bf16.msra.mxu0 %v7411_v62  ;;  %v7459_v62 = vpack.c.bf16 %v5895_v43, %v5894_v5  ;;  %7458 = vmatprep.subr.bf16.mxu1 %v7457_v49 }
 0xd07   : > { %7414 = vmatprep.subr.bf16.mxu0 %v7413_v8 }
 0xd09   : > { %7460 = vmatpush3.bf16.msra.mxu1 %v7459_v62 }
 0xd0a   : > { %7416 = vmatpush3.bf16.msra.mxu0 %v7415_v17  ;;  %7494 = vmatprep.subr.bf16.mxu1 %v7493_v3  ;;  %v5715_v17 = vunpack.c.l.s4 %v7930_v47 }
 0xd0b   : > { %7418 = vmatprep.subr.bf16.mxu0 %v7417_v1 }
 0xd0c   : > { %v5716_v49 = vunpack.c.0.s8 %v5715_v17 }
 0xd0e   : > { %7420 = vmatpush3.bf16.msra.mxu0 %v7419_v58 }
 0xd0f   : > { %7422 = vmatprep.subr.bf16.mxu0 %v7421_v28 }
 0xd12   : > { %7424 = vmatpush3.bf16.msra.mxu0 %v7423_v39 }
 0xd13   : > { %7426 = vmatprep.subr.bf16.mxu0 %v7425_v51 }
 0xd16   : > { %7428 = vmatpush3.bf16.msra.mxu0 %v7427_v61 }
 0xd17   : > { %7462 = vmatprep.subr.bf16.mxu0 %v7461_v15 }
 0xdcc   : > { %v6908_v18 = vpop.f32.mrb[38].mxu0 }
 0xdcd   : > { %v5501_v8 = vmul.f32 %v6908_v18, %v6517_v37  ;;  %v5488_v55 = vpop.f32.mrb[39].mxu0 }
 0xdcf   : > { %v5509_v59 = vcombine.high %v5501_v8, %v5501_v8  ;;  %v5516_v2 = vrot.slane %v5501_v8, %v8665_v13  ;;  %v5502_v22 = vmul.f32 %v5501_v8, %v5488_v55 }
 0xdd1   : > { %v5523_v12 = vrot.slane %v5509_v59, %v8665_v13  ;;  %v5524_v53 = vcombine.high %v5516_v2, %v5516_v2  ;;  %v5532_v25 = vrot.slane %v5516_v2, %v8665_v13  ;;  %v5507_v20 = vsub.f32 %v6518_v56, %v5502_v22 }
 0xdd3   : > { %v5525_v23 = vcombine.high %v5523_v12, %v5523_v12  ;;  %v5539_v1 = vrot.slane %v5523_v12, %v8665_v13  ;;  %v5546_v31 = vrot.slane %v5524_v53, %v8665_v13  ;;  %v5554_v52 = vcombine.high %v5532_v25, %v5532_v25 }
 0xdd4   : > { %v5561_v45 = vrot.slane %v5532_v25, %v8672_v21  ;;  %v5607_v4 = vcombine.high %v5507_v20, %v5507_v20  ;;  %v5614_v32 = vrot.slane %v5507_v20, %v8665_v13  ;;  %v5719_v12 = vsub.s32 %v5716_v49, %v8659_v11 }
 0xdd5   : > { %v5553_v7 = vrot.slane %v5525_v23, %v8665_v13  ;;  %v5555_v14 = vcombine.high %v5539_v1, %v5539_v1  ;;  %v5556_v6 = vcombine.high %v5546_v31, %v5546_v31  ;;  %v5565_v44 = vrot.slane %v5546_v31, %v8672_v21 }
 0xdd6   : > { %v5569_v58 = vrot.slane %v5554_v52, %v8672_v21  ;;  %v5577_v19 = vrot.slane %v5539_v1, %v8672_v21  ;;  %v5598_v28 = vmul.f32 %v5561_v45, %v9232_v29  ;;  %v5621_v48 = vrot.slane %v5607_v4, %v8665_v13 }
 0xdd7   : > { %v5557_v16 = vcombine.high %v5553_v7, %v5553_v7  ;;  %v5573_v57 = vrot.slane %v5556_v6, %v8672_v21  ;;  %v5581_v34 = vrot.slane %v5553_v7, %v8672_v21  ;;  %v5585_v26 = vrot.slane %v5555_v14, %v8672_v21 }
 0xdd8   : > { %v5599_v0 = vmul.f32 %v5565_v44, %v9238_v36  ;;  %v5600_v10 = vmul.f32 %v5569_v58, %v9244_v41  ;;  %v5602_v42 = vmul.f32 %v5577_v19, %v9256_v63  ;;  %v5622_v35 = vcombine.high %v5614_v32, %v5614_v32 }
 0xdd9   : > { %v5589_v39 = vrot.slane %v5557_v16, %v8672_v21  ;;  %v5601_v29 = vmul.f32 %v5573_v57, %v9250_v9  ;;  %v5603_v38 = vmul.f32 %v5581_v34, %v9264_v30  ;;  %v5604_v51 = vmul.f32 %v5585_v26, %v9272_v54 }
 0xdda   : > { %v5623_v27 = vcombine.high %v5621_v48, %v5621_v48  ;;  %v5630_v40 = vrot.slane %v5614_v32, %v8665_v13  ;;  %v5637_v5 = vrot.slane %v5621_v48, %v8665_v13  ;;  %v5644_v36 = vrot.slane %v5622_v35, %v8665_v13  ;;  %v5944_v35 = vld [vmem:[#allocation9 + $0x300] sm:$0xff] }
 0xddb   : > { %v5605_v41 = vmul.f32 %v5589_v39, %v9279_v33  ;;  %v5780_v31 = vunpack.c.0.s8 %v5779_v50  ;;  %v5945_v39 = vld [vmem:[#allocation9 + $0x308] sm:$0xff] }
 0xddc   : > { %v5651_v63 = vrot.slane %v5623_v27, %v8665_v13  ;;  %v5652_v43 = vcombine.high %v5630_v40, %v5630_v40  ;;  %v5653_v60 = vcombine.high %v5637_v5, %v5637_v5  ;;  %v5654_v46 = vcombine.high %v5644_v36, %v5644_v36 }
 0xddd   : > { %v5659_v9 = vrot.slane %v5630_v40, %v8672_v21  ;;  %v5663_v30 = vrot.slane %v5644_v36, %v8672_v21  ;;  %v5675_v54 = vrot.slane %v5637_v5, %v8672_v21  ;;  %v5783_v19 = vsub.s32 %v5780_v31, %v8659_v11 }
 0xdde   : > { %v5655_v61 = vcombine.high %v5651_v63, %v5651_v63  ;;  %v5667_v62 = vrot.slane %v5652_v43, %v8672_v21  ;;  %v5671_v15 = vrot.slane %v5654_v46, %v8672_v21  ;;  %v5679_v33 = vrot.slane %v5651_v63, %v8672_v21 }
 0xddf   : > { %v5683_v13 = vrot.slane %v5653_v60, %v8672_v21  ;;  %v5696_v3 = vadd.f32 %v5659_v9, %v5598_v28  ;;  %v5697_v37 = vadd.f32 %v5663_v30, %v5599_v0  ;;  %v5700_v18 = vadd.f32 %v5675_v54, %v5602_v42  ;;  %v5912_v28 = vld [vmem:[#allocation9 + $0x200] sm:$0xff]  ;;  %v5913_v42 = vld [vmem:[#allocation9 + $0x208] sm:$0xff]  ;;  %v5930_v9 = vld [vmem:[#allocation9 + $0x290] sm:$0xff] }
 0xde0   : > { %v5687_v8 = vrot.slane %v5655_v61, %v8672_v21  ;;  %v5698_v55 = vadd.f32 %v5667_v62, %v5600_v10  ;;  %v5699_v56 = vadd.f32 %v5671_v15, %v5601_v29  ;;  %v5701_v59 = vadd.f32 %v5679_v33, %v5603_v38  ;;  %v5931_v61 = vld [vmem:[#allocation9 + $0x298] sm:$0xff]  ;;  %v5962_v62 = vld [vmem:[#allocation9 + $0x390] sm:$0xff] }
 0xde1   : > { %v5704_v2 = vmax.f32 %v5696_v3, 0.0  ;;  %v5702_v22 = vadd.f32 %v5683_v13, %v5604_v51  ;;  %v5705_v53 = vmax.f32 %v5697_v37, 0.0  ;;  %v5708_v17 = vmax.f32 %v5700_v18, 0.0  ;;  %v5963_v15 = vld [vmem:[#allocation9 + $0x398] sm:$0xff]  ;;  %v5914_v18 = vld [vmem:[#allocation9 + $0x210] sm:$0xff] }
 0xde2   : > { %v5706_v25 = vmax.f32 %v5698_v55, 0.0  ;;  %v5703_v20 = vadd.f32 %v5687_v8, %v5605_v41  ;;  %v5707_v47 = vmax.f32 %v5699_v56, 0.0  ;;  %v5709_v23 = vmax.f32 %v5701_v59, 0.0  ;;  %v5915_v8 = vld [vmem:[#allocation9 + $0x218] sm:$0xff]  ;;  %v5946_v59 = vld [vmem:[#allocation9 + $0x310] sm:$0xff] }
 0xde3   : > { %v5710_v1 = vmax.f32 %v5702_v22, 0.0  ;;  %v7463_v36 = vpack.c.bf16 %v5913_v42, %v5912_v28  ;;  %v7495_v41 = vpack.c.bf16 %v5945_v39, %v5944_v35  ;;  %v5932_v22 = vld [vmem:[#allocation9 + $0x2a0] sm:$0xff]  ;;  %v5937_v42 = vld [vmem:[#allocation9 + $0x2c8] sm:$0xff] }
 0xde4   : > { %v5711_v52 = vmax.f32 %v5703_v20, 0.0  ;;  %v5712_v45 = vcombine.low %v5704_v2, %v5706_v25  ;;  %v5728_v4 = vcombine.low %v5705_v53, %v5707_v47  ;;  %v5713_v32 = vcombine.high %v5704_v2, %v5706_v25  ;;  %v5947_v2 = vld [vmem:[#allocation9 + $0x318] sm:$0xff]  ;;  %v5968_v35 = vld [vmem:[#allocation9 + $0x3c0] sm:$0xff]  ;;  %v5969_v39 = vld [vmem:[#allocation9 + $0x3c8] sm:$0xff] }
 0xde5   : > { %v5744_v21 = vcombine.low %v5708_v17, %v5710_v1  ;;  %v5729_v7 = vcombine.high %v5705_v53, %v5707_v47  ;;  %v5745_v14 = vcombine.high %v5708_v17, %v5710_v1  ;;  %v7465_v25 = vpack.c.bf16 %v5931_v61, %v5930_v9  ;;  %v5933_v47 = vld [vmem:[#allocation9 + $0x2a8] sm:$0xff]  ;;  %v5964_v17 = vld [vmem:[#allocation9 + $0x3a0] sm:$0xff]  ;;  %v5922_v9 = vld [vmem:[#allocation9 + $0x250] sm:$0xff] }
 0xde6   : > { %v5720_v6 = vrot.slane %v5712_v45, %v5719_v12  ;;  %v5736_v44 = vrot.slane %v5728_v4, %v5719_v12  ;;  %v5760_v58 = vcombine.low %v5709_v23, %v5711_v52  ;;  %v5727_v48 = vrot.slane %v5713_v32, %v5719_v12  ;;  %v5917_v45 = vld [vmem:[#allocation9 + $0x228] sm:$0xff]  ;;  %v5923_v61 = vld [vmem:[#allocation9 + $0x258] sm:$0xff] }
 0xde7   : > { %v5743_v16 = vrot.slane %v5729_v7, %v5719_v12  ;;  %v5761_v57 = vcombine.high %v5709_v23, %v5711_v52  ;;  %v5752_v34 = vrot.slane %v5744_v21, %v5719_v12  ;;  %v5759_v29 = vrot.slane %v5745_v14, %v5719_v12  ;;  %v5965_v23 = vld [vmem:[#allocation9 + $0x3a8] sm:$0xff]  ;;  %v5916_v52 = vld [vmem:[#allocation9 + $0x220] sm:$0xff]  ;;  %v5934_v14 = vld [vmem:[#allocation9 + $0x2b0] sm:$0xff] }
 0xde8   : > { %v5768_v26 = vrot.slane %v5760_v58, %v5719_v12  ;;  %v5776_v0 = vcombine.low %v5720_v6, %v5736_v44  ;;  %v5777_v10 = vcombine.high %v5720_v6, %v5736_v44  ;;  %v7497_v20 = vpack.c.bf16 %v5963_v15, %v5962_v62  ;;  %v5948_v21 = vld [vmem:[#allocation9 + $0x320] sm:$0xff]  ;;  %v5949_v7 = vld [vmem:[#allocation9 + $0x328] sm:$0xff]  ;;  %v5935_v6 = vld [vmem:[#allocation9 + $0x2b8] sm:$0xff] }
 0xde9   : > { %v5775_v38 = vrot.slane %v5761_v57, %v5719_v12  ;;  %v5792_v51 = vcombine.low %v5727_v48, %v5743_v16  ;;  %v5793_v27 = vcombine.high %v5727_v48, %v5743_v16  ;;  %v7467_v1 = vpack.c.bf16 %v5915_v8, %v5914_v18  ;;  %v5966_v44 = vld [vmem:[#allocation9 + $0x3b0] sm:$0xff]  ;;  %v5967_v58 = vld [vmem:[#allocation9 + $0x3b8] sm:$0xff]  ;;  %v5972_v18 = vld [vmem:[#allocation9 + $0x3e0] sm:$0xff] }
 0xdea   : > { %v5808_v40 = vcombine.low %v5752_v34, %v5768_v26  ;;  %v5809_v5 = vcombine.high %v5752_v34, %v5768_v26  ;;  %v5784_v63 = vrot.slane %v5776_v0, %v5783_v19  ;;  %v5791_v60 = vrot.slane %v5777_v10, %v5783_v19  ;;  %v5918_v48 = vld [vmem:[#allocation9 + $0x230] sm:$0xff]  ;;  %v5919_v16 = vld [vmem:[#allocation9 + $0x238] sm:$0xff]  ;;  %v5936_v10 = vld [vmem:[#allocation9 + $0x2c0] sm:$0xff] }
 0xdeb   : > { %v5824_v11 = vcombine.low %v5759_v29, %v5775_v38  ;;  %v5825_v49 = vcombine.high %v5759_v29, %v5775_v38  ;;  %v9344_v30 = vrot.slane %v5792_v51, %v5783_v19  ;;  %v9348_v24 = vrot.slane %v5793_v27, %v5783_v19  ;;  %v5950_v26 = vld [vmem:[#allocation9 + $0x330] sm:$0xff]  ;;  %v5951_v0 = vld [vmem:[#allocation9 + $0x338] sm:$0xff]  ;;  %v5920_v51 = vld [vmem:[#allocation9 + $0x240] sm:$0xff] }
 0xdec   : > { %v5816_v43 = vrot.slane %v5808_v40, %v5783_v19  ;;  %v5823_v46 = vrot.slane %v5809_v5, %v5783_v19  ;;  %v7499_v31 = vpack.c.bf16 %v5947_v2, %v5946_v59  ;;  %v7469_v4 = vpack.c.bf16 %v5933_v47, %v5932_v22  ;;  %v5921_v27 = vld [vmem:[#allocation9 + $0x248] sm:$0xff]  ;;  %v5924_v59 = vld [vmem:[#allocation9 + $0x260] sm:$0xff] }
 0xded   : > { %v9346_v54 = vrot.slane %v5824_v11, %v5783_v19  ;;  %v9350_v50 = vrot.slane %v5825_v49, %v5783_v19  ;;  %v7501_v32 = vpack.c.bf16 %v5965_v23, %v5964_v17  ;;  %v7471_v19 = vpack.c.bf16 %v5917_v45, %v5916_v52  ;;  %v5938_v11 = vld [vmem:[#allocation9 + $0x2d0] sm:$0xff]  ;;  %v5939_v49 = vld [vmem:[#allocation9 + $0x2d8] sm:$0xff]  ;;  %v5973_v8 = vld [vmem:[#allocation9 + $0x3e8] sm:$0xff] }
 0xdee   : > { %v5841_v33 = vcombine.high %v5784_v63, %v5816_v43  ;;  %v5842_v13 = vcombine.low %v5791_v60, %v5823_v46  ;;  %v5843_v3 = vcombine.high %v5791_v60, %v5823_v46  ;;  %v5840_v37 = vcombine.low %v5784_v63, %v5816_v43  ;;  %v5970_v63 = vld [vmem:[#allocation9 + $0x3d0] sm:$0xff]  ;;  %v5971_v43 = vld [vmem:[#allocation9 + $0x3d8] sm:$0xff]  ;;  %v5925_v2 = vld [vmem:[#allocation9 + $0x268] sm:$0xff] }
 0xdef   : > { %v5845_v55 = vcombine.high %v9344_v30, %v9346_v54  ;;  %v5847_v56 = vcombine.high %v9348_v24, %v9350_v50  ;;  %v5844_v12 = vcombine.low %v9344_v30, %v9346_v54  ;;  %v5846_v53 = vcombine.low %v9348_v24, %v9350_v50  ;;  %v5957_v47 = vld [vmem:[#allocation9 + $0x368] sm:$0xff]  ;;  %v5942_v17 = vld [vmem:[#allocation9 + $0x2f0] sm:$0xff]  ;;  %v5943_v23 = vld [vmem:[#allocation9 + $0x2f8] sm:$0xff] }
 0xdf0   : > { %6047 = vmatprep.mubr.f32.mxu0 %v5841_v33  ;;  %6117 = vmatprep.mubr.f32.mxu1 %v5843_v3  ;;  %v7503_v28 = vpack.c.bf16 %v5949_v7, %v5948_v21  ;;  %v7473_v57 = vpack.c.bf16 %v5935_v6, %v5934_v14  ;;  %v7505_v34 = vpack.c.bf16 %v5967_v58, %v5966_v44  ;;  %v5954_v33 = vld [vmem:[#allocation9 + $0x350] sm:$0xff]  ;;  %v5940_v3 = vld [vmem:[#allocation9 + $0x2e0] sm:$0xff]  ;;  %v5927_v7 = vld [vmem:[#allocation9 + $0x278] sm:$0xff] }
 0xdf1   : > { %6048 = vmatmul.mubr.f32.vlgmr.msra.gmra.mrb[40].mxu0 %v5840_v37  ;;  %6118 = vmatmul.mubr.f32.vlgmr.msra.gmra.mrb[40].mxu1 %v5842_v13  ;;  %v7475_v29 = vpack.c.bf16 %v5919_v16, %v5918_v48  ;;  %v7507_v38 = vpack.c.bf16 %v5951_v0, %v5950_v26  ;;  %v7477_v40 = vpack.c.bf16 %v5937_v42, %v5936_v10  ;;  %v5955_v13 = vld [vmem:[#allocation9 + $0x358] sm:$0xff]  ;;  %v5941_v37 = vld [vmem:[#allocation9 + $0x2e8] sm:$0xff]  ;;  %v5958_v14 = vld [vmem:[#allocation9 + $0x370] sm:$0xff] }
 0xdf2   : > { %7464 = vmatpush3.bf16.msra.mxu0 %v7463_v36  ;;  %7496 = vmatpush3.bf16.msra.mxu1 %v7495_v41  ;;  %v7509_v5 = vpack.c.bf16 %v5969_v39, %v5968_v35  ;;  %v5952_v36 = vld [vmem:[#allocation9 + $0x340] sm:$0xff]  ;;  %v5953_v41 = vld [vmem:[#allocation9 + $0x348] sm:$0xff]  ;;  %v7479_v60 = vpack.c.bf16 %v5921_v27, %v5920_v51  ;;  %v7481_v62 = vpack.c.bf16 %v5939_v49, %v5938_v11  ;;  %v5959_v6 = vld [vmem:[#allocation9 + $0x378] sm:$0xff] }
 0xdf3   : > { %6187 = vmatprep.mubr.f32.mxu0 %v5845_v55  ;;  %6257 = vmatprep.mubr.f32.mxu1 %v5847_v56  ;;  %v7511_v46 = vpack.c.bf16 %v5953_v41, %v5952_v36  ;;  %v7513_v15 = vpack.c.bf16 %v5971_v43, %v5970_v63  ;;  %v7483_v55 = vpack.c.bf16 %v5923_v61, %v5922_v9  ;;  %v6519_v48 = vld [vmem:[%s9468_s14] ss:$0 sm:$0xff] }
 0xdf4   : > { %7466 = vmatprep.subr.bf16.mxu0 %v7465_v25  ;;  %7498 = vmatprep.subr.bf16.mxu1 %v7497_v20  ;;  %v7515_v56 = vpack.c.bf16 %v5955_v13, %v5954_v33  ;;  %v7485_v22 = vpack.c.bf16 %v5941_v37, %v5940_v3  ;;  %v7517_v25 = vpack.c.bf16 %v5973_v8, %v5972_v18  ;;  %v5956_v20 = vld [vmem:[#allocation9 + $0x360] sm:$0xff] }
 0xdf5   : > { %v7487_v52 = vpack.c.bf16 %v5925_v2, %v5924_v59  ;;  %v7519_v45 = vpack.c.bf16 %v5957_v47, %v5956_v20  ;;  %v7523_v58 = vpack.c.bf16 %v5959_v6, %v5958_v14 }
 0xdf6   : > { %7468 = vmatpush3.bf16.msra.mxu0 %v7467_v1  ;;  %7500 = vmatpush3.bf16.msra.mxu1 %v7499_v31  ;;  %v5974_v1 = vld [vmem:[#allocation9 + $0x3f0] sm:$0xff]  ;;  %v5975_v31 = vld [vmem:[#allocation9 + $0x3f8] sm:$0xff] }
 0xdf7   : > { %7470 = vmatprep.subr.bf16.mxu0 %v7469_v4  ;;  %7502 = vmatprep.subr.bf16.mxu1 %v7501_v32  ;;  %v5926_v4 = vld [vmem:[#allocation9 + $0x270] sm:$0xff]  ;;  %v7489_v32 = vpack.c.bf16 %v5943_v23, %v5942_v17  ;;  %v7521_v21 = vpack.c.bf16 %v5975_v31, %v5974_v1 }
 0xdf8   : > { %v7491_v44 = vpack.c.bf16 %v5927_v7, %v5926_v4 }
 0xdfa   : > { %7472 = vmatpush3.bf16.msra.mxu0 %v7471_v19  ;;  %7504 = vmatpush3.bf16.msra.mxu1 %v7503_v28 }
 0xdfb   : > { %7474 = vmatprep.subr.bf16.mxu0 %v7473_v57  ;;  %7506 = vmatprep.subr.bf16.mxu1 %v7505_v34 }
 0xdfe   : > { %7476 = vmatpush3.bf16.msra.mxu0 %v7475_v29  ;;  %7508 = vmatpush3.bf16.msra.mxu1 %v7507_v38 }
 0xdff   : > { %7478 = vmatprep.subr.bf16.mxu0 %v7477_v40  ;;  %7510 = vmatprep.subr.bf16.mxu1 %v7509_v5 }
 0xe02   : > { %7480 = vmatpush3.bf16.msra.mxu0 %v7479_v60  ;;  %7512 = vmatpush3.bf16.msra.mxu1 %v7511_v46 }
 0xe03   : > { %7482 = vmatprep.subr.bf16.mxu0 %v7481_v62  ;;  %7514 = vmatprep.subr.bf16.mxu1 %v7513_v15 }
 0xe06   : > { %7484 = vmatpush3.bf16.msra.mxu0 %v7483_v55  ;;  %7516 = vmatpush3.bf16.msra.mxu1 %v7515_v56 }
 0xe07   : > { %7486 = vmatprep.subr.bf16.mxu0 %v7485_v22  ;;  %7518 = vmatprep.subr.bf16.mxu1 %v7517_v25 }
 0xe0a   : > { %7488 = vmatpush3.bf16.msra.mxu0 %v7487_v52  ;;  %7520 = vmatpush3.bf16.msra.mxu1 %v7519_v45 }
 0xe0b   : > { %7490 = vmatprep.subr.bf16.mxu0 %v7489_v32  ;;  %7522 = vmatprep.subr.bf16.mxu1 %v7521_v21 }
 0xe0e   : > { %7492 = vmatpush3.bf16.msra.mxu0 %v7491_v44  ;;  %7524 = vmatpush3.bf16.msra.mxu1 %v7523_v58 }
 0xe11   : > { %6188 = vmatmul.mubr.f32.vlgmr.msra.gmra.mrb[42].mxu0 %v5844_v12  ;;  %6258 = vmatmul.mubr.f32.vlgmr.msra.gmra.mrb[42].mxu1 %v5846_v53 }
 0xec4   : > { %v6641_v19 = vpop.f32.mrb[40].mxu0  ;;  %v6676_v28 = vpop.f32.mrb[40].mxu1 }
 0xec5   : > { %v6642_v16 = vpop.f32.mrb[41].mxu0  ;;  %v6677_v57 = vpop.f32.mrb[41].mxu1 }
 0xec6   : > { %v6643_v34 = vadd.f32 %v6642_v16, %v6641_v19  ;;  %v6678_v26 = vadd.f32 %v6677_v57, %v6676_v28 }
 0xec8   : > { %v6050_v0 = vadd.f32 %v6643_v34, %v6519_v48 }
 0xeca   : > { %v6120_v10 = vadd.f32 %v6678_v26, %v6050_v0 }
 0xee4   : > { %v6711_v30 = vpop.f32.mrb[42].mxu0  ;;  %v6746_v54 = vpop.f32.mrb[42].mxu1 }
 0xee5   : > { %v6712_v12 = vpop.f32.mrb[43].mxu0  ;;  %v6747_v24 = vpop.f32.mrb[43].mxu1 }
 0xee6   : > { %v6713_v50 = vadd.f32 %v6712_v12, %v6711_v30  ;;  %v6748_v53 = vadd.f32 %v6747_v24, %v6746_v54 }
 0xee8   : > { %v6190_v42 = vadd.f32 %v6713_v50, %v6120_v10 }
 0xeea   : > { %v6260_v35 = vadd.f32 %v6748_v53, %v6190_v42 }
 0xeec   : > { %v6263_v39 = vmax.f32 %v6260_v35, 0.0 }
 0xeee   : > { %6264 = vst [vmem:[%s473_s15] sm:$0xff] %v6263_v39 }
 0xeef   : > { %7853 = shalt.err (!%p7850_p2)
}
 0xef0   : > { %s7854_s11 = scalar_lea.hbm %s9374_s27, 128  ;;  %s7858_s24 = scalar_lea.hbm %s9470_s29, 256 }
 0xef1   : > { %p7855_p5 = scmp.ne.s32.totalorder %s9374_s27, %s7854_s11  ;;  %p7859_p12 = scmp.lt.u32.totalorder %s9374_s27, %s9470_s29 }
 0xef2   : > { %p7860_p13 = scmp.lt.u32.totalorder %s7858_s24, %s7854_s11  ;;  %p7862_p8 = scmp.lt.u32.totalorder %s7854_s11, %s9374_s27 }
 0xef3   : > { %p7856_p6 = pnand %p7855_p5, %p9471_p7 }
 0xef4   : > { %p7861_p0 = por %p7860_p13, %p7859_p12 }
 0xef5   : > { %p7857_p11 = pneg %p7856_p6 }
 0xef6   : > { %p7863_p9 = por %p7862_p8, %p7861_p0 }
 0xef8   : > { %p7864_p10 = pnand %p7863_p9, %p7857_p11 }
 0xefa   : > { %7867 = shalt.err (!%p7864_p10)
}
 0xefb   : > { %7674 = dma.vmem_to_hbm [thread:$0]  (%p9471_p7), %s9376_s10, 128, %s9374_s27, %s6266_s12  }
 0xefc PF: > { %s9472_s6 = sld [smem:[#allocation19_spill]]  ;;  %s9473_s15 = sld [smem:[#allocation23_spill]] }
 0xf02   : > { %s6291_s17 = sand.u32 1, %s9472_s6   ;;  %p9474_p1 = scmp.ne.s32.totalorder %s9473_s15, 0 }
 0xf03   : > { %s6292_s23 = scalar_lea.sflag [#allocation5], %s6291_s17 }
 0xf04   : > { %p7687_p3 = pnand %p6383_p4, %p9474_p1 }
 0xf06   : > { %7897 = dma.done.wait (!%p7687_p3), %s6292_s23, 128  }
 0xf07   : > { %7899 = vsyncadd (!%p7687_p3), %s6292_s23, 4294967168  ;;  %s9475_s20 = sld [smem:[#allocation20_spill]]  ;;  %s9476_s13 = sld [smem:[#allocation21_spill]] }
 0xf08   : > { %s9477_s17 = smov %s7906_s18  ;;  %s9478_s18 = smov %s7910_s19 }
 0xf0d   : > { %p26_p2 = scmp.ge.s32.totalorder %s9475_s20, 4   ;;  %s9479_s19 = smov %s9476_s13 }
 0xf0f   :  { %28 = sbr.rel (!%p26_p2) target bundleno = 12 (0xc), region = 137 }
 0xf16   :  { %6297 = vsyncpa [#allocation4], 1 }
 0xf17   :  { %6299 = vsyncpa [#allocation4 + $0x1], 1 }
 0xf18   :  { %6300 = vsyncpa [#allocation7], 1 }
 0xf19   :  { %6301 = vsyncpa [#allocation10], 1 }
 0xf1a   :  { %6302 = vsyncpa [#allocation5], 1 }
 0xf1b   :  { %6304 = vsyncpa [#allocation5 + $0x1], 1 }

</bundles_post_ra>
